<compile_context>
chip_gen: v7x
topology: tpu7x:2x2x1
jax: 0.10.0
libtpu: 0.0.40
codegen_flags: <defaults>
</compile_context>

<pallas_src>
import functools
import itertools
import math

import jax
import jax.numpy as jnp
from jax import lax
from jax.experimental import pallas as pl
from jax.experimental.pallas import tpu as pltpu

NEG_SLOPE = 0.2
_VMEM_LIMIT = 48 * 1024 * 1024  # > default scoped limit, < v7x 64 MiB physical


# ---------------------------------------------------------------------------
# Pallas kernel 1: fused linear (block_mlp):  y = leaky_relu(x @ w + b)
# ---------------------------------------------------------------------------
def _linear_kernel(x_ref, w_ref, b_ref, o_ref, *, negative_slope):
    acc = jnp.dot(x_ref[...], w_ref[...], preferred_element_type=jnp.float32)
    acc = acc + b_ref[...]
    if negative_slope is not None:
        acc = jnp.where(acc >= 0.0, acc, negative_slope * acc)
    o_ref[...] = acc.astype(o_ref.dtype)


def linear_bias_act(x, w, b, negative_slope=None, tm=512):
    """x:(M,K) f32/bf16, w:(K,N), b:(N,) -> (M,N) bf16 (MXU in bf16, f32 acc)."""
    M, K = x.shape
    _, N = w.shape
    tm = min(tm, ((M + 7) // 8) * 8)
    m_pad = ((M + tm - 1) // tm) * tm
    if m_pad != M:
        x = jnp.pad(x, ((0, m_pad - M), (0, 0)))
    out = pl.pallas_call(
        functools.partial(_linear_kernel, negative_slope=negative_slope),
        out_shape=jax.ShapeDtypeStruct((m_pad, N), jnp.bfloat16),
        grid_spec=pltpu.PrefetchScalarGridSpec(
            num_scalar_prefetch=0,
            grid=(m_pad // tm,),
            in_specs=[
                pl.BlockSpec((tm, K), lambda i: (i, 0)),
                pl.BlockSpec((K, N), lambda i: (0, 0)),
                pl.BlockSpec((1, N), lambda i: (0, 0)),
            ],
            out_specs=pl.BlockSpec((tm, N), lambda i: (i, 0)),
        ),
        compiler_params=pltpu.CompilerParams(
            dimension_semantics=("parallel",),
            vmem_limit_bytes=_VMEM_LIMIT),
    )(x.astype(jnp.bfloat16), w.astype(jnp.bfloat16),
      b.reshape(1, N).astype(jnp.float32))
    return out[:M]


# ---------------------------------------------------------------------------
# Pallas kernel 2: fused ConvTranspose3d(k=4, s=2, p=1) + bias (+ LeakyReLU)
# ---------------------------------------------------------------------------
# For output index o = 2j + p (parity p in {0,1}) along each axis, the two
# contributing taps are input offset (p + t - 1) with kernel index (3 - p - 2t)
# for t in {0,1}.  With a zero-padded input xp (pad=1), the tap plane index is
# simply j + p + t.
def _convt_kernel(x_ref, w_ref, b_ref, o_ref, acc_ref, *,
                  dim, cin, cout, negative_slope):
    # grid = (b, pz, py, jz, tz); this step accumulates the z-tap `tz`
    # contribution for all (py-row, px in {0,1}) outputs of coarse z-row jz.
    py = pl.program_id(2)
    tz = pl.program_id(4)

    @pl.when(tz == 0)
    def _init():
        acc_ref[...] = jnp.zeros_like(acc_ref)

    for px in (0, 1):
        part = None
        for ty in (0, 1):
            for tx in (0, 1):
                tap = x_ref[pl.ds(py + ty, dim), pl.ds(px + tx, dim), :]
                tap = tap.reshape(dim * dim, cin)
                tap_idx = tz * 8 + px * 4 + ty * 2 + tx      # packed weight slab
                wt = w_ref[tap_idx]                          # (cin, cout) bf16
                c = jnp.dot(tap, wt, preferred_element_type=jnp.float32)
                part = c if part is None else part + c
        acc_ref[:, px * cout:(px + 1) * cout] += part

    @pl.when(tz == 1)
    def _finalize():
        r = acc_ref[...] + b_ref[...]
        if negative_slope is not None:
            r = jnp.where(r >= 0.0, r, negative_slope * r)
        o_ref[...] = r.reshape(dim, dim, 2 * cout).astype(o_ref.dtype)


def conv_transpose3d(x, wp, b2, negative_slope=None):
    """Fused ConvTranspose3d(4, 2, 1) + bias (+ LeakyReLU), channels-last.

    x:  (B, D, D, D, Cin) bf16
    wp: (2, 2, 16, Cin, Cout) bf16, dims = (pz, py, [tz,px,ty,tx], Cin, Cout)
    b2: (1, 2*Cout) f32 (bias tiled over the x-parity lane split)
    returns (B, 2D, 2D, 2D, Cout) bf16
    """
    B, D = x.shape[0], x.shape[1]
    cin, cout = wp.shape[-2], wp.shape[-1]
    xp = jnp.pad(x, ((0, 0), (1, 1), (1, 1), (1, 1), (0, 0)))

    out = pl.pallas_call(
        functools.partial(_convt_kernel, dim=D, cin=cin, cout=cout,
                          negative_slope=negative_slope),
        # out dims: ((b, jz, pz) flattened, jy, py, jx, (px, c)) -> reshape is free
        out_shape=jax.ShapeDtypeStruct((B * D * 2, D, 2, D, 2 * cout),
                                       jnp.bfloat16),
        grid_spec=pltpu.PrefetchScalarGridSpec(
            num_scalar_prefetch=0,
            grid=(B, 2, 2, D, 2),                    # (b, pz, py, jz, tz)
            in_specs=[
                # one padded z-plane of the input per step (in-kernel tap gather)
                pl.BlockSpec((None, None, D + 2, D + 2, cin),
                             lambda b, pz, py, jz, tz: (b, jz + pz + tz, 0, 0, 0)),
                # per-(pz, py) weight slab; holds both z-taps -> fetched rarely
                pl.BlockSpec((None, None, 16, cin, cout),
                             lambda b, pz, py, jz, tz: (pz, py, 0, 0, 0)),
                pl.BlockSpec((1, 2 * cout),
                             lambda b, pz, py, jz, tz: (0, 0)),
            ],
            out_specs=pl.BlockSpec(
                (None, D, None, D, 2 * cout),
                lambda b, pz, py, jz, tz: ((b * D + jz) * 2 + pz, 0, py, 0, 0)),
            scratch_shapes=[pltpu.VMEM((D * D, 2 * cout), jnp.float32)],
        ),
        compiler_params=pltpu.CompilerParams(
            dimension_semantics=("parallel", "parallel", "parallel",
                                 "parallel", "arbitrary"),
            vmem_limit_bytes=_VMEM_LIMIT),
    )(xp, wp, b2)
    # ((b,jz,pz), jy, py, jx, (px,c)) -> (B, 2D, 2D, 2D, C): adjacent dims, free.
    return out.reshape(B, 2 * D, 2 * D, 2 * D, cout)


# ---------------------------------------------------------------------------
# Parameter construction (mirrors initseq / initmod deterministically)
# ---------------------------------------------------------------------------
def _gain_leaky(neg):
    return math.sqrt(2.0 / (1.0 + neg * neg))


def _conv_channel_pairs(volume_size, voxel_channels, hidden):
    pairs = []
    inch, outch = hidden, hidden // 2
    for _ in range(int(math.log2(volume_size)) - 1):
        pairs.append((inch, outch))
        if inch == outch:
            outch = inch // 2
        else:
            inch = outch
    pairs.append((inch, voxel_channels))
    return pairs


def _pack_convt_weight(w):
    """(Cin,Cout,4,4,4) torch layout -> (2,2,16,Cin,Cout) bf16 parity/tap slab."""
    cin, cout = w.shape[0], w.shape[1]
    slabs = []
    for pz, py, tz, px, ty, tx in itertools.product((0, 1), repeat=6):
        slabs.append(w[:, :, 3 - pz - 2 * tz, 3 - py - 2 * ty, 3 - px - 2 * tx])
    wp = jnp.stack(slabs, axis=0).reshape(2, 2, 16, cin, cout)
    return wp.astype(jnp.bfloat16)


def init_params(key, embedding_size=256, volume_size=128, voxel_channels=4,
                hidden=1024):
    gain_lrelu = _gain_leaky(NEG_SLOPE)
    params = {}

    # block_mlp: Linear(embedding_size, hidden) followed by LeakyReLU(0.2)
    std = gain_lrelu * math.sqrt(2.0 / (embedding_size + hidden))
    bound = std * math.sqrt(3.0)
    key, k = jax.random.split(key)
    params["mlp_w"] = jax.random.uniform(
        k, (embedding_size, hidden), jnp.float32, -bound, bound)
    params["mlp_b"] = jnp.zeros((hidden,), jnp.float32)

    convs = []
    pairs = _conv_channel_pairs(volume_size, voxel_channels, hidden)
    for li, (ci, co) in enumerate(pairs):
        is_last = li == len(pairs) - 1
        gain = 1.0 if is_last else gain_lrelu
        ksize = (4 * 4 * 4) // (2 * 2 * 2)          # ConvTranspose3d xaviermultiplier
        std = gain * math.sqrt(2.0 / ((ci + co) * ksize))
        bound = std * math.sqrt(3.0)
        key, k = jax.random.split(key)
        w = jax.random.uniform(k, (ci, co, 4, 4, 4), jnp.float32, -bound, bound)
        # initmod replicates the even-parity sub-kernel to all 8 parities
        base = w[:, :, 0::2, 0::2, 0::2]
        w = jnp.repeat(jnp.repeat(jnp.repeat(base, 2, axis=2), 2, axis=3), 2, axis=4)
        b = jnp.zeros((co,), jnp.float32)
        convs.append({
            "w": w,                                  # torch layout (reference)
            "b": b,
            "wp": _pack_convt_weight(w),             # packed bf16 kernel weights
            "b2": jnp.tile(b, 2).reshape(1, 2 * co).astype(jnp.float32),
        })
    params["convs"] = convs
    return params


# ---------------------------------------------------------------------------
# Forward pass (== ConvDecoder3D.forward)
# ---------------------------------------------------------------------------
def conv_decoder3d_forward(params, embedding):
    hidden = params["mlp_w"].shape[1]
    h = linear_bias_act(embedding, params["mlp_w"], params["mlp_b"],
                        negative_slope=NEG_SLOPE)            # (B, hidden) bf16
    x = h.reshape(-1, 1, 1, 1, hidden)                       # channels-last NDHWC
    n = len(params["convs"])
    for li, layer in enumerate(params["convs"]):
        ns = None if li == n - 1 else NEG_SLOPE              # no act after last
        x = conv_transpose3d(x, layer["wp"], layer["b2"], negative_slope=ns)
    # single NDHWC -> NCDHW conversion at the very end
    return jnp.transpose(x, (0, 4, 1, 2, 3)).astype(jnp.float32)


# ---------------------------------------------------------------------------
# Pure-JAX f32 reference (verification only)
# ---------------------------------------------------------------------------
def _ref_conv_transpose3d(x, w, b):
    w_flip = w[:, :, ::-1, ::-1, ::-1]
    w_oi = jnp.transpose(w_flip, (1, 0, 2, 3, 4))            # (Cout, Cin, 4,4,4)
    y = lax.conv_general_dilated(
        x, w_oi, window_strides=(1, 1, 1),
        padding=[(2, 2)] * 3, lhs_dilation=(2, 2, 2),
        dimension_numbers=("NCDHW", "OIDHW", "NCDHW"))
    return y + b.reshape(1, -1, 1, 1, 1)


def _ref_forward(params, embedding):
    h = embedding @ params["mlp_w"] + params["mlp_b"]
    h = jnp.where(h >= 0, h, NEG_SLOPE * h)
    x = h.reshape(-1, params["mlp_w"].shape[1], 1, 1, 1)
    n = len(params["convs"])
    for li, layer in enumerate(params["convs"]):
        x = _ref_conv_transpose3d(x, layer["w"], layer["b"])
        if li != n - 1:
            x = jnp.where(x >= 0, x, NEG_SLOPE * x)
    return x


if __name__ == "__main__":
    # Small config consistent with the module structure (module defaults are
    # embedding_size=256, volume_size=128, hidden=1024; scaled down here).
    B, EMB, VOL, VOX, HID = 2, 32, 16, 4, 64

    key = jax.random.PRNGKey(0)
    pkey, xkey = jax.random.split(key)
    params = init_params(pkey, embedding_size=EMB, volume_size=VOL,
                         voxel_channels=VOX, hidden=HID)
    embedding = jax.random.normal(xkey, (B, EMB), jnp.float32)

    fwd = jax.jit(conv_decoder3d_forward)
    out = jax.block_until_ready(fwd(params, embedding))
    assert out.shape == (B, VOX, VOL, VOL, VOL), out.shape

    ref = jax.block_until_ready(_ref_forward(params, embedding))
    # bf16 MXU vs f32 reference: check max-normalized error
    err = float(jnp.max(jnp.abs(out - ref)) / (jnp.max(jnp.abs(ref)) + 1e-6))
    assert err < 7.5e-2, err

    print("KERNEL_OK")
</pallas_src>

<mosaic_0001>
module attributes {stable_mosaic.version = 11 : i64} {
  func.func @_linear_kernel(%arg0: i32, %arg1: memref<8x32xbf16, #tpu.memory_space<vmem>>, %arg2: memref<32x64xbf16, #tpu.memory_space<vmem>>, %arg3: memref<1x64xf32, #tpu.memory_space<vmem>>, %arg4: memref<8x64xbf16, #tpu.memory_space<vmem>>) attributes {dimension_semantics = [#tpu.dimension_semantics<parallel>], iteration_bounds = array<i64: 1>, scalar_prefetch = 0 : i64, scratch_operands = 0 : i64, tpu.core_type = #tpu.core_type<tc>, window_params = [{transform_indices = @transform_0, window_bounds = array<i64: 8, 32>}, {pipeline_mode = #tpu.pipeline_mode<synchronous>, transform_indices = @transform_1, window_bounds = array<i64: 32, 64>}, {pipeline_mode = #tpu.pipeline_mode<synchronous>, transform_indices = @transform_2, window_bounds = array<i64: 1, 64>}, {transform_indices = @transform_3, window_bounds = array<i64: 8, 64>}]} {
    %c0 = arith.constant 0 : index
    %c0_0 = arith.constant 0 : index
    %0 = vector.load %arg1[%c0, %c0_0] : memref<8x32xbf16, #tpu.memory_space<vmem>>, vector<8x32xbf16>
    %c0_1 = arith.constant 0 : index
    %c0_2 = arith.constant 0 : index
    %1 = vector.load %arg2[%c0_1, %c0_2] : memref<32x64xbf16, #tpu.memory_space<vmem>>, vector<32x64xbf16>
    %cst = arith.constant dense<0.000000e+00> : vector<8x64xf32>
    %2 = tpu.matmul %0, %1, %cst {dimension_numbers = #tpu.dot_dimension_numbers<[1], [0], [0], [1], [0, 0, 1, 1], [], []>} : vector<8x32xbf16>, vector<32x64xbf16>, vector<8x64xf32> -> vector<8x64xf32>
    %c0_3 = arith.constant 0 : index
    %c0_4 = arith.constant 0 : index
    %3 = vector.load %arg3[%c0_3, %c0_4] : memref<1x64xf32, #tpu.memory_space<vmem>>, vector<1x64xf32>
    %4 = vector.broadcast %3 : vector<1x64xf32> to vector<8x64xf32>
    %5 = arith.addf %2, %4 : vector<8x64xf32>
    %cst_5 = arith.constant 0.000000e+00 : f32
    %6 = vector.broadcast %cst_5 : f32 to vector<8x64xf32>
    %7 = arith.cmpf oge, %5, %6 : vector<8x64xf32>
    %cst_6 = arith.constant 2.000000e-01 : f32
    %8 = vector.broadcast %cst_6 : f32 to vector<8x64xf32>
    %9 = arith.mulf %8, %5 : vector<8x64xf32>
    %10 = arith.select %7, %5, %9 : vector<8x64xi1>, vector<8x64xf32>
    %11 = arith.truncf %10 : vector<8x64xf32> to vector<8x64xbf16>
    %c0_7 = arith.constant 0 : index
    %c0_8 = arith.constant 0 : index
    %12 = vector.load %arg4[%c0_7, %c0_8] : memref<8x64xbf16, #tpu.memory_space<vmem>>, vector<8x64xbf16>
    tpu.vector_store %arg4[%c0_7, %c0_8], %11 {strides = array<i32>} : memref<8x64xbf16, #tpu.memory_space<vmem>>, vector<8x64xbf16>,
    return
  }
  func.func @transform_0(%arg0: i32) -> (i32, i32) {
    %c0_i32 = arith.constant 0 : i32
    %c0_i32_0 = arith.constant 0 : i32
    return %arg0, %c0_i32 : i32, i32
  }
  func.func @transform_1(%arg0: i32) -> (i32, i32) {
    %c0_i32 = arith.constant 0 : i32
    %c0_i32_0 = arith.constant 0 : i32
    %c0_i32_1 = arith.constant 0 : i32
    return %c0_i32, %c0_i32_0 : i32, i32
  }
  func.func @transform_2(%arg0: i32) -> (i32, i32) {
    %c0_i32 = arith.constant 0 : i32
    %c0_i32_0 = arith.constant 0 : i32
    %c0_i32_1 = arith.constant 0 : i32
    return %c0_i32, %c0_i32_0 : i32, i32
  }
  func.func @transform_3(%arg0: i32) -> (i32, i32) {
    %c0_i32 = arith.constant 0 : i32
    %c0_i32_0 = arith.constant 0 : i32
    return %arg0, %c0_i32 : i32, i32
  }
}

module attributes {stable_mosaic.version = 11 : i64} {
  func.func @_convt_kernel(%arg0: i32, %arg1: i32, %arg2: i32, %arg3: i32, %arg4: i32, %arg5: memref<1x1x3x3x64xbf16, #tpu.memory_space<vmem>>, %arg6: memref<1x1x16x64x32xbf16, #tpu.memory_space<vmem>>, %arg7: memref<1x64xf32, #tpu.memory_space<vmem>>, %arg8: memref<1x1x1x1x64xbf16, #tpu.memory_space<vmem>>, %arg9: memref<1x64xf32, #tpu.memory_space<vmem>>) attributes {dimension_semantics = [#tpu.dimension_semantics<parallel>, #tpu.dimension_semantics<parallel>, #tpu.dimension_semantics<parallel>, #tpu.dimension_semantics<parallel>, #tpu.dimension_semantics<arbitrary>], iteration_bounds = array<i64: 2, 2, 2, 1, 2>, scalar_prefetch = 0 : i64, scratch_operands = 1 : i64, tpu.core_type = #tpu.core_type<tc>, window_params = [{transform_indices = @transform_0, window_bounds = array<i64: 1, 1, 3, 3, 64>}, {transform_indices = @transform_1, window_bounds = array<i64: 1, 1, 16, 64, 32>}, {pipeline_mode = #tpu.pipeline_mode<synchronous>, transform_indices = @transform_2, window_bounds = array<i64: 1, 64>}, {transform_indices = @transform_3, window_bounds = array<i64: 1, 1, 1, 1, 64>}]} {
    %c0_i32 = arith.constant 0 : i32
    %0 = arith.cmpi eq, %arg4, %c0_i32 : i32
    %1 = arith.extui %0 : i1 to i32
    %c0_i32_0 = arith.constant 0 : i32
    %2 = arith.cmpi ne, %1, %c0_i32_0 : i32
    scf.if %2 {
      %cst_114 = arith.constant 0.000000e+00 : f32
      %122 = vector.broadcast %cst_114 : f32 to vector<1x64xf32>
      %c0_115 = arith.constant 0 : index
      %c0_116 = arith.constant 0 : index
      %123 = vector.load %arg9[%c0_115, %c0_116] : memref<1x64xf32, #tpu.memory_space<vmem>>, vector<1x64xf32>
      tpu.vector_store %arg9[%c0_115, %c0_116], %122 {strides = array<i32>} : memref<1x64xf32, #tpu.memory_space<vmem>>, vector<1x64xf32>,
    } else {
    }
    %c0_i32_1 = arith.constant 0 : i32
    %3 = arith.addi %arg2, %c0_i32_1 : i32
    %c0 = arith.constant 0 : index
    %c0_2 = arith.constant 0 : index
    %4 = arith.index_cast %3 : i32 to index
    %c0_3 = arith.constant 0 : index
    %c0_4 = arith.constant 0 : index
    %5 = vector.load %arg5[%c0, %c0_2, %4, %c0_3, %c0_4] : memref<1x1x3x3x64xbf16, #tpu.memory_space<vmem>>, vector<1x1x1x1x64xbf16>
    %6 = vector.shape_cast %5 : vector<1x1x1x1x64xbf16> to vector<1x1x64xbf16>
    %7 = vector.shape_cast %6 : vector<1x1x64xbf16> to vector<1x64xbf16>
    %c8_i32 = arith.constant 8 : i32
    %8 = arith.muli %arg4, %c8_i32 : i32
    %c0_i32_5 = arith.constant 0 : i32
    %9 = arith.addi %8, %c0_i32_5 : i32
    %c0_i32_6 = arith.constant 0 : i32
    %10 = arith.addi %9, %c0_i32_6 : i32
    %c0_i32_7 = arith.constant 0 : i32
    %11 = arith.addi %10, %c0_i32_7 : i32
    %c0_8 = arith.constant 0 : index
    %c0_9 = arith.constant 0 : index
    %12 = arith.index_cast %11 : i32 to index
    %c0_10 = arith.constant 0 : index
    %c0_11 = arith.constant 0 : index
    %13 = vector.load %arg6[%c0_8, %c0_9, %12, %c0_10, %c0_11] : memref<1x1x16x64x32xbf16, #tpu.memory_space<vmem>>, vector<1x1x1x64x32xbf16>
    %14 = vector.shape_cast %13 : vector<1x1x1x64x32xbf16> to vector<64x32xbf16>
    %cst = arith.constant dense<0.000000e+00> : vector<1x32xf32>
    %15 = tpu.matmul %7, %14, %cst {dimension_numbers = #tpu.dot_dimension_numbers<[1], [0], [0], [1], [0, 0, 1, 1], [], []>} : vector<1x64xbf16>, vector<64x32xbf16>, vector<1x32xf32> -> vector<1x32xf32>
    %c0_i32_12 = arith.constant 0 : i32
    %16 = arith.addi %arg2, %c0_i32_12 : i32
    %c0_13 = arith.constant 0 : index
    %c0_14 = arith.constant 0 : index
    %17 = arith.index_cast %16 : i32 to index
    %c1 = arith.constant 1 : index
    %c0_15 = arith.constant 0 : index
    %18 = vector.load %arg5[%c0_13, %c0_14, %17, %c1, %c0_15] : memref<1x1x3x3x64xbf16, #tpu.memory_space<vmem>>, vector<1x1x1x1x64xbf16>
    %19 = vector.shape_cast %18 : vector<1x1x1x1x64xbf16> to vector<1x1x64xbf16>
    %20 = vector.shape_cast %19 : vector<1x1x64xbf16> to vector<1x64xbf16>
    %c8_i32_16 = arith.constant 8 : i32
    %21 = arith.muli %arg4, %c8_i32_16 : i32
    %c0_i32_17 = arith.constant 0 : i32
    %22 = arith.addi %21, %c0_i32_17 : i32
    %c0_i32_18 = arith.constant 0 : i32
    %23 = arith.addi %22, %c0_i32_18 : i32
    %c1_i32 = arith.constant 1 : i32
    %24 = arith.addi %23, %c1_i32 : i32
    %c0_19 = arith.constant 0 : index
    %c0_20 = arith.constant 0 : index
    %25 = arith.index_cast %24 : i32 to index
    %c0_21 = arith.constant 0 : index
    %c0_22 = arith.constant 0 : index
    %26 = vector.load %arg6[%c0_19, %c0_20, %25, %c0_21, %c0_22] : memref<1x1x16x64x32xbf16, #tpu.memory_space<vmem>>, vector<1x1x1x64x32xbf16>
    %27 = vector.shape_cast %26 : vector<1x1x1x64x32xbf16> to vector<64x32xbf16>
    %cst_23 = arith.constant dense<0.000000e+00> : vector<1x32xf32>
    %28 = tpu.matmul %20, %27, %cst_23 {dimension_numbers = #tpu.dot_dimension_numbers<[1], [0], [0], [1], [0, 0, 1, 1], [], []>} : vector<1x64xbf16>, vector<64x32xbf16>, vector<1x32xf32> -> vector<1x32xf32>
    %29 = arith.addf %15, %28 : vector<1x32xf32>
    %c1_i32_24 = arith.constant 1 : i32
    %30 = arith.addi %arg2, %c1_i32_24 : i32
    %c0_25 = arith.constant 0 : index
    %c0_26 = arith.constant 0 : index
    %31 = arith.index_cast %30 : i32 to index
    %c0_27 = arith.constant 0 : index
    %c0_28 = arith.constant 0 : index
    %32 = vector.load %arg5[%c0_25, %c0_26, %31, %c0_27, %c0_28] : memref<1x1x3x3x64xbf16, #tpu.memory_space<vmem>>, vector<1x1x1x1x64xbf16>
    %33 = vector.shape_cast %32 : vector<1x1x1x1x64xbf16> to vector<1x1x64xbf16>
    %34 = vector.shape_cast %33 : vector<1x1x64xbf16> to vector<1x64xbf16>
    %c8_i32_29 = arith.constant 8 : i32
    %35 = arith.muli %arg4, %c8_i32_29 : i32
    %c0_i32_30 = arith.constant 0 : i32
    %36 = arith.addi %35, %c0_i32_30 : i32
    %c2_i32 = arith.constant 2 : i32
    %37 = arith.addi %36, %c2_i32 : i32
    %c0_i32_31 = arith.constant 0 : i32
    %38 = arith.addi %37, %c0_i32_31 : i32
    %c0_32 = arith.constant 0 : index
    %c0_33 = arith.constant 0 : index
    %39 = arith.index_cast %38 : i32 to index
    %c0_34 = arith.constant 0 : index
    %c0_35 = arith.constant 0 : index
    %40 = vector.load %arg6[%c0_32, %c0_33, %39, %c0_34, %c0_35] : memref<1x1x16x64x32xbf16, #tpu.memory_space<vmem>>, vector<1x1x1x64x32xbf16>
    %41 = vector.shape_cast %40 : vector<1x1x1x64x32xbf16> to vector<64x32xbf16>
    %cst_36 = arith.constant dense<0.000000e+00> : vector<1x32xf32>
    %42 = tpu.matmul %34, %41, %cst_36 {dimension_numbers = #tpu.dot_dimension_numbers<[1], [0], [0], [1], [0, 0, 1, 1], [], []>} : vector<1x64xbf16>, vector<64x32xbf16>, vector<1x32xf32> -> vector<1x32xf32>
    %43 = arith.addf %29, %42 : vector<1x32xf32>
    %c1_i32_37 = arith.constant 1 : i32
    %44 = arith.addi %arg2, %c1_i32_37 : i32
    %c0_38 = arith.constant 0 : index
    %c0_39 = arith.constant 0 : index
    %45 = arith.index_cast %44 : i32 to index
    %c1_40 = arith.constant 1 : index
    %c0_41 = arith.constant 0 : index
    %46 = vector.load %arg5[%c0_38, %c0_39, %45, %c1_40, %c0_41] : memref<1x1x3x3x64xbf16, #tpu.memory_space<vmem>>, vector<1x1x1x1x64xbf16>
    %47 = vector.shape_cast %46 : vector<1x1x1x1x64xbf16> to vector<1x1x64xbf16>
    %48 = vector.shape_cast %47 : vector<1x1x64xbf16> to vector<1x64xbf16>
    %c8_i32_42 = arith.constant 8 : i32
    %49 = arith.muli %arg4, %c8_i32_42 : i32
    %c0_i32_43 = arith.constant 0 : i32
    %50 = arith.addi %49, %c0_i32_43 : i32
    %c2_i32_44 = arith.constant 2 : i32
    %51 = arith.addi %50, %c2_i32_44 : i32
    %c1_i32_45 = arith.constant 1 : i32
    %52 = arith.addi %51, %c1_i32_45 : i32
    %c0_46 = arith.constant 0 : index
    %c0_47 = arith.constant 0 : index
    %53 = arith.index_cast %52 : i32 to index
    %c0_48 = arith.constant 0 : index
    %c0_49 = arith.constant 0 : index
    %54 = vector.load %arg6[%c0_46, %c0_47, %53, %c0_48, %c0_49] : memref<1x1x16x64x32xbf16, #tpu.memory_space<vmem>>, vector<1x1x1x64x32xbf16>
    %55 = vector.shape_cast %54 : vector<1x1x1x64x32xbf16> to vector<64x32xbf16>
    %cst_50 = arith.constant dense<0.000000e+00> : vector<1x32xf32>
    %56 = tpu.matmul %48, %55, %cst_50 {dimension_numbers = #tpu.dot_dimension_numbers<[1], [0], [0], [1], [0, 0, 1, 1], [], []>} : vector<1x64xbf16>, vector<64x32xbf16>, vector<1x32xf32> -> vector<1x32xf32>
    %57 = arith.addf %43, %56 : vector<1x32xf32>
    %c0_51 = arith.constant 0 : index
    %c0_52 = arith.constant 0 : index
    %58 = vector.load %arg9[%c0_51, %c0_52] : memref<1x64xf32, #tpu.memory_space<vmem>>, vector<1x32xf32>
    %59 = arith.addf %58, %57 : vector<1x32xf32>
    %c0_53 = arith.constant 0 : index
    %c0_54 = arith.constant 0 : index
    %60 = vector.load %arg9[%c0_53, %c0_54] : memref<1x64xf32, #tpu.memory_space<vmem>>, vector<1x32xf32>
    tpu.vector_store %arg9[%c0_53, %c0_54], %59 {strides = array<i32>} : memref<1x64xf32, #tpu.memory_space<vmem>>, vector<1x32xf32>,
    %c0_i32_55 = arith.constant 0 : i32
    %61 = arith.addi %arg2, %c0_i32_55 : i32
    %c0_56 = arith.constant 0 : index
    %c0_57 = arith.constant 0 : index
    %62 = arith.index_cast %61 : i32 to index
    %c1_58 = arith.constant 1 : index
    %c0_59 = arith.constant 0 : index
    %63 = vector.load %arg5[%c0_56, %c0_57, %62, %c1_58, %c0_59] : memref<1x1x3x3x64xbf16, #tpu.memory_space<vmem>>, vector<1x1x1x1x64xbf16>
    %64 = vector.shape_cast %63 : vector<1x1x1x1x64xbf16> to vector<1x1x64xbf16>
    %65 = vector.shape_cast %64 : vector<1x1x64xbf16> to vector<1x64xbf16>
    %c8_i32_60 = arith.constant 8 : i32
    %66 = arith.muli %arg4, %c8_i32_60 : i32
    %c4_i32 = arith.constant 4 : i32
    %67 = arith.addi %66, %c4_i32 : i32
    %c0_i32_61 = arith.constant 0 : i32
    %68 = arith.addi %67, %c0_i32_61 : i32
    %c0_i32_62 = arith.constant 0 : i32
    %69 = arith.addi %68, %c0_i32_62 : i32
    %c0_63 = arith.constant 0 : index
    %c0_64 = arith.constant 0 : index
    %70 = arith.index_cast %69 : i32 to index
    %c0_65 = arith.constant 0 : index
    %c0_66 = arith.constant 0 : index
    %71 = vector.load %arg6[%c0_63, %c0_64, %70, %c0_65, %c0_66] : memref<1x1x16x64x32xbf16, #tpu.memory_space<vmem>>, vector<1x1x1x64x32xbf16>
    %72 = vector.shape_cast %71 : vector<1x1x1x64x32xbf16> to vector<64x32xbf16>
    %cst_67 = arith.constant dense<0.000000e+00> : vector<1x32xf32>
    %73 = tpu.matmul %65, %72, %cst_67 {dimension_numbers = #tpu.dot_dimension_numbers<[1], [0], [0], [1], [0, 0, 1, 1], [], []>} : vector<1x64xbf16>, vector<64x32xbf16>, vector<1x32xf32> -> vector<1x32xf32>
    %c0_i32_68 = arith.constant 0 : i32
    %74 = arith.addi %arg2, %c0_i32_68 : i32
    %c0_69 = arith.constant 0 : index
    %c0_70 = arith.constant 0 : index
    %75 = arith.index_cast %74 : i32 to index
    %c2 = arith.constant 2 : index
    %c0_71 = arith.constant 0 : index
    %76 = vector.load %arg5[%c0_69, %c0_70, %75, %c2, %c0_71] : memref<1x1x3x3x64xbf16, #tpu.memory_space<vmem>>, vector<1x1x1x1x64xbf16>
    %77 = vector.shape_cast %76 : vector<1x1x1x1x64xbf16> to vector<1x1x64xbf16>
    %78 = vector.shape_cast %77 : vector<1x1x64xbf16> to vector<1x64xbf16>
    %c8_i32_72 = arith.constant 8 : i32
    %79 = arith.muli %arg4, %c8_i32_72 : i32
    %c4_i32_73 = arith.constant 4 : i32
    %80 = arith.addi %79, %c4_i32_73 : i32
    %c0_i32_74 = arith.constant 0 : i32
    %81 = arith.addi %80, %c0_i32_74 : i32
    %c1_i32_75 = arith.constant 1 : i32
    %82 = arith.addi %81, %c1_i32_75 : i32
    %c0_76 = arith.constant 0 : index
    %c0_77 = arith.constant 0 : index
    %83 = arith.index_cast %82 : i32 to index
    %c0_78 = arith.constant 0 : index
    %c0_79 = arith.constant 0 : index
    %84 = vector.load %arg6[%c0_76, %c0_77, %83, %c0_78, %c0_79] : memref<1x1x16x64x32xbf16, #tpu.memory_space<vmem>>, vector<1x1x1x64x32xbf16>
    %85 = vector.shape_cast %84 : vector<1x1x1x64x32xbf16> to vector<64x32xbf16>
    %cst_80 = arith.constant dense<0.000000e+00> : vector<1x32xf32>
    %86 = tpu.matmul %78, %85, %cst_80 {dimension_numbers = #tpu.dot_dimension_numbers<[1], [0], [0], [1], [0, 0, 1, 1], [], []>} : vector<1x64xbf16>, vector<64x32xbf16>, vector<1x32xf32> -> vector<1x32xf32>
    %87 = arith.addf %73, %86 : vector<1x32xf32>
    %c1_i32_81 = arith.constant 1 : i32
    %88 = arith.addi %arg2, %c1_i32_81 : i32
    %c0_82 = arith.constant 0 : index
    %c0_83 = arith.constant 0 : index
    %89 = arith.index_cast %88 : i32 to index
    %c1_84 = arith.constant 1 : index
    %c0_85 = arith.constant 0 : index
    %90 = vector.load %arg5[%c0_82, %c0_83, %89, %c1_84, %c0_85] : memref<1x1x3x3x64xbf16, #tpu.memory_space<vmem>>, vector<1x1x1x1x64xbf16>
    %91 = vector.shape_cast %90 : vector<1x1x1x1x64xbf16> to vector<1x1x64xbf16>
    %92 = vector.shape_cast %91 : vector<1x1x64xbf16> to vector<1x64xbf16>
    %c8_i32_86 = arith.constant 8 : i32
    %93 = arith.muli %arg4, %c8_i32_86 : i32
    %c4_i32_87 = arith.constant 4 : i32
    %94 = arith.addi %93, %c4_i32_87 : i32
    %c2_i32_88 = arith.constant 2 : i32
    %95 = arith.addi %94, %c2_i32_88 : i32
    %c0_i32_89 = arith.constant 0 : i32
    %96 = arith.addi %95, %c0_i32_89 : i32
    %c0_90 = arith.constant 0 : index
    %c0_91 = arith.constant 0 : index
    %97 = arith.index_cast %96 : i32 to index
    %c0_92 = arith.constant 0 : index
    %c0_93 = arith.constant 0 : index
    %98 = vector.load %arg6[%c0_90, %c0_91, %97, %c0_92, %c0_93] : memref<1x1x16x64x32xbf16, #tpu.memory_space<vmem>>, vector<1x1x1x64x32xbf16>
    %99 = vector.shape_cast %98 : vector<1x1x1x64x32xbf16> to vector<64x32xbf16>
    %cst_94 = arith.constant dense<0.000000e+00> : vector<1x32xf32>
    %100 = tpu.matmul %92, %99, %cst_94 {dimension_numbers = #tpu.dot_dimension_numbers<[1], [0], [0], [1], [0, 0, 1, 1], [], []>} : vector<1x64xbf16>, vector<64x32xbf16>, vector<1x32xf32> -> vector<1x32xf32>
    %101 = arith.addf %87, %100 : vector<1x32xf32>
    %c1_i32_95 = arith.constant 1 : i32
    %102 = arith.addi %arg2, %c1_i32_95 : i32
    %c0_96 = arith.constant 0 : index
    %c0_97 = arith.constant 0 : index
    %103 = arith.index_cast %102 : i32 to index
    %c2_98 = arith.constant 2 : index
    %c0_99 = arith.constant 0 : index
    %104 = vector.load %arg5[%c0_96, %c0_97, %103, %c2_98, %c0_99] : memref<1x1x3x3x64xbf16, #tpu.memory_space<vmem>>, vector<1x1x1x1x64xbf16>
    %105 = vector.shape_cast %104 : vector<1x1x1x1x64xbf16> to vector<1x1x64xbf16>
    %106 = vector.shape_cast %105 : vector<1x1x64xbf16> to vector<1x64xbf16>
    %c8_i32_100 = arith.constant 8 : i32
    %107 = arith.muli %arg4, %c8_i32_100 : i32
    %c4_i32_101 = arith.constant 4 : i32
    %108 = arith.addi %107, %c4_i32_101 : i32
    %c2_i32_102 = arith.constant 2 : i32
    %109 = arith.addi %108, %c2_i32_102 : i32
    %c1_i32_103 = arith.constant 1 : i32
    %110 = arith.addi %109, %c1_i32_103 : i32
    %c0_104 = arith.constant 0 : index
    %c0_105 = arith.constant 0 : index
    %111 = arith.index_cast %110 : i32 to index
    %c0_106 = arith.constant 0 : index
    %c0_107 = arith.constant 0 : index
    %112 = vector.load %arg6[%c0_104, %c0_105, %111, %c0_106, %c0_107] : memref<1x1x16x64x32xbf16, #tpu.memory_space<vmem>>, vector<1x1x1x64x32xbf16>
    %113 = vector.shape_cast %112 : vector<1x1x1x64x32xbf16> to vector<64x32xbf16>
    %cst_108 = arith.constant dense<0.000000e+00> : vector<1x32xf32>
    %114 = tpu.matmul %106, %113, %cst_108 {dimension_numbers = #tpu.dot_dimension_numbers<[1], [0], [0], [1], [0, 0, 1, 1], [], []>} : vector<1x64xbf16>, vector<64x32xbf16>, vector<1x32xf32> -> vector<1x32xf32>
    %115 = arith.addf %101, %114 : vector<1x32xf32>
    %c0_109 = arith.constant 0 : index
    %c32 = arith.constant 32 : index
    %116 = vector.load %arg9[%c0_109, %c32] : memref<1x64xf32, #tpu.memory_space<vmem>>, vector<1x32xf32>
    %117 = arith.addf %116, %115 : vector<1x32xf32>
    %c0_110 = arith.constant 0 : index
    %c32_111 = arith.constant 32 : index
    %118 = vector.load %arg9[%c0_110, %c32_111] : memref<1x64xf32, #tpu.memory_space<vmem>>, vector<1x32xf32>
    tpu.vector_store %arg9[%c0_110, %c32_111], %117 {strides = array<i32>} : memref<1x64xf32, #tpu.memory_space<vmem>>, vector<1x32xf32>,
    %c1_i32_112 = arith.constant 1 : i32
    %119 = arith.cmpi eq, %arg4, %c1_i32_112 : i32
    %120 = arith.extui %119 : i1 to i32
    %c0_i32_113 = arith.constant 0 : i32
    %121 = arith.cmpi ne, %120, %c0_i32_113 : i32
    scf.if %121 {
      %c0_114 = arith.constant 0 : index
      %c0_115 = arith.constant 0 : index
      %122 = vector.load %arg9[%c0_114, %c0_115] : memref<1x64xf32, #tpu.memory_space<vmem>>, vector<1x64xf32>
      %c0_116 = arith.constant 0 : index
      %c0_117 = arith.constant 0 : index
      %123 = vector.load %arg7[%c0_116, %c0_117] : memref<1x64xf32, #tpu.memory_space<vmem>>, vector<1x64xf32>
      %124 = arith.addf %122, %123 : vector<1x64xf32>
      %cst_118 = arith.constant 0.000000e+00 : f32
      %125 = vector.broadcast %cst_118 : f32 to vector<1x64xf32>
      %126 = arith.cmpf oge, %124, %125 : vector<1x64xf32>
      %cst_119 = arith.constant 2.000000e-01 : f32
      %127 = vector.broadcast %cst_119 : f32 to vector<1x64xf32>
      %128 = arith.mulf %127, %124 : vector<1x64xf32>
      %129 = arith.select %126, %124, %128 : vector<1x64xi1>, vector<1x64xf32>
      %130 = vector.shape_cast %129 : vector<1x64xf32> to vector<1x1x64xf32>
      %131 = arith.truncf %130 : vector<1x1x64xf32> to vector<1x1x64xbf16>
      %c0_120 = arith.constant 0 : index
      %c0_121 = arith.constant 0 : index
      %c0_122 = arith.constant 0 : index
      %c0_123 = arith.constant 0 : index
      %c0_124 = arith.constant 0 : index
      %132 = vector.load %arg8[%c0_120, %c0_121, %c0_122, %c0_123, %c0_124] : memref<1x1x1x1x64xbf16, #tpu.memory_space<vmem>>, vector<1x1x1x1x64xbf16>
      %133 = vector.shape_cast %132 : vector<1x1x1x1x64xbf16> to vector<1x1x64xbf16>
      %134 = vector.shape_cast %131 : vector<1x1x64xbf16> to vector<1x1x1x1x64xbf16>
      tpu.vector_store %arg8[%c0_120, %c0_121, %c0_122, %c0_123, %c0_124], %134 {strides = array<i32>} : memref<1x1x1x1x64xbf16, #tpu.memory_space<vmem>>, vector<1x1x1x1x64xbf16>,
    } else {
    }
    return
  }
  func.func @transform_0(%arg0: i32, %arg1: i32, %arg2: i32, %arg3: i32, %arg4: i32) -> (i32, i32, i32, i32, i32) {
    %0 = arith.addi %arg3, %arg1 : i32
    %1 = arith.addi %0, %arg4 : i32
    %c0_i32 = arith.constant 0 : i32
    %c0_i32_0 = arith.constant 0 : i32
    %c0_i32_1 = arith.constant 0 : i32
    %c0_i32_2 = arith.constant 0 : i32
    return %arg0, %1, %c0_i32, %c0_i32_0, %c0_i32_1 : i32, i32, i32, i32, i32
  }
  func.func @transform_1(%arg0: i32, %arg1: i32, %arg2: i32, %arg3: i32, %arg4: i32) -> (i32, i32, i32, i32, i32) {
    %c0_i32 = arith.constant 0 : i32
    %c0_i32_0 = arith.constant 0 : i32
    %c0_i32_1 = arith.constant 0 : i32
    %c0_i32_2 = arith.constant 0 : i32
    return %arg1, %arg2, %c0_i32, %c0_i32_0, %c0_i32_1 : i32, i32, i32, i32, i32
  }
  func.func @transform_2(%arg0: i32, %arg1: i32, %arg2: i32, %arg3: i32, %arg4: i32) -> (i32, i32) {
    %c0_i32 = arith.constant 0 : i32
    %c0_i32_0 = arith.constant 0 : i32
    %c0_i32_1 = arith.constant 0 : i32
    return %c0_i32, %c0_i32_0 : i32, i32
  }
  func.func @transform_3(%arg0: i32, %arg1: i32, %arg2: i32, %arg3: i32, %arg4: i32) -> (i32, i32, i32, i32, i32) {
    %c1_i32 = arith.constant 1 : i32
    %0 = arith.muli %arg0, %c1_i32 : i32
    %1 = arith.addi %0, %arg3 : i32
    %c2_i32 = arith.constant 2 : i32
    %2 = arith.muli %1, %c2_i32 : i32
    %3 = arith.addi %2, %arg1 : i32
    %c0_i32 = arith.constant 0 : i32
    %c0_i32_0 = arith.constant 0 : i32
    %c0_i32_1 = arith.constant 0 : i32
    %c0_i32_2 = arith.constant 0 : i32
    return %3, %c0_i32, %arg2, %c0_i32_0, %c0_i32_1 : i32, i32, i32, i32, i32
  }
}

module attributes {stable_mosaic.version = 11 : i64} {
  func.func @_convt_kernel(%arg0: i32, %arg1: i32, %arg2: i32, %arg3: i32, %arg4: i32, %arg5: memref<1x1x4x4x32xbf16, #tpu.memory_space<vmem>>, %arg6: memref<1x1x16x32x32xbf16, #tpu.memory_space<vmem>>, %arg7: memref<1x64xf32, #tpu.memory_space<vmem>>, %arg8: memref<1x2x1x2x64xbf16, #tpu.memory_space<vmem>>, %arg9: memref<4x64xf32, #tpu.memory_space<vmem>>) attributes {dimension_semantics = [#tpu.dimension_semantics<parallel>, #tpu.dimension_semantics<parallel>, #tpu.dimension_semantics<parallel>, #tpu.dimension_semantics<parallel>, #tpu.dimension_semantics<arbitrary>], iteration_bounds = array<i64: 2, 2, 2, 2, 2>, scalar_prefetch = 0 : i64, scratch_operands = 1 : i64, tpu.core_type = #tpu.core_type<tc>, window_params = [{transform_indices = @transform_0, window_bounds = array<i64: 1, 1, 4, 4, 32>}, {transform_indices = @transform_1, window_bounds = array<i64: 1, 1, 16, 32, 32>}, {pipeline_mode = #tpu.pipeline_mode<synchronous>, transform_indices = @transform_2, window_bounds = array<i64: 1, 64>}, {transform_indices = @transform_3, window_bounds = array<i64: 1, 2, 1, 2, 64>}]} {
    %c0_i32 = arith.constant 0 : i32
    %0 = arith.cmpi eq, %arg4, %c0_i32 : i32
    %1 = arith.extui %0 : i1 to i32
    %c0_i32_0 = arith.constant 0 : i32
    %2 = arith.cmpi ne, %1, %c0_i32_0 : i32
    scf.if %2 {
      %cst_114 = arith.constant 0.000000e+00 : f32
      %122 = vector.broadcast %cst_114 : f32 to vector<4x64xf32>
      %c0_115 = arith.constant 0 : index
      %c0_116 = arith.constant 0 : index
      %123 = vector.load %arg9[%c0_115, %c0_116] : memref<4x64xf32, #tpu.memory_space<vmem>>, vector<4x64xf32>
      tpu.vector_store %arg9[%c0_115, %c0_116], %122 {strides = array<i32>} : memref<4x64xf32, #tpu.memory_space<vmem>>, vector<4x64xf32>,
    } else {
    }
    %c0_i32_1 = arith.constant 0 : i32
    %3 = arith.addi %arg2, %c0_i32_1 : i32
    %c0 = arith.constant 0 : index
    %c0_2 = arith.constant 0 : index
    %4 = arith.index_cast %3 : i32 to index
    %c0_3 = arith.constant 0 : index
    %c0_4 = arith.constant 0 : index
    %5 = vector.load %arg5[%c0, %c0_2, %4, %c0_3, %c0_4] : memref<1x1x4x4x32xbf16, #tpu.memory_space<vmem>>, vector<1x1x2x2x32xbf16>
    %6 = vector.shape_cast %5 : vector<1x1x2x2x32xbf16> to vector<2x2x32xbf16>
    %7 = vector.shape_cast %6 : vector<2x2x32xbf16> to vector<4x32xbf16>
    %c8_i32 = arith.constant 8 : i32
    %8 = arith.muli %arg4, %c8_i32 : i32
    %c0_i32_5 = arith.constant 0 : i32
    %9 = arith.addi %8, %c0_i32_5 : i32
    %c0_i32_6 = arith.constant 0 : i32
    %10 = arith.addi %9, %c0_i32_6 : i32
    %c0_i32_7 = arith.constant 0 : i32
    %11 = arith.addi %10, %c0_i32_7 : i32
    %c0_8 = arith.constant 0 : index
    %c0_9 = arith.constant 0 : index
    %12 = arith.index_cast %11 : i32 to index
    %c0_10 = arith.constant 0 : index
    %c0_11 = arith.constant 0 : index
    %13 = vector.load %arg6[%c0_8, %c0_9, %12, %c0_10, %c0_11] : memref<1x1x16x32x32xbf16, #tpu.memory_space<vmem>>, vector<1x1x1x32x32xbf16>
    %14 = vector.shape_cast %13 : vector<1x1x1x32x32xbf16> to vector<32x32xbf16>
    %cst = arith.constant dense<0.000000e+00> : vector<4x32xf32>
    %15 = tpu.matmul %7, %14, %cst {dimension_numbers = #tpu.dot_dimension_numbers<[1], [0], [0], [1], [0, 0, 1, 1], [], []>} : vector<4x32xbf16>, vector<32x32xbf16>, vector<4x32xf32> -> vector<4x32xf32>
    %c0_i32_12 = arith.constant 0 : i32
    %16 = arith.addi %arg2, %c0_i32_12 : i32
    %c0_13 = arith.constant 0 : index
    %c0_14 = arith.constant 0 : index
    %17 = arith.index_cast %16 : i32 to index
    %c1 = arith.constant 1 : index
    %c0_15 = arith.constant 0 : index
    %18 = vector.load %arg5[%c0_13, %c0_14, %17, %c1, %c0_15] : memref<1x1x4x4x32xbf16, #tpu.memory_space<vmem>>, vector<1x1x2x2x32xbf16>
    %19 = vector.shape_cast %18 : vector<1x1x2x2x32xbf16> to vector<2x2x32xbf16>
    %20 = vector.shape_cast %19 : vector<2x2x32xbf16> to vector<4x32xbf16>
    %c8_i32_16 = arith.constant 8 : i32
    %21 = arith.muli %arg4, %c8_i32_16 : i32
    %c0_i32_17 = arith.constant 0 : i32
    %22 = arith.addi %21, %c0_i32_17 : i32
    %c0_i32_18 = arith.constant 0 : i32
    %23 = arith.addi %22, %c0_i32_18 : i32
    %c1_i32 = arith.constant 1 : i32
    %24 = arith.addi %23, %c1_i32 : i32
    %c0_19 = arith.constant 0 : index
    %c0_20 = arith.constant 0 : index
    %25 = arith.index_cast %24 : i32 to index
    %c0_21 = arith.constant 0 : index
    %c0_22 = arith.constant 0 : index
    %26 = vector.load %arg6[%c0_19, %c0_20, %25, %c0_21, %c0_22] : memref<1x1x16x32x32xbf16, #tpu.memory_space<vmem>>, vector<1x1x1x32x32xbf16>
    %27 = vector.shape_cast %26 : vector<1x1x1x32x32xbf16> to vector<32x32xbf16>
    %cst_23 = arith.constant dense<0.000000e+00> : vector<4x32xf32>
    %28 = tpu.matmul %20, %27, %cst_23 {dimension_numbers = #tpu.dot_dimension_numbers<[1], [0], [0], [1], [0, 0, 1, 1], [], []>} : vector<4x32xbf16>, vector<32x32xbf16>, vector<4x32xf32> -> vector<4x32xf32>
    %29 = arith.addf %15, %28 : vector<4x32xf32>
    %c1_i32_24 = arith.constant 1 : i32
    %30 = arith.addi %arg2, %c1_i32_24 : i32
    %c0_25 = arith.constant 0 : index
    %c0_26 = arith.constant 0 : index
    %31 = arith.index_cast %30 : i32 to index
    %c0_27 = arith.constant 0 : index
    %c0_28 = arith.constant 0 : index
    %32 = vector.load %arg5[%c0_25, %c0_26, %31, %c0_27, %c0_28] : memref<1x1x4x4x32xbf16, #tpu.memory_space<vmem>>, vector<1x1x2x2x32xbf16>
    %33 = vector.shape_cast %32 : vector<1x1x2x2x32xbf16> to vector<2x2x32xbf16>
    %34 = vector.shape_cast %33 : vector<2x2x32xbf16> to vector<4x32xbf16>
    %c8_i32_29 = arith.constant 8 : i32
    %35 = arith.muli %arg4, %c8_i32_29 : i32
    %c0_i32_30 = arith.constant 0 : i32
    %36 = arith.addi %35, %c0_i32_30 : i32
    %c2_i32 = arith.constant 2 : i32
    %37 = arith.addi %36, %c2_i32 : i32
    %c0_i32_31 = arith.constant 0 : i32
    %38 = arith.addi %37, %c0_i32_31 : i32
    %c0_32 = arith.constant 0 : index
    %c0_33 = arith.constant 0 : index
    %39 = arith.index_cast %38 : i32 to index
    %c0_34 = arith.constant 0 : index
    %c0_35 = arith.constant 0 : index
    %40 = vector.load %arg6[%c0_32, %c0_33, %39, %c0_34, %c0_35] : memref<1x1x16x32x32xbf16, #tpu.memory_space<vmem>>, vector<1x1x1x32x32xbf16>
    %41 = vector.shape_cast %40 : vector<1x1x1x32x32xbf16> to vector<32x32xbf16>
    %cst_36 = arith.constant dense<0.000000e+00> : vector<4x32xf32>
    %42 = tpu.matmul %34, %41, %cst_36 {dimension_numbers = #tpu.dot_dimension_numbers<[1], [0], [0], [1], [0, 0, 1, 1], [], []>} : vector<4x32xbf16>, vector<32x32xbf16>, vector<4x32xf32> -> vector<4x32xf32>
    %43 = arith.addf %29, %42 : vector<4x32xf32>
    %c1_i32_37 = arith.constant 1 : i32
    %44 = arith.addi %arg2, %c1_i32_37 : i32
    %c0_38 = arith.constant 0 : index
    %c0_39 = arith.constant 0 : index
    %45 = arith.index_cast %44 : i32 to index
    %c1_40 = arith.constant 1 : index
    %c0_41 = arith.constant 0 : index
    %46 = vector.load %arg5[%c0_38, %c0_39, %45, %c1_40, %c0_41] : memref<1x1x4x4x32xbf16, #tpu.memory_space<vmem>>, vector<1x1x2x2x32xbf16>
    %47 = vector.shape_cast %46 : vector<1x1x2x2x32xbf16> to vector<2x2x32xbf16>
    %48 = vector.shape_cast %47 : vector<2x2x32xbf16> to vector<4x32xbf16>
    %c8_i32_42 = arith.constant 8 : i32
    %49 = arith.muli %arg4, %c8_i32_42 : i32
    %c0_i32_43 = arith.constant 0 : i32
    %50 = arith.addi %49, %c0_i32_43 : i32
    %c2_i32_44 = arith.constant 2 : i32
    %51 = arith.addi %50, %c2_i32_44 : i32
    %c1_i32_45 = arith.constant 1 : i32
    %52 = arith.addi %51, %c1_i32_45 : i32
    %c0_46 = arith.constant 0 : index
    %c0_47 = arith.constant 0 : index
    %53 = arith.index_cast %52 : i32 to index
    %c0_48 = arith.constant 0 : index
    %c0_49 = arith.constant 0 : index
    %54 = vector.load %arg6[%c0_46, %c0_47, %53, %c0_48, %c0_49] : memref<1x1x16x32x32xbf16, #tpu.memory_space<vmem>>, vector<1x1x1x32x32xbf16>
    %55 = vector.shape_cast %54 : vector<1x1x1x32x32xbf16> to vector<32x32xbf16>
    %cst_50 = arith.constant dense<0.000000e+00> : vector<4x32xf32>
    %56 = tpu.matmul %48, %55, %cst_50 {dimension_numbers = #tpu.dot_dimension_numbers<[1], [0], [0], [1], [0, 0, 1, 1], [], []>} : vector<4x32xbf16>, vector<32x32xbf16>, vector<4x32xf32> -> vector<4x32xf32>
    %57 = arith.addf %43, %56 : vector<4x32xf32>
    %c0_51 = arith.constant 0 : index
    %c0_52 = arith.constant 0 : index
    %58 = vector.load %arg9[%c0_51, %c0_52] : memref<4x64xf32, #tpu.memory_space<vmem>>, vector<4x32xf32>
    %59 = arith.addf %58, %57 : vector<4x32xf32>
    %c0_53 = arith.constant 0 : index
    %c0_54 = arith.constant 0 : index
    %60 = vector.load %arg9[%c0_53, %c0_54] : memref<4x64xf32, #tpu.memory_space<vmem>>, vector<4x32xf32>
    tpu.vector_store %arg9[%c0_53, %c0_54], %59 {strides = array<i32>} : memref<4x64xf32, #tpu.memory_space<vmem>>, vector<4x32xf32>,
    %c0_i32_55 = arith.constant 0 : i32
    %61 = arith.addi %arg2, %c0_i32_55 : i32
    %c0_56 = arith.constant 0 : index
    %c0_57 = arith.constant 0 : index
    %62 = arith.index_cast %61 : i32 to index
    %c1_58 = arith.constant 1 : index
    %c0_59 = arith.constant 0 : index
    %63 = vector.load %arg5[%c0_56, %c0_57, %62, %c1_58, %c0_59] : memref<1x1x4x4x32xbf16, #tpu.memory_space<vmem>>, vector<1x1x2x2x32xbf16>
    %64 = vector.shape_cast %63 : vector<1x1x2x2x32xbf16> to vector<2x2x32xbf16>
    %65 = vector.shape_cast %64 : vector<2x2x32xbf16> to vector<4x32xbf16>
    %c8_i32_60 = arith.constant 8 : i32
    %66 = arith.muli %arg4, %c8_i32_60 : i32
    %c4_i32 = arith.constant 4 : i32
    %67 = arith.addi %66, %c4_i32 : i32
    %c0_i32_61 = arith.constant 0 : i32
    %68 = arith.addi %67, %c0_i32_61 : i32
    %c0_i32_62 = arith.constant 0 : i32
    %69 = arith.addi %68, %c0_i32_62 : i32
    %c0_63 = arith.constant 0 : index
    %c0_64 = arith.constant 0 : index
    %70 = arith.index_cast %69 : i32 to index
    %c0_65 = arith.constant 0 : index
    %c0_66 = arith.constant 0 : index
    %71 = vector.load %arg6[%c0_63, %c0_64, %70, %c0_65, %c0_66] : memref<1x1x16x32x32xbf16, #tpu.memory_space<vmem>>, vector<1x1x1x32x32xbf16>
    %72 = vector.shape_cast %71 : vector<1x1x1x32x32xbf16> to vector<32x32xbf16>
    %cst_67 = arith.constant dense<0.000000e+00> : vector<4x32xf32>
    %73 = tpu.matmul %65, %72, %cst_67 {dimension_numbers = #tpu.dot_dimension_numbers<[1], [0], [0], [1], [0, 0, 1, 1], [], []>} : vector<4x32xbf16>, vector<32x32xbf16>, vector<4x32xf32> -> vector<4x32xf32>
    %c0_i32_68 = arith.constant 0 : i32
    %74 = arith.addi %arg2, %c0_i32_68 : i32
    %c0_69 = arith.constant 0 : index
    %c0_70 = arith.constant 0 : index
    %75 = arith.index_cast %74 : i32 to index
    %c2 = arith.constant 2 : index
    %c0_71 = arith.constant 0 : index
    %76 = vector.load %arg5[%c0_69, %c0_70, %75, %c2, %c0_71] : memref<1x1x4x4x32xbf16, #tpu.memory_space<vmem>>, vector<1x1x2x2x32xbf16>
    %77 = vector.shape_cast %76 : vector<1x1x2x2x32xbf16> to vector<2x2x32xbf16>
    %78 = vector.shape_cast %77 : vector<2x2x32xbf16> to vector<4x32xbf16>
    %c8_i32_72 = arith.constant 8 : i32
    %79 = arith.muli %arg4, %c8_i32_72 : i32
    %c4_i32_73 = arith.constant 4 : i32
    %80 = arith.addi %79, %c4_i32_73 : i32
    %c0_i32_74 = arith.constant 0 : i32
    %81 = arith.addi %80, %c0_i32_74 : i32
    %c1_i32_75 = arith.constant 1 : i32
    %82 = arith.addi %81, %c1_i32_75 : i32
    %c0_76 = arith.constant 0 : index
    %c0_77 = arith.constant 0 : index
    %83 = arith.index_cast %82 : i32 to index
    %c0_78 = arith.constant 0 : index
    %c0_79 = arith.constant 0 : index
    %84 = vector.load %arg6[%c0_76, %c0_77, %83, %c0_78, %c0_79] : memref<1x1x16x32x32xbf16, #tpu.memory_space<vmem>>, vector<1x1x1x32x32xbf16>
    %85 = vector.shape_cast %84 : vector<1x1x1x32x32xbf16> to vector<32x32xbf16>
    %cst_80 = arith.constant dense<0.000000e+00> : vector<4x32xf32>
    %86 = tpu.matmul %78, %85, %cst_80 {dimension_numbers = #tpu.dot_dimension_numbers<[1], [0], [0], [1], [0, 0, 1, 1], [], []>} : vector<4x32xbf16>, vector<32x32xbf16>, vector<4x32xf32> -> vector<4x32xf32>
    %87 = arith.addf %73, %86 : vector<4x32xf32>
    %c1_i32_81 = arith.constant 1 : i32
    %88 = arith.addi %arg2, %c1_i32_81 : i32
    %c0_82 = arith.constant 0 : index
    %c0_83 = arith.constant 0 : index
    %89 = arith.index_cast %88 : i32 to index
    %c1_84 = arith.constant 1 : index
    %c0_85 = arith.constant 0 : index
    %90 = vector.load %arg5[%c0_82, %c0_83, %89, %c1_84, %c0_85] : memref<1x1x4x4x32xbf16, #tpu.memory_space<vmem>>, vector<1x1x2x2x32xbf16>
    %91 = vector.shape_cast %90 : vector<1x1x2x2x32xbf16> to vector<2x2x32xbf16>
    %92 = vector.shape_cast %91 : vector<2x2x32xbf16> to vector<4x32xbf16>
    %c8_i32_86 = arith.constant 8 : i32
    %93 = arith.muli %arg4, %c8_i32_86 : i32
    %c4_i32_87 = arith.constant 4 : i32
    %94 = arith.addi %93, %c4_i32_87 : i32
    %c2_i32_88 = arith.constant 2 : i32
    %95 = arith.addi %94, %c2_i32_88 : i32
    %c0_i32_89 = arith.constant 0 : i32
    %96 = arith.addi %95, %c0_i32_89 : i32
    %c0_90 = arith.constant 0 : index
    %c0_91 = arith.constant 0 : index
    %97 = arith.index_cast %96 : i32 to index
    %c0_92 = arith.constant 0 : index
    %c0_93 = arith.constant 0 : index
    %98 = vector.load %arg6[%c0_90, %c0_91, %97, %c0_92, %c0_93] : memref<1x1x16x32x32xbf16, #tpu.memory_space<vmem>>, vector<1x1x1x32x32xbf16>
    %99 = vector.shape_cast %98 : vector<1x1x1x32x32xbf16> to vector<32x32xbf16>
    %cst_94 = arith.constant dense<0.000000e+00> : vector<4x32xf32>
    %100 = tpu.matmul %92, %99, %cst_94 {dimension_numbers = #tpu.dot_dimension_numbers<[1], [0], [0], [1], [0, 0, 1, 1], [], []>} : vector<4x32xbf16>, vector<32x32xbf16>, vector<4x32xf32> -> vector<4x32xf32>
    %101 = arith.addf %87, %100 : vector<4x32xf32>
    %c1_i32_95 = arith.constant 1 : i32
    %102 = arith.addi %arg2, %c1_i32_95 : i32
    %c0_96 = arith.constant 0 : index
    %c0_97 = arith.constant 0 : index
    %103 = arith.index_cast %102 : i32 to index
    %c2_98 = arith.constant 2 : index
    %c0_99 = arith.constant 0 : index
    %104 = vector.load %arg5[%c0_96, %c0_97, %103, %c2_98, %c0_99] : memref<1x1x4x4x32xbf16, #tpu.memory_space<vmem>>, vector<1x1x2x2x32xbf16>
    %105 = vector.shape_cast %104 : vector<1x1x2x2x32xbf16> to vector<2x2x32xbf16>
    %106 = vector.shape_cast %105 : vector<2x2x32xbf16> to vector<4x32xbf16>
    %c8_i32_100 = arith.constant 8 : i32
    %107 = arith.muli %arg4, %c8_i32_100 : i32
    %c4_i32_101 = arith.constant 4 : i32
    %108 = arith.addi %107, %c4_i32_101 : i32
    %c2_i32_102 = arith.constant 2 : i32
    %109 = arith.addi %108, %c2_i32_102 : i32
    %c1_i32_103 = arith.constant 1 : i32
    %110 = arith.addi %109, %c1_i32_103 : i32
    %c0_104 = arith.constant 0 : index
    %c0_105 = arith.constant 0 : index
    %111 = arith.index_cast %110 : i32 to index
    %c0_106 = arith.constant 0 : index
    %c0_107 = arith.constant 0 : index
    %112 = vector.load %arg6[%c0_104, %c0_105, %111, %c0_106, %c0_107] : memref<1x1x16x32x32xbf16, #tpu.memory_space<vmem>>, vector<1x1x1x32x32xbf16>
    %113 = vector.shape_cast %112 : vector<1x1x1x32x32xbf16> to vector<32x32xbf16>
    %cst_108 = arith.constant dense<0.000000e+00> : vector<4x32xf32>
    %114 = tpu.matmul %106, %113, %cst_108 {dimension_numbers = #tpu.dot_dimension_numbers<[1], [0], [0], [1], [0, 0, 1, 1], [], []>} : vector<4x32xbf16>, vector<32x32xbf16>, vector<4x32xf32> -> vector<4x32xf32>
    %115 = arith.addf %101, %114 : vector<4x32xf32>
    %c0_109 = arith.constant 0 : index
    %c32 = arith.constant 32 : index
    %116 = vector.load %arg9[%c0_109, %c32] : memref<4x64xf32, #tpu.memory_space<vmem>>, vector<4x32xf32>
    %117 = arith.addf %116, %115 : vector<4x32xf32>
    %c0_110 = arith.constant 0 : index
    %c32_111 = arith.constant 32 : index
    %118 = vector.load %arg9[%c0_110, %c32_111] : memref<4x64xf32, #tpu.memory_space<vmem>>, vector<4x32xf32>
    tpu.vector_store %arg9[%c0_110, %c32_111], %117 {strides = array<i32>} : memref<4x64xf32, #tpu.memory_space<vmem>>, vector<4x32xf32>,
    %c1_i32_112 = arith.constant 1 : i32
    %119 = arith.cmpi eq, %arg4, %c1_i32_112 : i32
    %120 = arith.extui %119 : i1 to i32
    %c0_i32_113 = arith.constant 0 : i32
    %121 = arith.cmpi ne, %120, %c0_i32_113 : i32
    scf.if %121 {
      %c0_114 = arith.constant 0 : index
      %c0_115 = arith.constant 0 : index
      %122 = vector.load %arg9[%c0_114, %c0_115] : memref<4x64xf32, #tpu.memory_space<vmem>>, vector<4x64xf32>
      %c0_116 = arith.constant 0 : index
      %c0_117 = arith.constant 0 : index
      %123 = vector.load %arg7[%c0_116, %c0_117] : memref<1x64xf32, #tpu.memory_space<vmem>>, vector<1x64xf32>
      %124 = vector.broadcast %123 : vector<1x64xf32> to vector<4x64xf32>
      %125 = arith.addf %122, %124 : vector<4x64xf32>
      %cst_118 = arith.constant 0.000000e+00 : f32
      %126 = vector.broadcast %cst_118 : f32 to vector<4x64xf32>
      %127 = arith.cmpf oge, %125, %126 : vector<4x64xf32>
      %cst_119 = arith.constant 2.000000e-01 : f32
      %128 = vector.broadcast %cst_119 : f32 to vector<4x64xf32>
      %129 = arith.mulf %128, %125 : vector<4x64xf32>
      %130 = arith.select %127, %125, %129 : vector<4x64xi1>, vector<4x64xf32>
      %131 = vector.shape_cast %130 : vector<4x64xf32> to vector<2x2x64xf32>
      %132 = arith.truncf %131 : vector<2x2x64xf32> to vector<2x2x64xbf16>
      %c0_120 = arith.constant 0 : index
      %c0_121 = arith.constant 0 : index
      %c0_122 = arith.constant 0 : index
      %c0_123 = arith.constant 0 : index
      %c0_124 = arith.constant 0 : index
      %133 = vector.load %arg8[%c0_120, %c0_121, %c0_122, %c0_123, %c0_124] : memref<1x2x1x2x64xbf16, #tpu.memory_space<vmem>>, vector<1x2x1x2x64xbf16>
      %134 = vector.shape_cast %133 : vector<1x2x1x2x64xbf16> to vector<2x2x64xbf16>
      %135 = vector.shape_cast %132 : vector<2x2x64xbf16> to vector<1x2x1x2x64xbf16>
      tpu.vector_store %arg8[%c0_120, %c0_121, %c0_122, %c0_123, %c0_124], %135 {strides = array<i32>} : memref<1x2x1x2x64xbf16, #tpu.memory_space<vmem>>, vector<1x2x1x2x64xbf16>,
    } else {
    }
    return
  }
  func.func @transform_0(%arg0: i32, %arg1: i32, %arg2: i32, %arg3: i32, %arg4: i32) -> (i32, i32, i32, i32, i32) {
    %0 = arith.addi %arg3, %arg1 : i32
    %1 = arith.addi %0, %arg4 : i32
    %c0_i32 = arith.constant 0 : i32
    %c0_i32_0 = arith.constant 0 : i32
    %c0_i32_1 = arith.constant 0 : i32
    %c0_i32_2 = arith.constant 0 : i32
    return %arg0, %1, %c0_i32, %c0_i32_0, %c0_i32_1 : i32, i32, i32, i32, i32
  }
  func.func @transform_1(%arg0: i32, %arg1: i32, %arg2: i32, %arg3: i32, %arg4: i32) -> (i32, i32, i32, i32, i32) {
    %c0_i32 = arith.constant 0 : i32
    %c0_i32_0 = arith.constant 0 : i32
    %c0_i32_1 = arith.constant 0 : i32
    %c0_i32_2 = arith.constant 0 : i32
    return %arg1, %arg2, %c0_i32, %c0_i32_0, %c0_i32_1 : i32, i32, i32, i32, i32
  }
  func.func @transform_2(%arg0: i32, %arg1: i32, %arg2: i32, %arg3: i32, %arg4: i32) -> (i32, i32) {
    %c0_i32 = arith.constant 0 : i32
    %c0_i32_0 = arith.constant 0 : i32
    %c0_i32_1 = arith.constant 0 : i32
    return %c0_i32, %c0_i32_0 : i32, i32
  }
  func.func @transform_3(%arg0: i32, %arg1: i32, %arg2: i32, %arg3: i32, %arg4: i32) -> (i32, i32, i32, i32, i32) {
    %c2_i32 = arith.constant 2 : i32
    %0 = arith.muli %arg0, %c2_i32 : i32
    %1 = arith.addi %0, %arg3 : i32
    %c2_i32_0 = arith.constant 2 : i32
    %2 = arith.muli %1, %c2_i32_0 : i32
    %3 = arith.addi %2, %arg1 : i32
    %c0_i32 = arith.constant 0 : i32
    %c0_i32_1 = arith.constant 0 : i32
    %c0_i32_2 = arith.constant 0 : i32
    %c0_i32_3 = arith.constant 0 : i32
    return %3, %c0_i32, %arg2, %c0_i32_1, %c0_i32_2 : i32, i32, i32, i32, i32
  }
}

module attributes {stable_mosaic.version = 11 : i64} {
  func.func @_convt_kernel(%arg0: i32, %arg1: i32, %arg2: i32, %arg3: i32, %arg4: i32, %arg5: memref<1x1x6x6x32xbf16, #tpu.memory_space<vmem>>, %arg6: memref<1x1x16x32x16xbf16, #tpu.memory_space<vmem>>, %arg7: memref<1x32xf32, #tpu.memory_space<vmem>>, %arg8: memref<1x4x1x4x32xbf16, #tpu.memory_space<vmem>>, %arg9: memref<16x32xf32, #tpu.memory_space<vmem>>) attributes {dimension_semantics = [#tpu.dimension_semantics<parallel>, #tpu.dimension_semantics<parallel>, #tpu.dimension_semantics<parallel>, #tpu.dimension_semantics<parallel>, #tpu.dimension_semantics<arbitrary>], iteration_bounds = array<i64: 2, 2, 2, 4, 2>, scalar_prefetch = 0 : i64, scratch_operands = 1 : i64, tpu.core_type = #tpu.core_type<tc>, window_params = [{transform_indices = @transform_0, window_bounds = array<i64: 1, 1, 6, 6, 32>}, {transform_indices = @transform_1, window_bounds = array<i64: 1, 1, 16, 32, 16>}, {pipeline_mode = #tpu.pipeline_mode<synchronous>, transform_indices = @transform_2, window_bounds = array<i64: 1, 32>}, {transform_indices = @transform_3, window_bounds = array<i64: 1, 4, 1, 4, 32>}]} {
    %c0_i32 = arith.constant 0 : i32
    %0 = arith.cmpi eq, %arg4, %c0_i32 : i32
    %1 = arith.extui %0 : i1 to i32
    %c0_i32_0 = arith.constant 0 : i32
    %2 = arith.cmpi ne, %1, %c0_i32_0 : i32
    scf.if %2 {
      %cst_114 = arith.constant 0.000000e+00 : f32
      %122 = vector.broadcast %cst_114 : f32 to vector<16x32xf32>
      %c0_115 = arith.constant 0 : index
      %c0_116 = arith.constant 0 : index
      %123 = vector.load %arg9[%c0_115, %c0_116] : memref<16x32xf32, #tpu.memory_space<vmem>>, vector<16x32xf32>
      tpu.vector_store %arg9[%c0_115, %c0_116], %122 {strides = array<i32>} : memref<16x32xf32, #tpu.memory_space<vmem>>, vector<16x32xf32>,
    } else {
    }
    %c0_i32_1 = arith.constant 0 : i32
    %3 = arith.addi %arg2, %c0_i32_1 : i32
    %c0 = arith.constant 0 : index
    %c0_2 = arith.constant 0 : index
    %4 = arith.index_cast %3 : i32 to index
    %c0_3 = arith.constant 0 : index
    %c0_4 = arith.constant 0 : index
    %5 = vector.load %arg5[%c0, %c0_2, %4, %c0_3, %c0_4] : memref<1x1x6x6x32xbf16, #tpu.memory_space<vmem>>, vector<1x1x4x4x32xbf16>
    %6 = vector.shape_cast %5 : vector<1x1x4x4x32xbf16> to vector<4x4x32xbf16>
    %7 = vector.shape_cast %6 : vector<4x4x32xbf16> to vector<16x32xbf16>
    %c8_i32 = arith.constant 8 : i32
    %8 = arith.muli %arg4, %c8_i32 : i32
    %c0_i32_5 = arith.constant 0 : i32
    %9 = arith.addi %8, %c0_i32_5 : i32
    %c0_i32_6 = arith.constant 0 : i32
    %10 = arith.addi %9, %c0_i32_6 : i32
    %c0_i32_7 = arith.constant 0 : i32
    %11 = arith.addi %10, %c0_i32_7 : i32
    %c0_8 = arith.constant 0 : index
    %c0_9 = arith.constant 0 : index
    %12 = arith.index_cast %11 : i32 to index
    %c0_10 = arith.constant 0 : index
    %c0_11 = arith.constant 0 : index
    %13 = vector.load %arg6[%c0_8, %c0_9, %12, %c0_10, %c0_11] : memref<1x1x16x32x16xbf16, #tpu.memory_space<vmem>>, vector<1x1x1x32x16xbf16>
    %14 = vector.shape_cast %13 : vector<1x1x1x32x16xbf16> to vector<32x16xbf16>
    %cst = arith.constant dense<0.000000e+00> : vector<16x16xf32>
    %15 = tpu.matmul %7, %14, %cst {dimension_numbers = #tpu.dot_dimension_numbers<[1], [0], [0], [1], [0, 0, 1, 1], [], []>} : vector<16x32xbf16>, vector<32x16xbf16>, vector<16x16xf32> -> vector<16x16xf32>
    %c0_i32_12 = arith.constant 0 : i32
    %16 = arith.addi %arg2, %c0_i32_12 : i32
    %c0_13 = arith.constant 0 : index
    %c0_14 = arith.constant 0 : index
    %17 = arith.index_cast %16 : i32 to index
    %c1 = arith.constant 1 : index
    %c0_15 = arith.constant 0 : index
    %18 = vector.load %arg5[%c0_13, %c0_14, %17, %c1, %c0_15] : memref<1x1x6x6x32xbf16, #tpu.memory_space<vmem>>, vector<1x1x4x4x32xbf16>
    %19 = vector.shape_cast %18 : vector<1x1x4x4x32xbf16> to vector<4x4x32xbf16>
    %20 = vector.shape_cast %19 : vector<4x4x32xbf16> to vector<16x32xbf16>
    %c8_i32_16 = arith.constant 8 : i32
    %21 = arith.muli %arg4, %c8_i32_16 : i32
    %c0_i32_17 = arith.constant 0 : i32
    %22 = arith.addi %21, %c0_i32_17 : i32
    %c0_i32_18 = arith.constant 0 : i32
    %23 = arith.addi %22, %c0_i32_18 : i32
    %c1_i32 = arith.constant 1 : i32
    %24 = arith.addi %23, %c1_i32 : i32
    %c0_19 = arith.constant 0 : index
    %c0_20 = arith.constant 0 : index
    %25 = arith.index_cast %24 : i32 to index
    %c0_21 = arith.constant 0 : index
    %c0_22 = arith.constant 0 : index
    %26 = vector.load %arg6[%c0_19, %c0_20, %25, %c0_21, %c0_22] : memref<1x1x16x32x16xbf16, #tpu.memory_space<vmem>>, vector<1x1x1x32x16xbf16>
    %27 = vector.shape_cast %26 : vector<1x1x1x32x16xbf16> to vector<32x16xbf16>
    %cst_23 = arith.constant dense<0.000000e+00> : vector<16x16xf32>
    %28 = tpu.matmul %20, %27, %cst_23 {dimension_numbers = #tpu.dot_dimension_numbers<[1], [0], [0], [1], [0, 0, 1, 1], [], []>} : vector<16x32xbf16>, vector<32x16xbf16>, vector<16x16xf32> -> vector<16x16xf32>
    %29 = arith.addf %15, %28 : vector<16x16xf32>
    %c1_i32_24 = arith.constant 1 : i32
    %30 = arith.addi %arg2, %c1_i32_24 : i32
    %c0_25 = arith.constant 0 : index
    %c0_26 = arith.constant 0 : index
    %31 = arith.index_cast %30 : i32 to index
    %c0_27 = arith.constant 0 : index
    %c0_28 = arith.constant 0 : index
    %32 = vector.load %arg5[%c0_25, %c0_26, %31, %c0_27, %c0_28] : memref<1x1x6x6x32xbf16, #tpu.memory_space<vmem>>, vector<1x1x4x4x32xbf16>
    %33 = vector.shape_cast %32 : vector<1x1x4x4x32xbf16> to vector<4x4x32xbf16>
    %34 = vector.shape_cast %33 : vector<4x4x32xbf16> to vector<16x32xbf16>
    %c8_i32_29 = arith.constant 8 : i32
    %35 = arith.muli %arg4, %c8_i32_29 : i32
    %c0_i32_30 = arith.constant 0 : i32
    %36 = arith.addi %35, %c0_i32_30 : i32
    %c2_i32 = arith.constant 2 : i32
    %37 = arith.addi %36, %c2_i32 : i32
    %c0_i32_31 = arith.constant 0 : i32
    %38 = arith.addi %37, %c0_i32_31 : i32
    %c0_32 = arith.constant 0 : index
    %c0_33 = arith.constant 0 : index
    %39 = arith.index_cast %38 : i32 to index
    %c0_34 = arith.constant 0 : index
    %c0_35 = arith.constant 0 : index
    %40 = vector.load %arg6[%c0_32, %c0_33, %39, %c0_34, %c0_35] : memref<1x1x16x32x16xbf16, #tpu.memory_space<vmem>>, vector<1x1x1x32x16xbf16>
    %41 = vector.shape_cast %40 : vector<1x1x1x32x16xbf16> to vector<32x16xbf16>
    %cst_36 = arith.constant dense<0.000000e+00> : vector<16x16xf32>
    %42 = tpu.matmul %34, %41, %cst_36 {dimension_numbers = #tpu.dot_dimension_numbers<[1], [0], [0], [1], [0, 0, 1, 1], [], []>} : vector<16x32xbf16>, vector<32x16xbf16>, vector<16x16xf32> -> vector<16x16xf32>
    %43 = arith.addf %29, %42 : vector<16x16xf32>
    %c1_i32_37 = arith.constant 1 : i32
    %44 = arith.addi %arg2, %c1_i32_37 : i32
    %c0_38 = arith.constant 0 : index
    %c0_39 = arith.constant 0 : index
    %45 = arith.index_cast %44 : i32 to index
    %c1_40 = arith.constant 1 : index
    %c0_41 = arith.constant 0 : index
    %46 = vector.load %arg5[%c0_38, %c0_39, %45, %c1_40, %c0_41] : memref<1x1x6x6x32xbf16, #tpu.memory_space<vmem>>, vector<1x1x4x4x32xbf16>
    %47 = vector.shape_cast %46 : vector<1x1x4x4x32xbf16> to vector<4x4x32xbf16>
    %48 = vector.shape_cast %47 : vector<4x4x32xbf16> to vector<16x32xbf16>
    %c8_i32_42 = arith.constant 8 : i32
    %49 = arith.muli %arg4, %c8_i32_42 : i32
    %c0_i32_43 = arith.constant 0 : i32
    %50 = arith.addi %49, %c0_i32_43 : i32
    %c2_i32_44 = arith.constant 2 : i32
    %51 = arith.addi %50, %c2_i32_44 : i32
    %c1_i32_45 = arith.constant 1 : i32
    %52 = arith.addi %51, %c1_i32_45 : i32
    %c0_46 = arith.constant 0 : index
    %c0_47 = arith.constant 0 : index
    %53 = arith.index_cast %52 : i32 to index
    %c0_48 = arith.constant 0 : index
    %c0_49 = arith.constant 0 : index
    %54 = vector.load %arg6[%c0_46, %c0_47, %53, %c0_48, %c0_49] : memref<1x1x16x32x16xbf16, #tpu.memory_space<vmem>>, vector<1x1x1x32x16xbf16>
    %55 = vector.shape_cast %54 : vector<1x1x1x32x16xbf16> to vector<32x16xbf16>
    %cst_50 = arith.constant dense<0.000000e+00> : vector<16x16xf32>
    %56 = tpu.matmul %48, %55, %cst_50 {dimension_numbers = #tpu.dot_dimension_numbers<[1], [0], [0], [1], [0, 0, 1, 1], [], []>} : vector<16x32xbf16>, vector<32x16xbf16>, vector<16x16xf32> -> vector<16x16xf32>
    %57 = arith.addf %43, %56 : vector<16x16xf32>
    %c0_51 = arith.constant 0 : index
    %c0_52 = arith.constant 0 : index
    %58 = vector.load %arg9[%c0_51, %c0_52] : memref<16x32xf32, #tpu.memory_space<vmem>>, vector<16x16xf32>
    %59 = arith.addf %58, %57 : vector<16x16xf32>
    %c0_53 = arith.constant 0 : index
    %c0_54 = arith.constant 0 : index
    %60 = vector.load %arg9[%c0_53, %c0_54] : memref<16x32xf32, #tpu.memory_space<vmem>>, vector<16x16xf32>
    tpu.vector_store %arg9[%c0_53, %c0_54], %59 {strides = array<i32>} : memref<16x32xf32, #tpu.memory_space<vmem>>, vector<16x16xf32>,
    %c0_i32_55 = arith.constant 0 : i32
    %61 = arith.addi %arg2, %c0_i32_55 : i32
    %c0_56 = arith.constant 0 : index
    %c0_57 = arith.constant 0 : index
    %62 = arith.index_cast %61 : i32 to index
    %c1_58 = arith.constant 1 : index
    %c0_59 = arith.constant 0 : index
    %63 = vector.load %arg5[%c0_56, %c0_57, %62, %c1_58, %c0_59] : memref<1x1x6x6x32xbf16, #tpu.memory_space<vmem>>, vector<1x1x4x4x32xbf16>
    %64 = vector.shape_cast %63 : vector<1x1x4x4x32xbf16> to vector<4x4x32xbf16>
    %65 = vector.shape_cast %64 : vector<4x4x32xbf16> to vector<16x32xbf16>
    %c8_i32_60 = arith.constant 8 : i32
    %66 = arith.muli %arg4, %c8_i32_60 : i32
    %c4_i32 = arith.constant 4 : i32
    %67 = arith.addi %66, %c4_i32 : i32
    %c0_i32_61 = arith.constant 0 : i32
    %68 = arith.addi %67, %c0_i32_61 : i32
    %c0_i32_62 = arith.constant 0 : i32
    %69 = arith.addi %68, %c0_i32_62 : i32
    %c0_63 = arith.constant 0 : index
    %c0_64 = arith.constant 0 : index
    %70 = arith.index_cast %69 : i32 to index
    %c0_65 = arith.constant 0 : index
    %c0_66 = arith.constant 0 : index
    %71 = vector.load %arg6[%c0_63, %c0_64, %70, %c0_65, %c0_66] : memref<1x1x16x32x16xbf16, #tpu.memory_space<vmem>>, vector<1x1x1x32x16xbf16>
    %72 = vector.shape_cast %71 : vector<1x1x1x32x16xbf16> to vector<32x16xbf16>
    %cst_67 = arith.constant dense<0.000000e+00> : vector<16x16xf32>
    %73 = tpu.matmul %65, %72, %cst_67 {dimension_numbers = #tpu.dot_dimension_numbers<[1], [0], [0], [1], [0, 0, 1, 1], [], []>} : vector<16x32xbf16>, vector<32x16xbf16>, vector<16x16xf32> -> vector<16x16xf32>
    %c0_i32_68 = arith.constant 0 : i32
    %74 = arith.addi %arg2, %c0_i32_68 : i32
    %c0_69 = arith.constant 0 : index
    %c0_70 = arith.constant 0 : index
    %75 = arith.index_cast %74 : i32 to index
    %c2 = arith.constant 2 : index
    %c0_71 = arith.constant 0 : index
    %76 = vector.load %arg5[%c0_69, %c0_70, %75, %c2, %c0_71] : memref<1x1x6x6x32xbf16, #tpu.memory_space<vmem>>, vector<1x1x4x4x32xbf16>
    %77 = vector.shape_cast %76 : vector<1x1x4x4x32xbf16> to vector<4x4x32xbf16>
    %78 = vector.shape_cast %77 : vector<4x4x32xbf16> to vector<16x32xbf16>
    %c8_i32_72 = arith.constant 8 : i32
    %79 = arith.muli %arg4, %c8_i32_72 : i32
    %c4_i32_73 = arith.constant 4 : i32
    %80 = arith.addi %79, %c4_i32_73 : i32
    %c0_i32_74 = arith.constant 0 : i32
    %81 = arith.addi %80, %c0_i32_74 : i32
    %c1_i32_75 = arith.constant 1 : i32
    %82 = arith.addi %81, %c1_i32_75 : i32
    %c0_76 = arith.constant 0 : index
    %c0_77 = arith.constant 0 : index
    %83 = arith.index_cast %82 : i32 to index
    %c0_78 = arith.constant 0 : index
    %c0_79 = arith.constant 0 : index
    %84 = vector.load %arg6[%c0_76, %c0_77, %83, %c0_78, %c0_79] : memref<1x1x16x32x16xbf16, #tpu.memory_space<vmem>>, vector<1x1x1x32x16xbf16>
    %85 = vector.shape_cast %84 : vector<1x1x1x32x16xbf16> to vector<32x16xbf16>
    %cst_80 = arith.constant dense<0.000000e+00> : vector<16x16xf32>
    %86 = tpu.matmul %78, %85, %cst_80 {dimension_numbers = #tpu.dot_dimension_numbers<[1], [0], [0], [1], [0, 0, 1, 1], [], []>} : vector<16x32xbf16>, vector<32x16xbf16>, vector<16x16xf32> -> vector<16x16xf32>
    %87 = arith.addf %73, %86 : vector<16x16xf32>
    %c1_i32_81 = arith.constant 1 : i32
    %88 = arith.addi %arg2, %c1_i32_81 : i32
    %c0_82 = arith.constant 0 : index
    %c0_83 = arith.constant 0 : index
    %89 = arith.index_cast %88 : i32 to index
    %c1_84 = arith.constant 1 : index
    %c0_85 = arith.constant 0 : index
    %90 = vector.load %arg5[%c0_82, %c0_83, %89, %c1_84, %c0_85] : memref<1x1x6x6x32xbf16, #tpu.memory_space<vmem>>, vector<1x1x4x4x32xbf16>
    %91 = vector.shape_cast %90 : vector<1x1x4x4x32xbf16> to vector<4x4x32xbf16>
    %92 = vector.shape_cast %91 : vector<4x4x32xbf16> to vector<16x32xbf16>
    %c8_i32_86 = arith.constant 8 : i32
    %93 = arith.muli %arg4, %c8_i32_86 : i32
    %c4_i32_87 = arith.constant 4 : i32
    %94 = arith.addi %93, %c4_i32_87 : i32
    %c2_i32_88 = arith.constant 2 : i32
    %95 = arith.addi %94, %c2_i32_88 : i32
    %c0_i32_89 = arith.constant 0 : i32
    %96 = arith.addi %95, %c0_i32_89 : i32
    %c0_90 = arith.constant 0 : index
    %c0_91 = arith.constant 0 : index
    %97 = arith.index_cast %96 : i32 to index
    %c0_92 = arith.constant 0 : index
    %c0_93 = arith.constant 0 : index
    %98 = vector.load %arg6[%c0_90, %c0_91, %97, %c0_92, %c0_93] : memref<1x1x16x32x16xbf16, #tpu.memory_space<vmem>>, vector<1x1x1x32x16xbf16>
    %99 = vector.shape_cast %98 : vector<1x1x1x32x16xbf16> to vector<32x16xbf16>
    %cst_94 = arith.constant dense<0.000000e+00> : vector<16x16xf32>
    %100 = tpu.matmul %92, %99, %cst_94 {dimension_numbers = #tpu.dot_dimension_numbers<[1], [0], [0], [1], [0, 0, 1, 1], [], []>} : vector<16x32xbf16>, vector<32x16xbf16>, vector<16x16xf32> -> vector<16x16xf32>
    %101 = arith.addf %87, %100 : vector<16x16xf32>
    %c1_i32_95 = arith.constant 1 : i32
    %102 = arith.addi %arg2, %c1_i32_95 : i32
    %c0_96 = arith.constant 0 : index
    %c0_97 = arith.constant 0 : index
    %103 = arith.index_cast %102 : i32 to index
    %c2_98 = arith.constant 2 : index
    %c0_99 = arith.constant 0 : index
    %104 = vector.load %arg5[%c0_96, %c0_97, %103, %c2_98, %c0_99] : memref<1x1x6x6x32xbf16, #tpu.memory_space<vmem>>, vector<1x1x4x4x32xbf16>
    %105 = vector.shape_cast %104 : vector<1x1x4x4x32xbf16> to vector<4x4x32xbf16>
    %106 = vector.shape_cast %105 : vector<4x4x32xbf16> to vector<16x32xbf16>
    %c8_i32_100 = arith.constant 8 : i32
    %107 = arith.muli %arg4, %c8_i32_100 : i32
    %c4_i32_101 = arith.constant 4 : i32
    %108 = arith.addi %107, %c4_i32_101 : i32
    %c2_i32_102 = arith.constant 2 : i32
    %109 = arith.addi %108, %c2_i32_102 : i32
    %c1_i32_103 = arith.constant 1 : i32
    %110 = arith.addi %109, %c1_i32_103 : i32
    %c0_104 = arith.constant 0 : index
    %c0_105 = arith.constant 0 : index
    %111 = arith.index_cast %110 : i32 to index
    %c0_106 = arith.constant 0 : index
    %c0_107 = arith.constant 0 : index
    %112 = vector.load %arg6[%c0_104, %c0_105, %111, %c0_106, %c0_107] : memref<1x1x16x32x16xbf16, #tpu.memory_space<vmem>>, vector<1x1x1x32x16xbf16>
    %113 = vector.shape_cast %112 : vector<1x1x1x32x16xbf16> to vector<32x16xbf16>
    %cst_108 = arith.constant dense<0.000000e+00> : vector<16x16xf32>
    %114 = tpu.matmul %106, %113, %cst_108 {dimension_numbers = #tpu.dot_dimension_numbers<[1], [0], [0], [1], [0, 0, 1, 1], [], []>} : vector<16x32xbf16>, vector<32x16xbf16>, vector<16x16xf32> -> vector<16x16xf32>
    %115 = arith.addf %101, %114 : vector<16x16xf32>
    %c0_109 = arith.constant 0 : index
    %c16 = arith.constant 16 : index
    %116 = vector.load %arg9[%c0_109, %c16] : memref<16x32xf32, #tpu.memory_space<vmem>>, vector<16x16xf32>
    %117 = arith.addf %116, %115 : vector<16x16xf32>
    %c0_110 = arith.constant 0 : index
    %c16_111 = arith.constant 16 : index
    %118 = vector.load %arg9[%c0_110, %c16_111] : memref<16x32xf32, #tpu.memory_space<vmem>>, vector<16x16xf32>
    tpu.vector_store %arg9[%c0_110, %c16_111], %117 {strides = array<i32>} : memref<16x32xf32, #tpu.memory_space<vmem>>, vector<16x16xf32>,
    %c1_i32_112 = arith.constant 1 : i32
    %119 = arith.cmpi eq, %arg4, %c1_i32_112 : i32
    %120 = arith.extui %119 : i1 to i32
    %c0_i32_113 = arith.constant 0 : i32
    %121 = arith.cmpi ne, %120, %c0_i32_113 : i32
    scf.if %121 {
      %c0_114 = arith.constant 0 : index
      %c0_115 = arith.constant 0 : index
      %122 = vector.load %arg9[%c0_114, %c0_115] : memref<16x32xf32, #tpu.memory_space<vmem>>, vector<16x32xf32>
      %c0_116 = arith.constant 0 : index
      %c0_117 = arith.constant 0 : index
      %123 = vector.load %arg7[%c0_116, %c0_117] : memref<1x32xf32, #tpu.memory_space<vmem>>, vector<1x32xf32>
      %124 = vector.broadcast %123 : vector<1x32xf32> to vector<16x32xf32>
      %125 = arith.addf %122, %124 : vector<16x32xf32>
      %cst_118 = arith.constant 0.000000e+00 : f32
      %126 = vector.broadcast %cst_118 : f32 to vector<16x32xf32>
      %127 = arith.cmpf oge, %125, %126 : vector<16x32xf32>
      %cst_119 = arith.constant 2.000000e-01 : f32
      %128 = vector.broadcast %cst_119 : f32 to vector<16x32xf32>
      %129 = arith.mulf %128, %125 : vector<16x32xf32>
      %130 = arith.select %127, %125, %129 : vector<16x32xi1>, vector<16x32xf32>
      %131 = vector.shape_cast %130 : vector<16x32xf32> to vector<4x4x32xf32>
      %132 = arith.truncf %131 : vector<4x4x32xf32> to vector<4x4x32xbf16>
      %c0_120 = arith.constant 0 : index
      %c0_121 = arith.constant 0 : index
      %c0_122 = arith.constant 0 : index
      %c0_123 = arith.constant 0 : index
      %c0_124 = arith.constant 0 : index
      %133 = vector.load %arg8[%c0_120, %c0_121, %c0_122, %c0_123, %c0_124] : memref<1x4x1x4x32xbf16, #tpu.memory_space<vmem>>, vector<1x4x1x4x32xbf16>
      %134 = vector.shape_cast %133 : vector<1x4x1x4x32xbf16> to vector<4x4x32xbf16>
      %135 = vector.shape_cast %132 : vector<4x4x32xbf16> to vector<1x4x1x4x32xbf16>
      tpu.vector_store %arg8[%c0_120, %c0_121, %c0_122, %c0_123, %c0_124], %135 {strides = array<i32>} : memref<1x4x1x4x32xbf16, #tpu.memory_space<vmem>>, vector<1x4x1x4x32xbf16>,
    } else {
    }
    return
  }
  func.func @transform_0(%arg0: i32, %arg1: i32, %arg2: i32, %arg3: i32, %arg4: i32) -> (i32, i32, i32, i32, i32) {
    %0 = arith.addi %arg3, %arg1 : i32
    %1 = arith.addi %0, %arg4 : i32
    %c0_i32 = arith.constant 0 : i32
    %c0_i32_0 = arith.constant 0 : i32
    %c0_i32_1 = arith.constant 0 : i32
    %c0_i32_2 = arith.constant 0 : i32
    return %arg0, %1, %c0_i32, %c0_i32_0, %c0_i32_1 : i32, i32, i32, i32, i32
  }
  func.func @transform_1(%arg0: i32, %arg1: i32, %arg2: i32, %arg3: i32, %arg4: i32) -> (i32, i32, i32, i32, i32) {
    %c0_i32 = arith.constant 0 : i32
    %c0_i32_0 = arith.constant 0 : i32
    %c0_i32_1 = arith.constant 0 : i32
    %c0_i32_2 = arith.constant 0 : i32
    return %arg1, %arg2, %c0_i32, %c0_i32_0, %c0_i32_1 : i32, i32, i32, i32, i32
  }
  func.func @transform_2(%arg0: i32, %arg1: i32, %arg2: i32, %arg3: i32, %arg4: i32) -> (i32, i32) {
    %c0_i32 = arith.constant 0 : i32
    %c0_i32_0 = arith.constant 0 : i32
    %c0_i32_1 = arith.constant 0 : i32
    return %c0_i32, %c0_i32_0 : i32, i32
  }
  func.func @transform_3(%arg0: i32, %arg1: i32, %arg2: i32, %arg3: i32, %arg4: i32) -> (i32, i32, i32, i32, i32) {
    %c4_i32 = arith.constant 4 : i32
    %0 = arith.muli %arg0, %c4_i32 : i32
    %1 = arith.addi %0, %arg3 : i32
    %c2_i32 = arith.constant 2 : i32
    %2 = arith.muli %1, %c2_i32 : i32
    %3 = arith.addi %2, %arg1 : i32
    %c0_i32 = arith.constant 0 : i32
    %c0_i32_0 = arith.constant 0 : i32
    %c0_i32_1 = arith.constant 0 : i32
    %c0_i32_2 = arith.constant 0 : i32
    return %3, %c0_i32, %arg2, %c0_i32_0, %c0_i32_1 : i32, i32, i32, i32, i32
  }
}

module attributes {stable_mosaic.version = 11 : i64} {
  func.func @_convt_kernel(%arg0: i32, %arg1: i32, %arg2: i32, %arg3: i32, %arg4: i32, %arg5: memref<1x1x10x10x16xbf16, #tpu.memory_space<vmem>>, %arg6: memref<1x1x16x16x4xbf16, #tpu.memory_space<vmem>>, %arg7: memref<1x8xf32, #tpu.memory_space<vmem>>, %arg8: memref<1x8x1x8x8xbf16, #tpu.memory_space<vmem>>, %arg9: memref<64x8xf32, #tpu.memory_space<vmem>>) attributes {dimension_semantics = [#tpu.dimension_semantics<parallel>, #tpu.dimension_semantics<parallel>, #tpu.dimension_semantics<parallel>, #tpu.dimension_semantics<parallel>, #tpu.dimension_semantics<arbitrary>], iteration_bounds = array<i64: 2, 2, 2, 8, 2>, scalar_prefetch = 0 : i64, scratch_operands = 1 : i64, tpu.core_type = #tpu.core_type<tc>, window_params = [{transform_indices = @transform_0, window_bounds = array<i64: 1, 1, 10, 10, 16>}, {transform_indices = @transform_1, window_bounds = array<i64: 1, 1, 16, 16, 4>}, {pipeline_mode = #tpu.pipeline_mode<synchronous>, transform_indices = @transform_2, window_bounds = array<i64: 1, 8>}, {transform_indices = @transform_3, window_bounds = array<i64: 1, 8, 1, 8, 8>}]} {
    %c0_i32 = arith.constant 0 : i32
    %0 = arith.cmpi eq, %arg4, %c0_i32 : i32
    %1 = arith.extui %0 : i1 to i32
    %c0_i32_0 = arith.constant 0 : i32
    %2 = arith.cmpi ne, %1, %c0_i32_0 : i32
    scf.if %2 {
      %cst_114 = arith.constant 0.000000e+00 : f32
      %122 = vector.broadcast %cst_114 : f32 to vector<64x8xf32>
      %c0_115 = arith.constant 0 : index
      %c0_116 = arith.constant 0 : index
      %123 = vector.load %arg9[%c0_115, %c0_116] : memref<64x8xf32, #tpu.memory_space<vmem>>, vector<64x8xf32>
      tpu.vector_store %arg9[%c0_115, %c0_116], %122 {strides = array<i32>} : memref<64x8xf32, #tpu.memory_space<vmem>>, vector<64x8xf32>,
    } else {
    }
    %c0_i32_1 = arith.constant 0 : i32
    %3 = arith.addi %arg2, %c0_i32_1 : i32
    %c0 = arith.constant 0 : index
    %c0_2 = arith.constant 0 : index
    %4 = arith.index_cast %3 : i32 to index
    %c0_3 = arith.constant 0 : index
    %c0_4 = arith.constant 0 : index
    %5 = vector.load %arg5[%c0, %c0_2, %4, %c0_3, %c0_4] : memref<1x1x10x10x16xbf16, #tpu.memory_space<vmem>>, vector<1x1x8x8x16xbf16>
    %6 = vector.shape_cast %5 : vector<1x1x8x8x16xbf16> to vector<8x8x16xbf16>
    %7 = vector.shape_cast %6 : vector<8x8x16xbf16> to vector<64x16xbf16>
    %c8_i32 = arith.constant 8 : i32
    %8 = arith.muli %arg4, %c8_i32 : i32
    %c0_i32_5 = arith.constant 0 : i32
    %9 = arith.addi %8, %c0_i32_5 : i32
    %c0_i32_6 = arith.constant 0 : i32
    %10 = arith.addi %9, %c0_i32_6 : i32
    %c0_i32_7 = arith.constant 0 : i32
    %11 = arith.addi %10, %c0_i32_7 : i32
    %c0_8 = arith.constant 0 : index
    %c0_9 = arith.constant 0 : index
    %12 = arith.index_cast %11 : i32 to index
    %c0_10 = arith.constant 0 : index
    %c0_11 = arith.constant 0 : index
    %13 = vector.load %arg6[%c0_8, %c0_9, %12, %c0_10, %c0_11] : memref<1x1x16x16x4xbf16, #tpu.memory_space<vmem>>, vector<1x1x1x16x4xbf16>
    %14 = vector.shape_cast %13 : vector<1x1x1x16x4xbf16> to vector<16x4xbf16>
    %cst = arith.constant dense<0.000000e+00> : vector<64x4xf32>
    %15 = tpu.matmul %7, %14, %cst {dimension_numbers = #tpu.dot_dimension_numbers<[1], [0], [0], [1], [0, 0, 1, 1], [], []>} : vector<64x16xbf16>, vector<16x4xbf16>, vector<64x4xf32> -> vector<64x4xf32>
    %c0_i32_12 = arith.constant 0 : i32
    %16 = arith.addi %arg2, %c0_i32_12 : i32
    %c0_13 = arith.constant 0 : index
    %c0_14 = arith.constant 0 : index
    %17 = arith.index_cast %16 : i32 to index
    %c1 = arith.constant 1 : index
    %c0_15 = arith.constant 0 : index
    %18 = vector.load %arg5[%c0_13, %c0_14, %17, %c1, %c0_15] : memref<1x1x10x10x16xbf16, #tpu.memory_space<vmem>>, vector<1x1x8x8x16xbf16>
    %19 = vector.shape_cast %18 : vector<1x1x8x8x16xbf16> to vector<8x8x16xbf16>
    %20 = vector.shape_cast %19 : vector<8x8x16xbf16> to vector<64x16xbf16>
    %c8_i32_16 = arith.constant 8 : i32
    %21 = arith.muli %arg4, %c8_i32_16 : i32
    %c0_i32_17 = arith.constant 0 : i32
    %22 = arith.addi %21, %c0_i32_17 : i32
    %c0_i32_18 = arith.constant 0 : i32
    %23 = arith.addi %22, %c0_i32_18 : i32
    %c1_i32 = arith.constant 1 : i32
    %24 = arith.addi %23, %c1_i32 : i32
    %c0_19 = arith.constant 0 : index
    %c0_20 = arith.constant 0 : index
    %25 = arith.index_cast %24 : i32 to index
    %c0_21 = arith.constant 0 : index
    %c0_22 = arith.constant 0 : index
    %26 = vector.load %arg6[%c0_19, %c0_20, %25, %c0_21, %c0_22] : memref<1x1x16x16x4xbf16, #tpu.memory_space<vmem>>, vector<1x1x1x16x4xbf16>
    %27 = vector.shape_cast %26 : vector<1x1x1x16x4xbf16> to vector<16x4xbf16>
    %cst_23 = arith.constant dense<0.000000e+00> : vector<64x4xf32>
    %28 = tpu.matmul %20, %27, %cst_23 {dimension_numbers = #tpu.dot_dimension_numbers<[1], [0], [0], [1], [0, 0, 1, 1], [], []>} : vector<64x16xbf16>, vector<16x4xbf16>, vector<64x4xf32> -> vector<64x4xf32>
    %29 = arith.addf %15, %28 : vector<64x4xf32>
    %c1_i32_24 = arith.constant 1 : i32
    %30 = arith.addi %arg2, %c1_i32_24 : i32
    %c0_25 = arith.constant 0 : index
    %c0_26 = arith.constant 0 : index
    %31 = arith.index_cast %30 : i32 to index
    %c0_27 = arith.constant 0 : index
    %c0_28 = arith.constant 0 : index
    %32 = vector.load %arg5[%c0_25, %c0_26, %31, %c0_27, %c0_28] : memref<1x1x10x10x16xbf16, #tpu.memory_space<vmem>>, vector<1x1x8x8x16xbf16>
    %33 = vector.shape_cast %32 : vector<1x1x8x8x16xbf16> to vector<8x8x16xbf16>
    %34 = vector.shape_cast %33 : vector<8x8x16xbf16> to vector<64x16xbf16>
    %c8_i32_29 = arith.constant 8 : i32
    %35 = arith.muli %arg4, %c8_i32_29 : i32
    %c0_i32_30 = arith.constant 0 : i32
    %36 = arith.addi %35, %c0_i32_30 : i32
    %c2_i32 = arith.constant 2 : i32
    %37 = arith.addi %36, %c2_i32 : i32
    %c0_i32_31 = arith.constant 0 : i32
    %38 = arith.addi %37, %c0_i32_31 : i32
    %c0_32 = arith.constant 0 : index
    %c0_33 = arith.constant 0 : index
    %39 = arith.index_cast %38 : i32 to index
    %c0_34 = arith.constant 0 : index
    %c0_35 = arith.constant 0 : index
    %40 = vector.load %arg6[%c0_32, %c0_33, %39, %c0_34, %c0_35] : memref<1x1x16x16x4xbf16, #tpu.memory_space<vmem>>, vector<1x1x1x16x4xbf16>
    %41 = vector.shape_cast %40 : vector<1x1x1x16x4xbf16> to vector<16x4xbf16>
    %cst_36 = arith.constant dense<0.000000e+00> : vector<64x4xf32>
    %42 = tpu.matmul %34, %41, %cst_36 {dimension_numbers = #tpu.dot_dimension_numbers<[1], [0], [0], [1], [0, 0, 1, 1], [], []>} : vector<64x16xbf16>, vector<16x4xbf16>, vector<64x4xf32> -> vector<64x4xf32>
    %43 = arith.addf %29, %42 : vector<64x4xf32>
    %c1_i32_37 = arith.constant 1 : i32
    %44 = arith.addi %arg2, %c1_i32_37 : i32
    %c0_38 = arith.constant 0 : index
    %c0_39 = arith.constant 0 : index
    %45 = arith.index_cast %44 : i32 to index
    %c1_40 = arith.constant 1 : index
    %c0_41 = arith.constant 0 : index
    %46 = vector.load %arg5[%c0_38, %c0_39, %45, %c1_40, %c0_41] : memref<1x1x10x10x16xbf16, #tpu.memory_space<vmem>>, vector<1x1x8x8x16xbf16>
    %47 = vector.shape_cast %46 : vector<1x1x8x8x16xbf16> to vector<8x8x16xbf16>
    %48 = vector.shape_cast %47 : vector<8x8x16xbf16> to vector<64x16xbf16>
    %c8_i32_42 = arith.constant 8 : i32
    %49 = arith.muli %arg4, %c8_i32_42 : i32
    %c0_i32_43 = arith.constant 0 : i32
    %50 = arith.addi %49, %c0_i32_43 : i32
    %c2_i32_44 = arith.constant 2 : i32
    %51 = arith.addi %50, %c2_i32_44 : i32
    %c1_i32_45 = arith.constant 1 : i32
    %52 = arith.addi %51, %c1_i32_45 : i32
    %c0_46 = arith.constant 0 : index
    %c0_47 = arith.constant 0 : index
    %53 = arith.index_cast %52 : i32 to index
    %c0_48 = arith.constant 0 : index
    %c0_49 = arith.constant 0 : index
    %54 = vector.load %arg6[%c0_46, %c0_47, %53, %c0_48, %c0_49] : memref<1x1x16x16x4xbf16, #tpu.memory_space<vmem>>, vector<1x1x1x16x4xbf16>
    %55 = vector.shape_cast %54 : vector<1x1x1x16x4xbf16> to vector<16x4xbf16>
    %cst_50 = arith.constant dense<0.000000e+00> : vector<64x4xf32>
    %56 = tpu.matmul %48, %55, %cst_50 {dimension_numbers = #tpu.dot_dimension_numbers<[1], [0], [0], [1], [0, 0, 1, 1], [], []>} : vector<64x16xbf16>, vector<16x4xbf16>, vector<64x4xf32> -> vector<64x4xf32>
    %57 = arith.addf %43, %56 : vector<64x4xf32>
    %c0_51 = arith.constant 0 : index
    %c0_52 = arith.constant 0 : index
    %58 = vector.load %arg9[%c0_51, %c0_52] : memref<64x8xf32, #tpu.memory_space<vmem>>, vector<64x4xf32>
    %59 = arith.addf %58, %57 : vector<64x4xf32>
    %c0_53 = arith.constant 0 : index
    %c0_54 = arith.constant 0 : index
    %60 = vector.load %arg9[%c0_53, %c0_54] : memref<64x8xf32, #tpu.memory_space<vmem>>, vector<64x4xf32>
    tpu.vector_store %arg9[%c0_53, %c0_54], %59 {strides = array<i32>} : memref<64x8xf32, #tpu.memory_space<vmem>>, vector<64x4xf32>,
    %c0_i32_55 = arith.constant 0 : i32
    %61 = arith.addi %arg2, %c0_i32_55 : i32
    %c0_56 = arith.constant 0 : index
    %c0_57 = arith.constant 0 : index
    %62 = arith.index_cast %61 : i32 to index
    %c1_58 = arith.constant 1 : index
    %c0_59 = arith.constant 0 : index
    %63 = vector.load %arg5[%c0_56, %c0_57, %62, %c1_58, %c0_59] : memref<1x1x10x10x16xbf16, #tpu.memory_space<vmem>>, vector<1x1x8x8x16xbf16>
    %64 = vector.shape_cast %63 : vector<1x1x8x8x16xbf16> to vector<8x8x16xbf16>
    %65 = vector.shape_cast %64 : vector<8x8x16xbf16> to vector<64x16xbf16>
    %c8_i32_60 = arith.constant 8 : i32
    %66 = arith.muli %arg4, %c8_i32_60 : i32
    %c4_i32 = arith.constant 4 : i32
    %67 = arith.addi %66, %c4_i32 : i32
    %c0_i32_61 = arith.constant 0 : i32
    %68 = arith.addi %67, %c0_i32_61 : i32
    %c0_i32_62 = arith.constant 0 : i32
    %69 = arith.addi %68, %c0_i32_62 : i32
    %c0_63 = arith.constant 0 : index
    %c0_64 = arith.constant 0 : index
    %70 = arith.index_cast %69 : i32 to index
    %c0_65 = arith.constant 0 : index
    %c0_66 = arith.constant 0 : index
    %71 = vector.load %arg6[%c0_63, %c0_64, %70, %c0_65, %c0_66] : memref<1x1x16x16x4xbf16, #tpu.memory_space<vmem>>, vector<1x1x1x16x4xbf16>
    %72 = vector.shape_cast %71 : vector<1x1x1x16x4xbf16> to vector<16x4xbf16>
    %cst_67 = arith.constant dense<0.000000e+00> : vector<64x4xf32>
    %73 = tpu.matmul %65, %72, %cst_67 {dimension_numbers = #tpu.dot_dimension_numbers<[1], [0], [0], [1], [0, 0, 1, 1], [], []>} : vector<64x16xbf16>, vector<16x4xbf16>, vector<64x4xf32> -> vector<64x4xf32>
    %c0_i32_68 = arith.constant 0 : i32
    %74 = arith.addi %arg2, %c0_i32_68 : i32
    %c0_69 = arith.constant 0 : index
    %c0_70 = arith.constant 0 : index
    %75 = arith.index_cast %74 : i32 to index
    %c2 = arith.constant 2 : index
    %c0_71 = arith.constant 0 : index
    %76 = vector.load %arg5[%c0_69, %c0_70, %75, %c2, %c0_71] : memref<1x1x10x10x16xbf16, #tpu.memory_space<vmem>>, vector<1x1x8x8x16xbf16>
    %77 = vector.shape_cast %76 : vector<1x1x8x8x16xbf16> to vector<8x8x16xbf16>
    %78 = vector.shape_cast %77 : vector<8x8x16xbf16> to vector<64x16xbf16>
    %c8_i32_72 = arith.constant 8 : i32
    %79 = arith.muli %arg4, %c8_i32_72 : i32
    %c4_i32_73 = arith.constant 4 : i32
    %80 = arith.addi %79, %c4_i32_73 : i32
    %c0_i32_74 = arith.constant 0 : i32
    %81 = arith.addi %80, %c0_i32_74 : i32
    %c1_i32_75 = arith.constant 1 : i32
    %82 = arith.addi %81, %c1_i32_75 : i32
    %c0_76 = arith.constant 0 : index
    %c0_77 = arith.constant 0 : index
    %83 = arith.index_cast %82 : i32 to index
    %c0_78 = arith.constant 0 : index
    %c0_79 = arith.constant 0 : index
    %84 = vector.load %arg6[%c0_76, %c0_77, %83, %c0_78, %c0_79] : memref<1x1x16x16x4xbf16, #tpu.memory_space<vmem>>, vector<1x1x1x16x4xbf16>
    %85 = vector.shape_cast %84 : vector<1x1x1x16x4xbf16> to vector<16x4xbf16>
    %cst_80 = arith.constant dense<0.000000e+00> : vector<64x4xf32>
    %86 = tpu.matmul %78, %85, %cst_80 {dimension_numbers = #tpu.dot_dimension_numbers<[1], [0], [0], [1], [0, 0, 1, 1], [], []>} : vector<64x16xbf16>, vector<16x4xbf16>, vector<64x4xf32> -> vector<64x4xf32>
    %87 = arith.addf %73, %86 : vector<64x4xf32>
    %c1_i32_81 = arith.constant 1 : i32
    %88 = arith.addi %arg2, %c1_i32_81 : i32
    %c0_82 = arith.constant 0 : index
    %c0_83 = arith.constant 0 : index
    %89 = arith.index_cast %88 : i32 to index
    %c1_84 = arith.constant 1 : index
    %c0_85 = arith.constant 0 : index
    %90 = vector.load %arg5[%c0_82, %c0_83, %89, %c1_84, %c0_85] : memref<1x1x10x10x16xbf16, #tpu.memory_space<vmem>>, vector<1x1x8x8x16xbf16>
    %91 = vector.shape_cast %90 : vector<1x1x8x8x16xbf16> to vector<8x8x16xbf16>
    %92 = vector.shape_cast %91 : vector<8x8x16xbf16> to vector<64x16xbf16>
    %c8_i32_86 = arith.constant 8 : i32
    %93 = arith.muli %arg4, %c8_i32_86 : i32
    %c4_i32_87 = arith.constant 4 : i32
    %94 = arith.addi %93, %c4_i32_87 : i32
    %c2_i32_88 = arith.constant 2 : i32
    %95 = arith.addi %94, %c2_i32_88 : i32
    %c0_i32_89 = arith.constant 0 : i32
    %96 = arith.addi %95, %c0_i32_89 : i32
    %c0_90 = arith.constant 0 : index
    %c0_91 = arith.constant 0 : index
    %97 = arith.index_cast %96 : i32 to index
    %c0_92 = arith.constant 0 : index
    %c0_93 = arith.constant 0 : index
    %98 = vector.load %arg6[%c0_90, %c0_91, %97, %c0_92, %c0_93] : memref<1x1x16x16x4xbf16, #tpu.memory_space<vmem>>, vector<1x1x1x16x4xbf16>
    %99 = vector.shape_cast %98 : vector<1x1x1x16x4xbf16> to vector<16x4xbf16>
    %cst_94 = arith.constant dense<0.000000e+00> : vector<64x4xf32>
    %100 = tpu.matmul %92, %99, %cst_94 {dimension_numbers = #tpu.dot_dimension_numbers<[1], [0], [0], [1], [0, 0, 1, 1], [], []>} : vector<64x16xbf16>, vector<16x4xbf16>, vector<64x4xf32> -> vector<64x4xf32>
    %101 = arith.addf %87, %100 : vector<64x4xf32>
    %c1_i32_95 = arith.constant 1 : i32
    %102 = arith.addi %arg2, %c1_i32_95 : i32
    %c0_96 = arith.constant 0 : index
    %c0_97 = arith.constant 0 : index
    %103 = arith.index_cast %102 : i32 to index
    %c2_98 = arith.constant 2 : index
    %c0_99 = arith.constant 0 : index
    %104 = vector.load %arg5[%c0_96, %c0_97, %103, %c2_98, %c0_99] : memref<1x1x10x10x16xbf16, #tpu.memory_space<vmem>>, vector<1x1x8x8x16xbf16>
    %105 = vector.shape_cast %104 : vector<1x1x8x8x16xbf16> to vector<8x8x16xbf16>
    %106 = vector.shape_cast %105 : vector<8x8x16xbf16> to vector<64x16xbf16>
    %c8_i32_100 = arith.constant 8 : i32
    %107 = arith.muli %arg4, %c8_i32_100 : i32
    %c4_i32_101 = arith.constant 4 : i32
    %108 = arith.addi %107, %c4_i32_101 : i32
    %c2_i32_102 = arith.constant 2 : i32
    %109 = arith.addi %108, %c2_i32_102 : i32
    %c1_i32_103 = arith.constant 1 : i32
    %110 = arith.addi %109, %c1_i32_103 : i32
    %c0_104 = arith.constant 0 : index
    %c0_105 = arith.constant 0 : index
    %111 = arith.index_cast %110 : i32 to index
    %c0_106 = arith.constant 0 : index
    %c0_107 = arith.constant 0 : index
    %112 = vector.load %arg6[%c0_104, %c0_105, %111, %c0_106, %c0_107] : memref<1x1x16x16x4xbf16, #tpu.memory_space<vmem>>, vector<1x1x1x16x4xbf16>
    %113 = vector.shape_cast %112 : vector<1x1x1x16x4xbf16> to vector<16x4xbf16>
    %cst_108 = arith.constant dense<0.000000e+00> : vector<64x4xf32>
    %114 = tpu.matmul %106, %113, %cst_108 {dimension_numbers = #tpu.dot_dimension_numbers<[1], [0], [0], [1], [0, 0, 1, 1], [], []>} : vector<64x16xbf16>, vector<16x4xbf16>, vector<64x4xf32> -> vector<64x4xf32>
    %115 = arith.addf %101, %114 : vector<64x4xf32>
    %c0_109 = arith.constant 0 : index
    %c4 = arith.constant 4 : index
    %116 = vector.load %arg9[%c0_109, %c4] : memref<64x8xf32, #tpu.memory_space<vmem>>, vector<64x4xf32>
    %117 = arith.addf %116, %115 : vector<64x4xf32>
    %c0_110 = arith.constant 0 : index
    %c4_111 = arith.constant 4 : index
    %118 = vector.load %arg9[%c0_110, %c4_111] : memref<64x8xf32, #tpu.memory_space<vmem>>, vector<64x4xf32>
    tpu.vector_store %arg9[%c0_110, %c4_111], %117 {strides = array<i32>} : memref<64x8xf32, #tpu.memory_space<vmem>>, vector<64x4xf32>,
    %c1_i32_112 = arith.constant 1 : i32
    %119 = arith.cmpi eq, %arg4, %c1_i32_112 : i32
    %120 = arith.extui %119 : i1 to i32
    %c0_i32_113 = arith.constant 0 : i32
    %121 = arith.cmpi ne, %120, %c0_i32_113 : i32
    scf.if %121 {
      %c0_114 = arith.constant 0 : index
      %c0_115 = arith.constant 0 : index
      %122 = vector.load %arg9[%c0_114, %c0_115] : memref<64x8xf32, #tpu.memory_space<vmem>>, vector<64x8xf32>
      %c0_116 = arith.constant 0 : index
      %c0_117 = arith.constant 0 : index
      %123 = vector.load %arg7[%c0_116, %c0_117] : memref<1x8xf32, #tpu.memory_space<vmem>>, vector<1x8xf32>
      %124 = vector.broadcast %123 : vector<1x8xf32> to vector<64x8xf32>
      %125 = arith.addf %122, %124 : vector<64x8xf32>
      %126 = vector.shape_cast %125 : vector<64x8xf32> to vector<8x8x8xf32>
      %127 = arith.truncf %126 : vector<8x8x8xf32> to vector<8x8x8xbf16>
      %c0_118 = arith.constant 0 : index
      %c0_119 = arith.constant 0 : index
      %c0_120 = arith.constant 0 : index
      %c0_121 = arith.constant 0 : index
      %c0_122 = arith.constant 0 : index
      %128 = vector.load %arg8[%c0_118, %c0_119, %c0_120, %c0_121, %c0_122] : memref<1x8x1x8x8xbf16, #tpu.memory_space<vmem>>, vector<1x8x1x8x8xbf16>
      %129 = vector.shape_cast %128 : vector<1x8x1x8x8xbf16> to vector<8x8x8xbf16>
      %130 = vector.shape_cast %127 : vector<8x8x8xbf16> to vector<1x8x1x8x8xbf16>
      tpu.vector_store %arg8[%c0_118, %c0_119, %c0_120, %c0_121, %c0_122], %130 {strides = array<i32>} : memref<1x8x1x8x8xbf16, #tpu.memory_space<vmem>>, vector<1x8x1x8x8xbf16>,
    } else {
    }
    return
  }
  func.func @transform_0(%arg0: i32, %arg1: i32, %arg2: i32, %arg3: i32, %arg4: i32) -> (i32, i32, i32, i32, i32) {
    %0 = arith.addi %arg3, %arg1 : i32
    %1 = arith.addi %0, %arg4 : i32
    %c0_i32 = arith.constant 0 : i32
    %c0_i32_0 = arith.constant 0 : i32
    %c0_i32_1 = arith.constant 0 : i32
    %c0_i32_2 = arith.constant 0 : i32
    return %arg0, %1, %c0_i32, %c0_i32_0, %c0_i32_1 : i32, i32, i32, i32, i32
  }
  func.func @transform_1(%arg0: i32, %arg1: i32, %arg2: i32, %arg3: i32, %arg4: i32) -> (i32, i32, i32, i32, i32) {
    %c0_i32 = arith.constant 0 : i32
    %c0_i32_0 = arith.constant 0 : i32
    %c0_i32_1 = arith.constant 0 : i32
    %c0_i32_2 = arith.constant 0 : i32
    return %arg1, %arg2, %c0_i32, %c0_i32_0, %c0_i32_1 : i32, i32, i32, i32, i32
  }
  func.func @transform_2(%arg0: i32, %arg1: i32, %arg2: i32, %arg3: i32, %arg4: i32) -> (i32, i32) {
    %c0_i32 = arith.constant 0 : i32
    %c0_i32_0 = arith.constant 0 : i32
    %c0_i32_1 = arith.constant 0 : i32
    return %c0_i32, %c0_i32_0 : i32, i32
  }
  func.func @transform_3(%arg0: i32, %arg1: i32, %arg2: i32, %arg3: i32, %arg4: i32) -> (i32, i32, i32, i32, i32) {
    %c8_i32 = arith.constant 8 : i32
    %0 = arith.muli %arg0, %c8_i32 : i32
    %1 = arith.addi %0, %arg3 : i32
    %c2_i32 = arith.constant 2 : i32
    %2 = arith.muli %1, %c2_i32 : i32
    %3 = arith.addi %2, %arg1 : i32
    %c0_i32 = arith.constant 0 : i32
    %c0_i32_0 = arith.constant 0 : i32
    %c0_i32_1 = arith.constant 0 : i32
    %c0_i32_2 = arith.constant 0 : i32
    return %3, %c0_i32, %arg2, %c0_i32_0, %c0_i32_1 : i32, i32, i32, i32, i32
  }
}

</mosaic_0001>

<bundles_post_ra>
// kernel: conv_decoder3d_forward.5
= control target key start
LH: loop header
LB: loop body
LE: loop exit
PB: predicated region body
PF: predicated region fallthrough
CT: control target
= control target key end

     0   :  { %v112_v0 = vmov 0.0   ;;  %vm113_vm0 = vmmov 0   ;;  %vm39_vm1 = vcmask 261120   ;;  %vm87_vm3 = vcmask 519168   ;;  %s149_s1 = inlined_call_operand.vmem [shape: bf16[32,64], index: 1, kind: input, shape index: {}]   ;;  %s150_s0 = inlined_call_operand.vmem [shape: bf16[8,32], index: 0, kind: input, shape index: {}]   ;;  %s151_s2 = inlined_call_operand.vmem [shape: f32[1,64], index: 2, kind: input, shape index: {}]   ;;  %s152_s3 = inlined_call_operand.vmem [shape: bf16[8,64], index: 3, kind: output, shape index: {}]  }
   0x1   :  { %100 = vmatprep.subr.bf16.mxu0 %v112_v0  ;;  %v110_v1 = vld [vmem:[%s149_s1] sm:$0xff]   ;;  %104 = vmatprep.mubr.msk.bf16.mxu0 %vm113_vm0, %v112_v0  ;;  %v111_v2 = vld [vmem:[%s149_s1 + $0x8] sm:$0xff]  }
   0x2   :  { %101 = vmatpush3.bf16.msra.mxu0 %v110_v1  ;;  %v15_v3 = vld [vmem:[%s150_s0] sm:$0xf] }
   0x3   :  { %102 = vmatprep.subr.bf16.mxu0 %v112_v0  ;;  %v93_v4 = vld [vmem:[%s151_s2] ss:$0 sm:$0xff] }
   0x6   :  { %103 = vmatpush3.bf16.msra.mxu0 %v111_v2 }
   0x9   :  { %105 = vmatmul.mubr.msk.bf16.vlgmr.msra.gmra.mrb[0].mxu0 %vm39_vm1, %v15_v3 }
  0xdc   :  { %v77_v5 = vpop.f32.mrb[0].mxu0 }
  0xdd   :  { %v78_v6 = vadd.f32 %v93_v4, %v77_v5  ;;  %v106_v7 = vpop.f32.mrb[1].mxu0 }
  0xde   :  { %v80_v8 = vpop.f32.mrb[2].mxu0 }
  0xdf   :  { %vm83_vm2 = vcmp.ge.f32.partialorder %v78_v6, 0.0  ;;  %v84_v9 = vmul.f32 0.2, %v78_v6  ;;  %v107_v10 = vpop.f32.mrb[3].mxu0 }
  0xe1   :  { %v85_v11 = vsel %vm83_vm2, %v78_v6, %v84_v9 }
  0xe2   :  { %v86_v12 = vpack.c.bf16 %v85_v11, %v85_v11 }
  0xe4   :  { %88 = vst.msk [vmem:[%s152_s3] sm:$0xf] %vm87_vm3, %v86_v12 }

// kernel: conv_decoder3d_forward.6
= control target key start
LH: loop header
LB: loop body
LE: loop exit
PB: predicated region body
PF: predicated region fallthrough
CT: control target
= control target key end

     0   :  { %s1717_s12 = smov 0   ;;  %s1719_s13 = smov 0   ;;  %s1945_s0 = inlined_call_operand.vmem [shape: bf16[2,3,3,3,64], index: 0, kind: input, shape index: {}]   ;;  %s1946_s1 = inlined_call_operand.vmem [shape: bf16[2,2,16,64,32], index: 1, kind: input, shape index: {}]   ;;  %s1947_s2 = inlined_call_operand.vmem [shape: f32[1,64], index: 2, kind: input, shape index: {}]   ;;  %s1948_s3 = inlined_call_operand.vmem [shape: bf16[4,1,2,1,64], index: 3, kind: output, shape index: {}]  }
   0x1   :  { %s1721_s14 = smov 0   ;;  %s1723_s15 = smov 0  }
   0x2   :  { %s1725_s16 = smov 0   ;;  %s1727_s17 = smov 0  }
   0x3   :  { %s1729_s18 = smov 0   ;;  %s1731_s19 = smov 0  }
   0x4   :  { %s1733_s20 = smov 0  }
   0x5 LB: > { %s31_s21 = sadd.s32 1, %s1673_s16  ;;  %s38_s22 = sadd.s32 1, %s1677_s17  ;;  %s1689_s20 = sphi %s1733_s20, %s13_s20   ;;  %s1685_s19 = sphi %s1731_s19, %s1964_s19   ;;  %s1681_s18 = sphi %s1729_s18, %s1963_s18   ;;  %s1677_s17 = sphi %s1727_s17, %s1962_s17   ;;  %s1673_s16 = sphi %s1725_s16, %s1961_s16   ;;  %s1669_s15 = sphi %s1723_s15, %s1960_s15   ;;  %s1665_s14 = sphi %s1721_s14, %s1959_s14   ;;  %s1661_s13 = sphi %s1719_s13, %s1958_s13   ;;  %s1657_s12 = sphi %s1717_s12, %s1957_s12  }
   0x6   : > { %p32_p0 = scmp.ge.s32.totalorder %s31_s21, 2  ;;  %p1217_p1 = scmp.ge.s32.totalorder %s1689_s20, 1 }
   0x7   : > { %p208_p2 = scmp.lt.s32.totalorder %s1689_s20, 17  ;;  %s42_s23 = sadd.s32 1, %s1681_s18 }
   0x8   : > { %s1966_s21 = smov (%p32_p0, %s31_s21), 0  ;;  %s1968_s22 = smov (!%p32_p0, %s38_s22), %s1677_s17 }
   0x9   : > { %1949 = sst [smem:[#allocation3_spill]] %s1966_s21  ;;  %p40_p3 = scmp.ge.s32.totalorder %s1968_s22, 2 }
   0xa   : > { %p209_p4 = pnand %p1217_p1, %p208_p2  ;;  %s46_s24 = sadd.s32 1, %s1685_s19 }
   0xb   : > { %s1970_s22 = smov (%p40_p3, %s1968_s22), 0  ;;  %s1972_s23 = smov (!%p40_p3, %s42_s23), %s1681_s18 }
   0xc   : > { %1950 = sst [smem:[#allocation4_spill]] %s1970_s22  ;;  %p44_p5 = scmp.ge.s32.totalorder %s1972_s23, 2 }
   0xd   : > { %212 = sbr.rel (%p209_p4) target bundleno = 452 (0x1c4), region = 32  ;;  %s253_s25 = sadd.s32 (!%p209_p4), %s1657_s12, %s1665_s14 }
   0xe   : > { %s1974_s23 = smov (%p44_p5, %s1972_s23), 0  ;;  %s1976_s24 = smov (!%p44_p5, %s46_s24), %s1685_s19 }
   0xf   : > { %1951 = sst [smem:[#allocation5_spill]] %s1974_s23  ;;  %p48_p6 = scmp.ge.s32.totalorder %s1976_s24, 2 }
  0x10   : > { %p254_p7 = scmp.lt.s32.totalorder (!%p209_p4), %s1669_s15, 1  ;;  %p256_p8 = scmp.lt.s32.totalorder (!%p209_p4), %s253_s25, 2 }
  0x11   : > { %s1978_s24 = smov (%p48_p6, %s1976_s24), 0  ;;  %p265_p9 = scmp.lt.s32.totalorder (!%p209_p4), %s1665_s14, 1 }
  0x12   : > { %1952 = sst [smem:[#allocation6_spill]] %s1978_s24  ;;  %p267_p10 = scmp.lt.s32.totalorder (!%p209_p4), %s1661_s13, 1 }
  0x13   : > { %s1222_s29 = sshll.u32 (!%p209_p4), %s1669_s15, 1  ;;  %p1224_p12 = scmp.ne.s32.totalorder (!%p209_p4), %s1657_s12, 0 }
  0x14   : > { %s255_s26 = scalar_select %p254_p7, %s1669_s15, 1 }
  0x15   : > { %s1980_s25 = smov (!%p256_p8, %s253_s25), 2  ;;  %s276_s5 = sadd.s32 %s1665_s14, %s1222_s29  ;;  %vm292_vm0 = vcmask (!%p1224_p12), 516096   ;;  %v1691_v0 = vmov (!%p1224_p12), 0.0  }
  0x16   : > { %s1508_s27 = smul.u32 9, %s255_s26  ;;  %p277_p11 = scmp.lt.s32.totalorder %s276_s5, 3  ;;  %293 = vst.msk [vmem:[#allocation2] sm:$0x1] (!%p1224_p12), %vm292_vm0, %v1691_v0 }
  0x17   : > { %s1507_s28 = smul.u32 3, %s1980_s25 }
  0x18   : > { %s266_s30 = scalar_select %p265_p9, %s1665_s14, 1 }
  0x19   : > { %s260_s4 = sadd.s32 %s1508_s27, %s1507_s28  ;;  %s1982_s5 = smov (!%p277_p11, %s276_s5), 3 }
  0x1a   : > { %s1218_s6 = sshll.u32 %s260_s4, 1  ;;  %s1220_s7 = sshll.u32 %s266_s30, 8 }
  0x1b   : > { %s1791_s10 = scalar_lea.vmem %s1945_s0, %s1218_s6  ;;  %s1223_s22 = sshll.u32 %s1982_s5, 1 }
  0x1c   : > { %s268_s11 = scalar_select %p267_p10, %s1661_s13, 1 }
  0x1d   : > { %291 = sbr.rel (%p1224_p12) target bundleno = 36 (0x24), region = 36 }
  0x1e   : > { %s1219_s24 = sshll.u32 %s268_s11, 7  ;;  %s282_s21 = sadd.s32 %s1223_s22, %s268_s11 }
  0x1f   : > { %s271_s23 = sadd.s32 %s1220_s7, %s1219_s24  ;;  %s1800_s29 = scalar_lea.vmem %s1948_s3, %s282_s21 }
  0x20   : > { %s1221_s26 = sshll.u32 %s271_s23, 2 }
  0x21   : > { %s273_s27 = scalar_lea.vmem %s1946_s1, %s1221_s26 }
  0x24 PF: > { %s1351_s22 = sshll.u32 %s1657_s12, 8  ;;  %v1692_v1 = vmov 0.0   ;;  %vm1693_vm1 = vmmov 0   ;;  %s1225_s21 = sshll.u32 %s1661_s13, 1  ;;  %vm356_vm2 = vcmask 523264   ;;  %v325_v11 = vlaneseq }
  0x25   : > { %1447 = vmatprep.subr.bf16.mxu0 %v1692_v1  ;;  %s1805_s23 = scalar_lea.vmem %s273_s27, %s1351_s22  ;;  %1455 = vmatprep.mubr.msk.bf16.mxu0 %vm1693_vm1, %v1692_v1  ;;  %s1818_s24 = scalar_lea.vmem %s1791_s10, %s1225_s21  ;;  %v1694_v9 = vmov 1983009808   ;;  %v1695_v61 = vmov 1966171168   ;;  %vm644_vm3 = vcmask 253952   ;;  %vm1028_vm4 = vcmask 516352  }
  0x26   : > { %v1587_v2 = vld [vmem:[%s1805_s23 + $0xa0] sm:$0xff]   ;;  %1399 = vmatprep.subr.bf16.mxu1 %v1692_v1  ;;  %1407 = vmatprep.mubr.msk.bf16.mxu1 %vm1693_vm1, %v1692_v1  ;;  %v1588_v3 = vld [vmem:[%s1805_s23 + $0xa8] sm:$0xff]   ;;  %v1589_v4 = vld [vmem:[%s1805_s23 + $0xb0] sm:$0xff]   ;;  %v323_v10 = vunpack.c.l.s4 %v1694_v9  ;;  %v1832_v15 = vshrl.u32 %v325_v11, 7  ;;  %v1011_v62 = vunpack.c.l.s4 %v1695_v61  ;;  %s1696_s13 = smov 32   ;;  %p1347_p13 = scmp.ne.s32.totalorder %s1657_s12, 1 }
  0x27   : > { %1448 = vmatpush3.bf16.msra.mxu0 %v1587_v2  ;;  %v1301_v5 = vld.sshfl [vmem:[%s1818_s24] sm:$0x2 pattern:$0x76325410]  ;;  %v1590_v6 = vld [vmem:[%s1805_s23 + $0xb8] sm:$0xff]   ;;  %v1592_v12 = vld [vmem:[%s1805_s23 + $0x88] sm:$0xff]  }
  0x28   : > { %1449 = vmatprep.subr.bf16.mxu0 %v1692_v1  ;;  %v680_v7 = vrot.slane %v1301_v5, 1  ;;  %v1591_v8 = vld [vmem:[%s1805_s23 + $0x80] sm:$0xff]   ;;  %v324_v14 = vunpack.c.0.s8 %v323_v10  ;;  %v1604_v16 = vld [vmem:[%s1805_s23 + $0x28] sm:$0xff]   ;;  %v1593_v17 = vld [vmem:[%s1805_s23 + $0x90] sm:$0xff]   ;;  %v1012_v2 = vunpack.c.0.s8 %v1011_v62  ;;  %vm1041_vm5 = vcmask (!%p1347_p13), 516096  }
  0x29   : > { %v1603_v13 = vld [vmem:[%s1805_s23 + $0x20] sm:$0xff]   ;;  %v1605_v19 = vld [vmem:[%s1805_s23 + $0x30] sm:$0xff]   ;;  %v1594_v22 = vld [vmem:[%s1805_s23 + $0x98] sm:$0xff]   ;;  %vm1042_vm6 = vsmask.f32 (!%p1347_p13), 256 }
  0x2a   : > { %1400 = vmatpush3.bf16.msra.mxu1 %v1603_v13  ;;  %v1307_v18 = vld.sshfl [vmem:[%s1818_s24] sm:$0x1 pattern:$0x76325410]  ;;  %v1841_v20 = vsub.s32 %v324_v14, %v1832_v15  ;;  %v1606_v25 = vld [vmem:[%s1805_s23 + $0x38] sm:$0xff]   ;;  %v1596_v29 = vld [vmem:[%s1805_s23 + $0xc8] sm:$0xff]  }
  0x2b   : > { %1450 = vmatpush3.bf16.msra.mxu0 %v1588_v3  ;;  %1401 = vmatprep.subr.bf16.mxu1 %v1692_v1  ;;  %v296_v21 = vld [vmem:[%s1818_s24] sm:$0x1]  ;;  %v757_v24 = vshrl.u32 %v1307_v18, 16  ;;  %v1608_v30 = vld [vmem:[%s1805_s23 + $0x8] sm:$0xff]   ;;  %v1597_v31 = vld [vmem:[%s1805_s23 + $0xd0] sm:$0xff]   ;;  %v1015_v3 = vsub.s32 %v1012_v2, %v1832_v15 }
  0x2c   : > { %1451 = vmatprep.subr.bf16.mxu0 %v1692_v1  ;;  %v328_v23 = vrot.slane %v296_v21, %v1841_v20  ;;  %v1595_v26 = vld [vmem:[%s1805_s23 + $0xc0] sm:$0xff]   ;;  %v1609_v32 = vld [vmem:[%s1805_s23 + $0x10] sm:$0xff]   ;;  %v1598_v33 = vld [vmem:[%s1805_s23 + $0xd8] sm:$0xff]  }
  0x2d   : > { %v1607_v28 = vld [vmem:[%s1805_s23] sm:$0xff]   ;;  %v1610_v36 = vld [vmem:[%s1805_s23 + $0x18] sm:$0xff]   ;;  %v1600_v39 = vld [vmem:[%s1805_s23 + $0xe8] sm:$0xff]  }
  0x2e   : > { %1402 = vmatpush3.bf16.msra.mxu1 %v1604_v16  ;;  %v330_v27 = vshrl.u32 %v328_v23, 16  ;;  %v1324_v34 = vld.sshfl [vmem:[%s1818_s24 + $0x2] sm:$0x1 pattern:$0x76325410]  ;;  %v1612_v40 = vld [vmem:[%s1805_s23 + $0x48] sm:$0xff]   ;;  %vm1043_vm8 = vmand (!%p1347_p13), %vm1041_vm5, %vm1042_vm6 }
  0x2f   : > { %1452 = vmatpush3.bf16.msra.mxu0 %v1589_v4  ;;  %1403 = vmatprep.subr.bf16.mxu1 %v1692_v1  ;;  %v848_v35 = vshrl.u32 %v1324_v34, 16  ;;  %v1599_v37 = vld [vmem:[%s1805_s23 + $0xe0] sm:$0xff]   ;;  %v1601_v41 = vld [vmem:[%s1805_s23 + $0xf0] sm:$0xff]   ;;  %v1602_v43 = vld [vmem:[%s1805_s23 + $0xf8] sm:$0xff]  }
  0x30   : > { %1453 = vmatprep.subr.bf16.mxu0 %v1692_v1  ;;  %v1611_v38 = vld [vmem:[%s1805_s23 + $0x40] sm:$0xff]   ;;  %v1613_v42 = vld [vmem:[%s1805_s23 + $0x50] sm:$0xff]   ;;  %v1614_v46 = vld [vmem:[%s1805_s23 + $0x58] sm:$0xff]  }
  0x31   : > { %v1341_v44 = vld.sshfl [vmem:[%s1818_s24 + $0x2] sm:$0x2 pattern:$0x76325410]  ;;  %v1250_v47 = vld [vmem:[%s1818_s24 + $0x2] sm:$0x1] }
  0x32   : > { %1404 = vmatpush3.bf16.msra.mxu1 %v1605_v19  ;;  %v939_v45 = vrot.slane %v1341_v44, 1  ;;  %v1615_v48 = vld [vmem:[%s1805_s23 + $0x60] sm:$0xff]   ;;  %v1616_v49 = vld [vmem:[%s1805_s23 + $0x68] sm:$0xff]   ;;  %v1617_v50 = vld [vmem:[%s1805_s23 + $0x70] sm:$0xff]   ;;  %v570_v51 = vrot.slane %v1250_v47, %v1841_v20 }
  0x33   : > { %1454 = vmatpush3.bf16.msra.mxu0 %v1590_v6  ;;  %1405 = vmatprep.subr.bf16.mxu1 %v1692_v1  ;;  %v1618_v52 = vld [vmem:[%s1805_s23 + $0x78] sm:$0xff]   ;;  %v642_v16 = vld [vmem:[#allocation2] sm:$0x1] }
  0x34   : > { %1459 = vmatprep.subr.bf16.mxu0 %v1692_v1  ;;  %v572_v53 = vshrl.u32 %v570_v51, 16 }
  0x36   : > { %1456 = vmatmul.mubr.msk.bf16.vlgmr.msra.gmra.mrb[0].mxu0 %vm356_vm2, %v680_v7  ;;  %1406 = vmatpush3.bf16.msra.mxu1 %v1606_v25  ;;  %v1035_v25 = vld [vmem:[%s1947_s2] sm:$0x1] (!%p1347_p13) }
  0x37   : > { %1460 = vmatpush3.bf16.msra.mxu0 %v1591_v8  ;;  %1467 = vmatprep.mubr.msk.bf16.mxu0 %vm1693_vm1, %v1692_v1 }
  0x38   : > { %1461 = vmatprep.subr.bf16.mxu0 %v1692_v1  ;;  %1411 = vmatprep.subr.bf16.mxu1 %v1692_v1 }
  0x39   : > { %1408 = vmatmul.mubr.msk.bf16.vlgmr.msra.gmra.mrb[0].mxu1 %vm356_vm2, %v330_v27 }
  0x3a   : > { %1412 = vmatpush3.bf16.msra.mxu1 %v1607_v28  ;;  %1419 = vmatprep.mubr.msk.bf16.mxu1 %vm1693_vm1, %v1692_v1 }
  0x3b   : > { %1462 = vmatpush3.bf16.msra.mxu0 %v1592_v12  ;;  %1413 = vmatprep.subr.bf16.mxu1 %v1692_v1 }
  0x3c   : > { %1463 = vmatprep.subr.bf16.mxu0 %v1692_v1 }
  0x3e   : > { %1414 = vmatpush3.bf16.msra.mxu1 %v1608_v30 }
  0x3f   : > { %1464 = vmatpush3.bf16.msra.mxu0 %v1593_v17  ;;  %1415 = vmatprep.subr.bf16.mxu1 %v1692_v1 }
  0x40   : > { %1465 = vmatprep.subr.bf16.mxu0 %v1692_v1 }
  0x42   : > { %1416 = vmatpush3.bf16.msra.mxu1 %v1609_v32 }
  0x43   : > { %1466 = vmatpush3.bf16.msra.mxu0 %v1594_v22  ;;  %1417 = vmatprep.subr.bf16.mxu1 %v1692_v1 }
  0x44   : > { %1471 = vmatprep.subr.bf16.mxu0 %v1692_v1 }
  0x46   : > { %1468 = vmatmul.mubr.msk.bf16.vlgmr.msra.gmra.mrb[0].mxu0 %vm356_vm2, %v757_v24  ;;  %1418 = vmatpush3.bf16.msra.mxu1 %v1610_v36 }
  0x47   : > { %1472 = vmatpush3.bf16.msra.mxu0 %v1595_v26  ;;  %1479 = vmatprep.mubr.msk.bf16.mxu0 %vm1693_vm1, %v1692_v1 }
  0x48   : > { %1473 = vmatprep.subr.bf16.mxu0 %v1692_v1  ;;  %1423 = vmatprep.subr.bf16.mxu1 %v1692_v1 }
  0x49   : > { %1420 = vmatmul.mubr.msk.bf16.vlgmr.msra.gmra.mrb[4].mxu1 %vm356_vm2, %v296_v21 }
  0x4a   : > { %1424 = vmatpush3.bf16.msra.mxu1 %v1611_v38  ;;  %1431 = vmatprep.mubr.msk.bf16.mxu1 %vm1693_vm1, %v1692_v1 }
  0x4b   : > { %1474 = vmatpush3.bf16.msra.mxu0 %v1596_v29  ;;  %1425 = vmatprep.subr.bf16.mxu1 %v1692_v1  ;;  %v1044_v29 = vld [vmem:[%s1800_s29] sm:$0x1] (!%p1347_p13) }
  0x4c   : > { %1475 = vmatprep.subr.bf16.mxu0 %v1692_v1 }
  0x4e   : > { %1426 = vmatpush3.bf16.msra.mxu1 %v1612_v40 }
  0x4f   : > { %1476 = vmatpush3.bf16.msra.mxu0 %v1597_v31  ;;  %1427 = vmatprep.subr.bf16.mxu1 %v1692_v1 }
  0x50   : > { %1477 = vmatprep.subr.bf16.mxu0 %v1692_v1 }
  0x52   : > { %1428 = vmatpush3.bf16.msra.mxu1 %v1613_v42 }
  0x53   : > { %1478 = vmatpush3.bf16.msra.mxu0 %v1598_v33  ;;  %1429 = vmatprep.subr.bf16.mxu1 %v1692_v1 }
  0x54   : > { %1483 = vmatprep.subr.bf16.mxu0 %v1692_v1 }
  0x56   : > { %1480 = vmatmul.mubr.msk.bf16.vlgmr.msra.gmra.mrb[0].mxu0 %vm356_vm2, %v848_v35  ;;  %1430 = vmatpush3.bf16.msra.mxu1 %v1614_v46 }
  0x57   : > { %1484 = vmatpush3.bf16.msra.mxu0 %v1599_v37  ;;  %1491 = vmatprep.mubr.msk.bf16.mxu0 %vm1693_vm1, %v1692_v1 }
  0x58   : > { %1485 = vmatprep.subr.bf16.mxu0 %v1692_v1  ;;  %1435 = vmatprep.subr.bf16.mxu1 %v1692_v1 }
  0x59   : > { %1432 = vmatmul.mubr.msk.bf16.vlgmr.msra.gmra.mrb[8].mxu1 %vm356_vm2, %v1250_v47 }
  0x5a   : > { %1436 = vmatpush3.bf16.msra.mxu1 %v1615_v48  ;;  %1443 = vmatprep.mubr.msk.bf16.mxu1 %vm1693_vm1, %v1692_v1 }
  0x5b   : > { %1486 = vmatpush3.bf16.msra.mxu0 %v1600_v39  ;;  %1437 = vmatprep.subr.bf16.mxu1 %v1692_v1 }
  0x5c   : > { %1487 = vmatprep.subr.bf16.mxu0 %v1692_v1 }
  0x5e   : > { %1438 = vmatpush3.bf16.msra.mxu1 %v1616_v49 }
  0x5f   : > { %1488 = vmatpush3.bf16.msra.mxu0 %v1601_v41  ;;  %1439 = vmatprep.subr.bf16.mxu1 %v1692_v1 }
  0x60   : > { %1489 = vmatprep.subr.bf16.mxu0 %v1692_v1 }
  0x62   : > { %1440 = vmatpush3.bf16.msra.mxu1 %v1617_v50 }
  0x63   : > { %1490 = vmatpush3.bf16.msra.mxu0 %v1602_v43  ;;  %1441 = vmatprep.subr.bf16.mxu1 %v1692_v1 }
  0x66   : > { %1492 = vmatmul.mubr.msk.bf16.vlgmr.msra.gmra.mrb[0].mxu0 %vm356_vm2, %v939_v45  ;;  %1442 = vmatpush3.bf16.msra.mxu1 %v1618_v52 }
  0x69   : > { %1444 = vmatmul.mubr.msk.bf16.vlgmr.msra.gmra.mrb[12].mxu1 %vm356_vm2, %v572_v53 }
 0x10c   : > { %v394_v54 = vpop.f32.mrb[0].mxu1 }
 0x10d   : > { %v1409_v55 = vpop.f32.mrb[1].mxu1 }
 0x10e   : > { %v397_v56 = vpop.f32.mrb[2].mxu1 }
 0x10f   : > { %v1410_v57 = vpop.f32.mrb[3].mxu1 }
 0x11c   : > { %v461_v58 = vpop.f32.mrb[4].mxu1 }
 0x11d   : > { %v462_v59 = vadd.f32 %v461_v58, %v394_v54  ;;  %v1421_v60 = vpop.f32.mrb[5].mxu1 }
 0x11e   : > { %v464_v63 = vpop.f32.mrb[6].mxu1 }
 0x11f   : > { %v1422_v0 = vpop.f32.mrb[7].mxu1 }
 0x12c   : > { %v544_v9 = vpop.f32.mrb[8].mxu1 }
 0x12d   : > { %v550_v10 = vadd.f32 %v544_v9, %v462_v59  ;;  %v1433_v11 = vpop.f32.mrb[9].mxu1 }
 0x12e   : > { %v547_v12 = vpop.f32.mrb[10].mxu1 }
 0x12f   : > { %v1434_v13 = vpop.f32.mrb[11].mxu1 }
 0x139   : > { %v1001_v4 = vpop.f32.mrb[0].mxu0 }
 0x13a   : > { %v1016_v1 = vrot.slane %v1001_v4, %v1015_v3  ;;  %v1493_v5 = vpop.f32.mrb[1].mxu0 }
 0x13b   : > { %v1004_v6 = vpop.f32.mrb[2].mxu0 }
 0x13c   : > { %v1494_v7 = vpop.f32.mrb[3].mxu0  ;;  %v1023_v8 = vrot.slane %v1016_v1, %v1015_v3  ;;  %v635_v14 = vpop.f32.mrb[12].mxu1 }
 0x13d   : > { %v641_v17 = vadd.f32 %v635_v14, %v550_v10  ;;  %v1445_v18 = vpop.f32.mrb[13].mxu1 }
 0x13e   : > { %1024 = vrot.lane.b32.xlu0 %v1023_v8, %s1696_s13  ;;  %v638_v19 = vpop.f32.mrb[14].mxu1 }
 0x13f   : > { %v643_v15 = vadd.f32 %v642_v16, %v641_v17  ;;  %v1446_v20 = vpop.f32.mrb[15].mxu1 }
 0x141   : > { %645 = vst.msk [vmem:[#allocation2] sm:$0x1] %vm644_vm3, %v643_v15 }
 0x148   : > { %v1008_v21 = vld [vmem:[#allocation2] sm:$0x1] }
 0x1ad   : > { %1033 = sbr.rel (%p1347_p13) target bundleno = 452 (0x1c4), region = 40 }
 0x1b0   : > { %v1025_v22 = vpop.permute.xlu0 %1024 }
 0x1b1   : > { %v1027_v23 = vadd.f32 %v1025_v22, %v1008_v21 }
 0x1b3   : > { %1029 = vst.msk [vmem:[#allocation2] sm:$0x1] %vm1028_vm4, %v1027_v23 }
 0x1ba   : > { %v1034_v24 = vld [vmem:[#allocation2] sm:$0x1] }
 0x1bb   : > { %v1036_v26 = vadd.f32 %v1035_v25, %v1034_v24 }
 0x1bd   : > { %vm1037_vm7 = vcmp.ge.f32.partialorder %v1036_v26, 0.0  ;;  %v1038_v27 = vmul.f32 0.2, %v1036_v26 }
 0x1bf   : > { %v1039_v28 = vsel %vm1037_vm7, %v1036_v26, %v1038_v27 }
 0x1c0   : > { %v1040_v30 = vpack.c.bf16 %v1039_v28, %v1039_v28 }
 0x1c2   : > { %v1045_v31 = vsel %vm1043_vm8, %v1040_v30, %v1044_v29 }
 0x1c3   : > { %1046 = vst [vmem:[%s1800_s29] sm:$0x1] %v1045_v31 }
 0x1c4 PF: > { %s13_s20 = sadd.s32 1, %s1689_s20   ;;  %s1953_s5 = sld [smem:[#allocation3_spill]] }
 0x1c5   : > { %p10_p0 = scmp.ge.s32.totalorder %s13_s20, 18   ;;  %s1954_s6 = sld [smem:[#allocation4_spill]] }
 0x1c6   : > { %s1955_s7 = sld [smem:[#allocation5_spill]]  ;;  %s1956_s8 = sld [smem:[#allocation6_spill]] }
 0x1c7   : > { %s1957_s12 = smov %s1673_s16  ;;  %s1958_s13 = smov %s1677_s17 }
 0x1c8   : > { %s1959_s14 = smov %s1681_s18  ;;  %s1960_s15 = smov %s1685_s19 }
 0x1c9   :  { %12 = sbr.rel (!%p10_p0) target bundleno = 5 (0x5), region = 83 }
 0x1ca   : > { %s1961_s16 = smov %s1953_s5 }
 0x1cb   : > { %s1962_s17 = smov %s1954_s6 }
 0x1cc   : > { %s1963_s18 = smov %s1955_s7  ;;  %s1964_s19 = smov %s1956_s8 }

// kernel: conv_decoder3d_forward.7
= control target key start
LH: loop header
LB: loop body
LE: loop exit
PB: predicated region body
PF: predicated region fallthrough
CT: control target
= control target key end

     0   :  { %s1864_s12 = smov 0   ;;  %s1866_s13 = smov 0   ;;  %s2165_s0 = inlined_call_operand.vmem [shape: bf16[2,4,4,4,32], index: 0, kind: input, shape index: {}]   ;;  %s2166_s1 = inlined_call_operand.vmem [shape: bf16[2,2,16,32,32], index: 1, kind: input, shape index: {}]   ;;  %s2167_s2 = inlined_call_operand.vmem [shape: f32[1,64], index: 2, kind: input, shape index: {}]   ;;  %s2168_s3 = inlined_call_operand.vmem [shape: bf16[8,2,2,2,64], index: 3, kind: output, shape index: {}]  }
   0x1   :  { %s1868_s14 = smov 0   ;;  %s1870_s15 = smov 0  }
   0x2   :  { %s1872_s16 = smov 0   ;;  %s1874_s17 = smov 0  }
   0x3   :  { %s1876_s18 = smov 0   ;;  %s1878_s19 = smov 0  }
   0x4   :  { %s1880_s20 = smov 0   ;;  %s1882_s21 = smov 0  }
   0x5   :  { %s1884_s22 = smov 0   ;;  %s1886_s23 = smov 0  }
   0x6   :  { %s1888_s24 = smov 0  }
   0x7 LB: > { %2178 = sst [smem:[#allocation4_spill]] %s1816_s19  ;;  %s31_s25 = sadd.s32 1, %s1816_s19  ;;  %s1836_s24 = sphi %s1888_s24, %s13_s24   ;;  %s1832_s23 = sphi %s1886_s23, %s2204_s23   ;;  %s1828_s22 = sphi %s1884_s22, %s2203_s22   ;;  %s1824_s21 = sphi %s1882_s21, %s2202_s21   ;;  %s1820_s20 = sphi %s1880_s20, %s2201_s20   ;;  %s1816_s19 = sphi %s1878_s19, %s2200_s19   ;;  %s1812_s18 = sphi %s1876_s18, %s2209_s18   ;;  %s1808_s17 = sphi %s1874_s17, %s2208_s17   ;;  %s1804_s16 = sphi %s1872_s16, %s2197_s16   ;;  %s1800_s15 = sphi %s1870_s15, %s2207_s15   ;;  %s1796_s14 = sphi %s1868_s14, %s2195_s14   ;;  %s1792_s13 = sphi %s1866_s13, %s2206_s13   ;;  %s1788_s12 = sphi %s1864_s12, %s2205_s12  }
   0x8   : > { %2179 = sst [smem:[#allocation5_spill]] %s1820_s20  ;;  %p32_p0 = scmp.ge.s32.totalorder %s31_s25, 2 }
   0x9   : > { %2180 = sst [smem:[#allocation6_spill]] %s1824_s21  ;;  %s34_s26 = sadd.s32 1, %s1820_s20 }
   0xa   : > { %2181 = sst [smem:[#allocation7_spill]] %s1828_s22  ;;  %s2211_s25 = smov (%p32_p0, %s31_s25), 0 }
   0xb   : > { %2182 = sst [smem:[#allocation8_spill]] %s1832_s23  ;;  %s2213_s26 = smov (!%p32_p0, %s34_s26), %s1820_s20 }
   0xc   : > { %2183 = sst [smem:[#allocation9_spill]] %s2211_s25  ;;  %p36_p1 = scmp.ge.s32.totalorder %s2213_s26, 2 }
   0xd   : > { %s38_s27 = sadd.s32 1, %s1824_s21  ;;  %s1373_s28 = sadd.s32 4294967295, %s1836_s24  }
   0xe   : > { %s2215_s27 = smov (!%p36_p1, %s38_s27), %s1824_s21  ;;  %s42_s29 = sadd.s32 1, %s1828_s22 }
   0xf   : > { %p154_p2 = scmp.ne.s32.totalorder %s1792_s13, %s1788_s12  ;;  %p40_p3 = scmp.ge.s32.totalorder %s2215_s27, 2 }
  0x10   : > { %p155_p4 = scmp.eq.s32.totalorder %s1373_s28, 31  ;;  %p1381_p5 = scmp.ge.s32.totalorder %s1836_s24, 1 }
  0x11   : > { %p210_p6 = scmp.lt.s32.totalorder %s1836_s24, 33  ;;  %s46_s30 = sadd.s32 1, %s1832_s23 }
  0x12   : > { %s2217_s29 = smov (!%p40_p3, %s42_s29), %s1828_s22  ;;  %s1375_s4 = sshll.u32 %s1832_s23, 1 }
  0x13   : > { %p1947_p7 = por %p155_p4, %p154_p2  ;;  %p44_p8 = scmp.ge.s32.totalorder %s2217_s29, 2 }
  0x14   : > { %p1951_p9 = pnand %p1381_p5, %p210_p6  ;;  %s132_s7 = sadd.s32 %s1820_s20, %s1375_s4 }
  0x15   : > { %s2219_s30 = smov (!%p44_p8, %s46_s30), %s1832_s23  ;;  %s2221_s26 = smov (%p36_p1, %s2213_s26), 0 }
  0x16   : > { %2186 = sst [smem:[#allocation10_spill]] %s2221_s26  ;;  %p48_p10 = scmp.ge.s32.totalorder %s2219_s30, 2 }
  0x17   : > { %s1376_s8 = sshll.u32 %s132_s7, 1  ;;  %s2223_s27 = smov (%p40_p3, %s2215_s27), 0 }
  0x18   : > { %2187 = sst [smem:[#allocation11_spill]] %s2223_s27  ;;  %s2225_s30 = smov (%p48_p10, %s2219_s30), 0 }
  0x19   : > { %2188 = sst [smem:[#allocation12_spill]] %s2225_s30  ;;  %s2227_s29 = smov (%p44_p8, %s2217_s29), 0 }
  0x1a   : > { %2189 = sst [smem:[#allocation13_spill]] %s2227_s29  ;;  %s1377_s9 = sshll.u32 %s2225_s30, 1 }
  0x1b   : > { %s134_s10 = sadd.s32 %s1828_s22, %s1376_s8  ;;  %s136_s11 = sadd.s32 %s1377_s9, %s2221_s26 }
  0x1c   : > { %s1378_s28 = sshll.u32 %s136_s11, 1  ;;  %s140_s4 = ssub.s32 %s1824_s21, %s2223_s27 }
  0x1d   : > { %s138_s25 = sadd.s32 %s1378_s28, %s2227_s29  ;;  %s144_s19 = sadd.s32 1, %s1792_s13 }
  0x1e   : > { %s139_s23 = ssub.s32 %s134_s10, %s138_s25  ;;  %214 = sbr.rel (%p1951_p9) target bundleno = 456 (0x1c8), region = 32 }
  0x1f   : > { %s141_s20 = sor.u32 %s140_s4, %s139_s23  ;;  %s245_s8 = sand.u32 (!%p1951_p9), 1, %s1788_s12  }
  0x20   : > { %p142_p11 = scmp.eq.s32.totalorder %s141_s20, 0  ;;  %s248_s25 = sadd.s32 (!%p1951_p9), %s1800_s15, %s1808_s17 }
  0x21   : > { %s1382_s23 = sshll.u32 (!%p1951_p9), %s245_s8, 1  ;;  %s249_s9 = sadd.s32 (!%p1951_p9), %s1796_s14, %s248_s25 }
  0x22   : > { %s1975_s7 = scalar_select %p142_p11, %s1792_s13, %s144_s19  }
  0x23   : > { %p250_p12 = scmp.lt.s32.totalorder (!%p1951_p9), %s1812_s18, 1  ;;  %p252_p13 = scmp.lt.s32.totalorder (!%p1951_p9), %s249_s9, 3 }
  0x24   : > { %2190 = sst [smem:[#allocation14_spill]] %s1975_s7  ;;  %p261_p0 = scmp.lt.s32.totalorder (!%p1951_p9), %s1808_s17, 1 }
  0x25   : > { %s251_s19 = scalar_select %p250_p12, %s1812_s18, 1 }
  0x26   : > { %s2229_s9 = smov (!%p252_p13, %s249_s9), 3  ;;  %p263_p1 = scmp.lt.s32.totalorder %s1804_s16, 1 }
  0x27   : > { %s1384_s20 = sshll.u32 %s251_s19, 4  ;;  %s1383_s6 = sshll.u32 %s2229_s9, 2 }
  0x28   : > { %s256_s10 = sadd.s32 %s1384_s20, %s1383_s6  ;;  %s1995_s19 = scalar_lea.vmem [#allocation3], %s1382_s23 }
  0x29   : > { %s1385_s11 = sshll.u32 %s256_s10, 1  ;;  %p1389_p2 = scmp.ne.s32.totalorder %s1796_s14, 0 }
  0x2a   : > { %s258_s30 = scalar_lea.vmem %s2165_s0, %s1385_s11  ;;  %vm279_vm0 = vcmask (!%p1389_p2), 519168   ;;  %v1838_v0 = vmov (!%p1389_p2), 0.0  }
  0x2b   : > { %s262_s29 = scalar_select %p261_p0, %s1808_s17, 1 }
  0x2c   : > { %s264_s12 = scalar_select %p263_p1, %s1804_s16, 1 }
  0x2d   : > { %s1387_s27 = sshll.u32 %s262_s29, 7  ;;  %278 = sbr.rel (%p1389_p2) target bundleno = 52 (0x34), region = 36  ;;  %280 = vst.msk [vmem:[#allocation2] sm:$0xf] (!%p1389_p2), %vm279_vm0, %v1838_v0 }
  0x2e   : > { %s1386_s26 = sshll.u32 %s264_s12, 6 }
  0x2f   : > { %s267_s8 = sadd.s32 %s1387_s27, %s1386_s26 }
  0x30   : > { %s1388_s25 = sshll.u32 %s267_s8, 2 }
  0x31   : > { %s269_s7 = scalar_lea.vmem %s2166_s1, %s1388_s25 }
  0x34 PF: > { %s1500_s9 = sshll.u32 %s1796_s14, 7  ;;  %s1390_s29 = sshll.u32 %s1804_s16, 1  ;;  %v358_v1 = vlaneseq  ;;  %v1839_v2 = vmov 0.0   ;;  %vm1840_vm1 = vmmov 0   ;;  %v1841_v3 = vmov 1966171168  }
  0x35   : > { %1564 = vmatprep.subr.bf16.mxu0 %v1839_v2  ;;  %s2001_s26 = scalar_lea.vmem %s269_s7, %s1500_s9  ;;  %1568 = vmatprep.mubr.msk.bf16.mxu0 %vm1840_vm1, %v1839_v2  ;;  %s2005_s21 = scalar_lea.vmem %s258_s30, %s1390_s29  ;;  %v356_v4 = vunpack.c.l.s4 %v1841_v3  ;;  %vm313_vm2 = vsmask.f32 256  ;;  %vm314_vm3 = vsmask.f32 1284  ;;  %vm381_vm5 = vcmask 261120  }
  0x36   : > { %v1718_v5 = vld [vmem:[%s2001_s26 + $0x50] sm:$0xff]   ;;  %v2008_v6 = vshrl.u32 %v358_v1, 7  ;;  %1532 = vmatprep.subr.bf16.mxu1 %v1839_v2  ;;  %1536 = vmatprep.mubr.msk.bf16.mxu1 %vm1840_vm1, %v1839_v2  ;;  %v1719_v7 = vld [vmem:[%s2001_s26 + $0x58] sm:$0xff]   ;;  %vm315_vm4 = vmor %vm313_vm2, %vm314_vm3  ;;  %vm316_vm6 = vsmask.f32 2312  ;;  %s1842_s22 = smov 32  }
  0x37   : > { %v357_v8 = vunpack.c.0.s8 %v356_v4  ;;  %1565 = vmatpush3.bf16.msra.mxu0 %v1718_v5  ;;  %v1447_v9 = vld.sshfl [vmem:[%s2005_s21] sm:$0x10 pattern:$0x75316420]  ;;  %vm318_vm7 = vsmask.f32 3340  ;;  %vm317_vm8 = vmor %vm315_vm4, %vm316_vm6 }
  0x38   : > { %1566 = vmatprep.subr.bf16.mxu0 %v1839_v2  ;;  %v2020_v11 = vld.sshfl [vmem:[%s2005_s21 + $0x2] sm:$0x10 pattern:$0x75316420]  ;;  %vm320_vm9 = vsmask.f32 4368  ;;  %vm319_vm12 = vmor %vm317_vm8, %vm318_vm7 }
  0x39   : > { %v2017_v10 = vsub.s32 %v357_v8, %v2008_v6  ;;  %v1455_v12 = vcombine.high %v1447_v9, %v2020_v11  ;;  %v1720_v13 = vld [vmem:[%s2001_s26 + $0x40] sm:$0xff]   ;;  %vm322_vm10 = vsmask.f32 5396  ;;  %vm324_vm11 = vsmask.f32 6424  ;;  %vm321_vm14 = vmor %vm319_vm12, %vm320_vm9  ;;  %v1721_v23 = vld [vmem:[%s2001_s26 + $0x48] sm:$0xff]  }
  0x3a   : > { %vm326_vm13 = vsmask.f32 7452  ;;  %v1437_v15 = vld.sshfl [vmem:[%s2005_s21] sm:$0x11 pattern:$0x75316420]  ;;  %vm323_vm15 = vmor %vm321_vm14, %vm322_vm10 }
  0x3b   : > { %1567 = vmatpush3.bf16.msra.mxu0 %v1719_v7  ;;  %v785_v14 = vrot.slane %v1455_v12, %v2017_v10  ;;  %v1438_v17 = vld.sshfl [vmem:[%s2005_s21 + $0x2] sm:$0x11 pattern:$0x75316420]  ;;  %v715_v18 = vcombine.high %v1437_v15, %v1437_v15  ;;  %v725_v19 = vshrl.u32 %v1437_v15, 16  ;;  %vm325_vm0 = vmor %vm323_vm15, %vm324_vm11  ;;  %v1726_v33 = vld [vmem:[%s2001_s26 + $0x10] sm:$0xff]  }
  0x3c   : > { %1572 = vmatprep.subr.bf16.mxu0 %v1839_v2  ;;  %v723_v20 = vcombine.high %v1438_v17, %v1438_v17  ;;  %v734_v21 = vshrl.u32 %v1438_v17, 16  ;;  %vm2034_vm2 = vmor %vm325_vm0, %vm326_vm13  ;;  %v1465_v26 = vld.sshfl [vmem:[%s2005_s21 + $0x4] sm:$0x11 pattern:$0x75316420]  ;;  %1533 = vmatpush3.bf16.msra.mxu1 %v1726_v33  ;;  %v1727_v35 = vld [vmem:[%s2001_s26 + $0x18] sm:$0xff]  }
  0x3d   : > { %v792_v16 = vrot.slane %v785_v14, %v2017_v10  ;;  %v730_v22 = vshll.u32 %v715_v18, 16  ;;  %v937_v28 = vcombine.high %v1465_v26, %v1465_v26  ;;  %v948_v31 = vshrl.u32 %v1465_v26, 16  ;;  %1534 = vmatprep.subr.bf16.mxu1 %v1839_v2  ;;  %v283_v37 = vld [vmem:[%s2005_s21] sm:$0x1]  ;;  %v284_v38 = vld [vmem:[%s2005_s21 + $0x2] sm:$0x1] }
  0x3e   : > { %v739_v25 = vshll.u32 %v723_v20, 16  ;;  %v1722_v39 = vld [vmem:[%s2001_s26 + $0x60] sm:$0xff]   ;;  %v427_v41 = vcombine.low %v283_v37, %v284_v38  ;;  %v1723_v44 = vld [vmem:[%s2001_s26 + $0x68] sm:$0xff]   ;;  %v1724_v54 = vld [vmem:[%s2001_s26 + $0x70] sm:$0xff]   ;;  %vm1140_vm3 = vcmask 519424   ;;  %p1491_p3 = scmp.ne.s32.totalorder %s1796_s14, 1 }
  0x3f   : > { %1569 = vmatmul.mubr.msk.bf16.vlgmr.msra.gmra.mrb[0].mxu0 %vm381_vm5, %v792_v16  ;;  %v732_v27 = vsel %vm2034_vm2, %v725_v19, %v730_v22  ;;  %v953_v32 = vshll.u32 %v937_v28, 16  ;;  %v1728_v42 = vld [vmem:[%s2001_s26] sm:$0xff]   ;;  %v1729_v46 = vld [vmem:[%s2001_s26 + $0x8] sm:$0xff]   ;;  %v1725_v59 = vld [vmem:[%s2001_s26 + $0x78] sm:$0xff]   ;;  %v1843_v33 = vmov (!%p1491_p3), 1983009808  }
  0x40   : > { %1573 = vmatpush3.bf16.msra.mxu0 %v1720_v13  ;;  %1576 = vmatprep.mubr.msk.bf16.mxu0 %vm1840_vm1, %v1839_v2  ;;  %v741_v29 = vsel %vm2034_vm2, %v734_v21, %v739_v25  ;;  %v434_v45 = vrot.slane %v427_v41, %v2017_v10  ;;  %v1411_v47 = vld [vmem:[%s2005_s21 + $0x2] sm:$0x1]  ;;  %v1412_v48 = vld [vmem:[%s2005_s21 + $0x4] sm:$0x1]  ;;  %v1731_v57 = vld [vmem:[%s2001_s26 + $0x28] sm:$0xff]  }
  0x41   : > { %1574 = vmatprep.subr.bf16.mxu0 %v1839_v2  ;;  %v848_v30 = vcombine.low %v732_v27, %v741_v29  ;;  %v955_v40 = vsel %vm2034_vm2, %v948_v31, %v953_v32  ;;  %1535 = vmatpush3.bf16.msra.mxu1 %v1727_v35  ;;  %v512_v51 = vcombine.low %v1411_v47, %v1412_v48  ;;  %v1730_v52 = vld [vmem:[%s2001_s26 + $0x20] sm:$0xff]   ;;  %v1732_v61 = vld [vmem:[%s2001_s26 + $0x30] sm:$0xff]   ;;  %v1733_v63 = vld [vmem:[%s2001_s26 + $0x38] sm:$0xff]  }
  0x42   : > { %1540 = vmatprep.subr.bf16.mxu1 %v1839_v2  ;;  %v964_v43 = vcombine.low %v741_v29, %v955_v40  ;;  %v441_v50 = vrot.slane %v434_v45, %v2017_v10  ;;  %v1480_v55 = vld.sshfl [vmem:[%s2005_s21 + $0x4] sm:$0x10 pattern:$0x75316420]  ;;  %v700_v20 = vld [vmem:[#allocation2] sm:$0xf] }
  0x43   : > { %v855_v34 = vrot.slane %v848_v30, %v2017_v10  ;;  %v519_v56 = vrot.slane %v512_v51, %v2017_v10  ;;  %v1487_v58 = vcombine.high %v2020_v11, %v1480_v55  ;;  %v1492_v31 = vld [vmem:[%s2167_s2] ss:$0 sm:$0xff] (!%p1491_p3) }
  0x44   : > { %1575 = vmatpush3.bf16.msra.mxu0 %v1721_v23  ;;  %v971_v49 = vrot.slane %v964_v43, %v2017_v10 }
  0x45   : > { %1580 = vmatprep.subr.bf16.mxu0 %v1839_v2  ;;  %v862_v36 = vrot.slane %v855_v34, %v2017_v10  ;;  %v526_v60 = vrot.slane %v519_v56, %v2017_v10  ;;  %v1070_v62 = vrot.slane %v1487_v58, %v2017_v10  ;;  %v1160_v34 = vunpack.c.l.s4 (!%p1491_p3), %v1843_v33 }
  0x46   : > { %v978_v53 = vrot.slane %v971_v49, %v2017_v10 }
  0x47   : > { %1537 = vmatmul.mubr.msk.bf16.vlgmr.msra.gmra.mrb[0].mxu1 %vm381_vm5, %v862_v36  ;;  %v1077_v0 = vrot.slane %v1070_v62, %v2017_v10 }
  0x48   : > { %1541 = vmatpush3.bf16.msra.mxu1 %v1728_v42  ;;  %1544 = vmatprep.mubr.msk.bf16.mxu1 %vm1840_vm1, %v1839_v2 }
  0x49   : > { %1542 = vmatprep.subr.bf16.mxu1 %v1839_v2 }
  0x4b   : > { %1577 = vmatmul.mubr.msk.bf16.vlgmr.msra.gmra.mrb[0].mxu0 %vm381_vm5, %v862_v36  ;;  %v1161_v36 = vunpack.c.0.s8 (!%p1491_p3), %v1160_v34 }
  0x4c   : > { %1581 = vmatpush3.bf16.msra.mxu0 %v1722_v39  ;;  %1584 = vmatprep.mubr.msk.bf16.mxu0 %vm1840_vm1, %v1839_v2 }
  0x4d   : > { %1582 = vmatprep.subr.bf16.mxu0 %v1839_v2  ;;  %1543 = vmatpush3.bf16.msra.mxu1 %v1729_v46  ;;  %v1164_v38 = vsub.s32 (!%p1491_p3), %v1161_v36, %v2008_v6 }
  0x4e   : > { %1548 = vmatprep.subr.bf16.mxu1 %v1839_v2 }
  0x50   : > { %1583 = vmatpush3.bf16.msra.mxu0 %v1723_v44  ;;  %1545 = vmatmul.mubr.msk.bf16.vlgmr.msra.gmra.mrb[4].mxu1 %vm381_vm5, %v441_v50 }
  0x51   : > { %1588 = vmatprep.subr.bf16.mxu0 %v1839_v2  ;;  %1549 = vmatpush3.bf16.msra.mxu1 %v1730_v52 }
  0x52   : > { %1552 = vmatprep.mubr.msk.bf16.mxu1 %vm1840_vm1, %v1839_v2  ;;  %1550 = vmatprep.subr.bf16.mxu1 %v1839_v2 }
  0x55   : > { %1551 = vmatpush3.bf16.msra.mxu1 %v1731_v57 }
  0x56   : > { %1556 = vmatprep.subr.bf16.mxu1 %v1839_v2 }
  0x57   : > { %1585 = vmatmul.mubr.msk.bf16.vlgmr.msra.gmra.mrb[0].mxu0 %vm381_vm5, %v978_v53 }
  0x58   : > { %1589 = vmatpush3.bf16.msra.mxu0 %v1724_v54  ;;  %1592 = vmatprep.mubr.msk.bf16.mxu0 %vm1840_vm1, %v1839_v2 }
  0x59   : > { %1590 = vmatprep.subr.bf16.mxu0 %v1839_v2  ;;  %1553 = vmatmul.mubr.msk.bf16.vlgmr.msra.gmra.mrb[8].mxu1 %vm381_vm5, %v526_v60 }
  0x5a   : > { %1557 = vmatpush3.bf16.msra.mxu1 %v1732_v61  ;;  %1560 = vmatprep.mubr.msk.bf16.mxu1 %vm1840_vm1, %v1839_v2  ;;  %vm702_vm1 = vcmask 257024  }
  0x5b   : > { %1558 = vmatprep.subr.bf16.mxu1 %v1839_v2 }
  0x5c   : > { %1591 = vmatpush3.bf16.msra.mxu0 %v1725_v59 }
  0x5e   : > { %1559 = vmatpush3.bf16.msra.mxu1 %v1733_v63 }
  0x61   : > { %1561 = vmatmul.mubr.msk.bf16.vlgmr.msra.gmra.mrb[12].mxu1 %vm381_vm5, %v978_v53 }
  0x63   : > { %1593 = vmatmul.mubr.msk.bf16.vlgmr.msra.gmra.mrb[0].mxu0 %vm381_vm5, %v1077_v0  ;;  %vm1171_vm5 = vcmask (!%p1491_p3), 516096  }
 0x11a   : > { %v419_v1 = vpop.f32.mrb[0].mxu1 }
 0x11b   : > { %v1538_v3 = vpop.f32.mrb[1].mxu1 }
 0x11c   : > { %v422_v4 = vpop.f32.mrb[2].mxu1 }
 0x11d   : > { %v1539_v5 = vpop.f32.mrb[3].mxu1 }
 0x123   : > { %v491_v7 = vpop.f32.mrb[4].mxu1 }
 0x124   : > { %v492_v8 = vadd.f32 %v491_v7, %v419_v1  ;;  %v1546_v9 = vpop.f32.mrb[5].mxu1 }
 0x125   : > { %v494_v11 = vpop.f32.mrb[6].mxu1 }
 0x126   : > { %v1547_v12 = vpop.f32.mrb[7].mxu1 }
 0x12c   : > { %v576_v13 = vpop.f32.mrb[8].mxu1 }
 0x12d   : > { %v582_v14 = vadd.f32 %v576_v13, %v492_v8  ;;  %v1554_v15 = vpop.f32.mrb[9].mxu1 }
 0x12e   : > { %v579_v10 = vpop.f32.mrb[10].mxu1 }
 0x12f   : > { %v1555_v16 = vpop.f32.mrb[11].mxu1 }
 0x134   : > { %v693_v19 = vpop.f32.mrb[12].mxu1 }
 0x135   : > { %v699_v22 = vadd.f32 %v693_v19, %v582_v14  ;;  %v1562_v23 = vpop.f32.mrb[13].mxu1 }
 0x136   : > { %v1127_v2 = vpop.f32.mrb[0].mxu0  ;;  %v696_v24 = vpop.f32.mrb[14].mxu1 }
 0x137   : > { %v1594_v17 = vpop.f32.mrb[1].mxu0  ;;  %1136 = vrot.lane.b32.xlu0 %v1127_v2, %s1842_s22  ;;  %v701_v25 = vadd.f32 %v700_v20, %v699_v22  ;;  %v1563_v26 = vpop.f32.mrb[15].mxu1 }
 0x138   : > { %v1130_v18 = vpop.f32.mrb[2].mxu0 }
 0x139   : > { %v1595_v21 = vpop.f32.mrb[3].mxu0  ;;  %703 = vst.msk [vmem:[#allocation2] sm:$0xf] %vm702_vm1, %v701_v25 }
 0x140   : > { %v1134_v27 = vld [vmem:[#allocation2] sm:$0xf] }
 0x1a6   : > { %1145 = sbr.rel (%p1491_p3) target bundleno = 448 (0x1c0), region = 40 }
 0x1a9   : > { %v1137_v28 = vpop.permute.xlu0 %1136 }
 0x1aa   : > { %v1139_v29 = vadd.f32 %v1137_v28, %v1134_v27 }
 0x1ac   : > { %1141 = vst.msk [vmem:[#allocation2] sm:$0xf] %vm1140_vm3, %v1139_v29 }
 0x1b3   : > { %v1146_v30 = vld [vmem:[#allocation2] sm:$0xf] }
 0x1b4   : > { %v1154_v32 = vadd.f32 %v1492_v31, %v1146_v30 }
 0x1b6   : > { %vm1155_vm4 = vcmp.ge.f32.partialorder %v1154_v32, 0.0  ;;  %v1156_v35 = vmul.f32 0.2, %v1154_v32 }
 0x1b8   : > { %v1157_v37 = vsel %vm1155_vm4, %v1154_v32, %v1156_v35 }
 0x1b9   : > { %v1165_v39 = vrot.slane %v1157_v37, %v1164_v38 }
 0x1bb   : > { %v1169_v40 = vpack.c.bf16 %v1165_v39, %v1165_v39  ;;  %v1166_v41 = vcombine.high %v1165_v39, %v1165_v39 }
 0x1bd   : > { %1172 = vst.msk [vmem:[%s1995_s19] sm:$0x1] %vm1171_vm5, %v1169_v40  ;;  %v1170_v42 = vpack.c.bf16 %v1166_v41, %v1166_v41 }
 0x1bf   : > { %1173 = vst.msk [vmem:[%s1995_s19 + $0x1] sm:$0x1] %vm1171_vm5, %v1170_v42 }
 0x1c0 PF: > { %1180 = sbr.rel (!%p1947_p7) target bundleno = 456 (0x1c8), region = 44  ;;  %s1494_s14 = sshll.u32 (%p1947_p7), %s1812_s18, 1 }
 0x1c1   : > { %s1182_s7 = sadd.s32 (%p1947_p7), %s1800_s15, %s1494_s14 }
 0x1c2   : > { %s1495_s23 = sshll.u32 (%p1947_p7), %s1182_s7, 1 }
 0x1c3   : > { %s1184_s20 = sadd.s32 (%p1947_p7), %s1808_s17, %s1495_s23 }
 0x1c4   : > { %s1496_s6 = sshll.u32 (%p1947_p7), %s1184_s20, 2  ;;  %v1203_v6 = vld [vmem:[%s1995_s19] sm:$0x1] (%p1947_p7) }
 0x1c5   : > { %s1186_s10 = sadd.s32 (%p1947_p7), %s1804_s16, %s1496_s6 }
 0x1c6   : > { %v1205_v43 = vld [vmem:[%s1995_s19 + $0x1] sm:$0x1] (%p1947_p7)  ;;  %s1187_s4 = scalar_lea.vmem (%p1947_p7), %s2168_s3, %s1186_s10 }
 0x1c7   : > { %1204 = vst [vmem:[%s1187_s4] sm:$0x1] %v1203_v6  ;;  %1206 = vst [vmem:[%s1187_s4 + $0x2] sm:$0x1] %v1205_v43 }
 0x1c8 PF: > { %s13_s24 = sadd.s32 1, %s1836_s24   ;;  %s2194_s15 = sld [smem:[#allocation14_spill]] }
 0x1c9   : > { %p2121_p4 = scmp.ge.s32.totalorder %s13_s24, 34   ;;  %s2195_s14 = sld [smem:[#allocation4_spill]] }
 0x1ca   : > { %s2196_s17 = sld [smem:[#allocation5_spill]]  ;;  %s2197_s16 = sld [smem:[#allocation6_spill]] }
 0x1cb   : > { %s2198_s18 = sld [smem:[#allocation7_spill]]  ;;  %s2199_s8 = sld [smem:[#allocation8_spill]] }
 0x1cc   : > { %s2200_s19 = sld [smem:[#allocation9_spill]]  ;;  %s2201_s20 = sld [smem:[#allocation10_spill]] }
 0x1cd   : > { %s2202_s21 = sld [smem:[#allocation11_spill]]  ;;  %s2203_s22 = sld [smem:[#allocation13_spill]] }
 0x1ce   : > { %s2204_s23 = sld [smem:[#allocation12_spill]]  ;;  %s2205_s12 = smov %s1792_s13 }
 0x1cf   : > { %s2206_s13 = smov %s2194_s15  ;;  %12 = sbr.rel (!%p2121_p4) target bundleno = 7 (0x7), region = 117 }
 0x1d0   : > { %s2207_s15 = smov %s2196_s17 }
 0x1d1   : > { %s2208_s17 = smov %s2198_s18  ;;  %s2209_s18 = smov %s2199_s8 }

// kernel: conv_decoder3d_forward.8
= control target key start
LH: loop header
LB: loop body
LE: loop exit
PB: predicated region body
PF: predicated region fallthrough
CT: control target
= control target key end

     0   :  { %s2261_s12 = smov 0   ;;  %s2263_s13 = smov 0   ;;  %s2595_s0 = inlined_call_operand.vmem [shape: bf16[2,6,6,6,32], index: 0, kind: input, shape index: {}]   ;;  %s2596_s1 = inlined_call_operand.vmem [shape: bf16[2,2,16,32,16], index: 1, kind: input, shape index: {}]   ;;  %s2597_s2 = inlined_call_operand.vmem [shape: f32[1,32], index: 2, kind: input, shape index: {}]   ;;  %s2598_s3 = inlined_call_operand.vmem [shape: bf16[16,4,2,4,32], index: 3, kind: output, shape index: {}]  }
   0x1   :  { %s2265_s14 = smov 0   ;;  %s2267_s15 = smov 0  }
   0x2   :  { %s2269_s16 = smov 0   ;;  %s2271_s17 = smov 0  }
   0x3   :  { %s2273_s18 = smov 0   ;;  %s2275_s19 = smov 0  }
   0x4   :  { %s2277_s20 = smov 0   ;;  %s2279_s21 = smov 0  }
   0x5   :  { %s2281_s22 = smov 0   ;;  %s2283_s23 = smov 0  }
   0x6   :  { %s2285_s24 = smov 0  }
   0x7 LB: > { %2609 = sst [smem:[#allocation4_spill]] %s2190_s13  ;;  %s31_s25 = sadd.s32 1, %s2214_s19  ;;  %s2234_s24 = sphi %s2285_s24, %s13_s24   ;;  %s2230_s23 = sphi %s2283_s23, %s2641_s23   ;;  %s2226_s22 = sphi %s2281_s22, %s2640_s22   ;;  %s2222_s21 = sphi %s2279_s21, %s2639_s21   ;;  %s2218_s20 = sphi %s2277_s20, %s2638_s20   ;;  %s2214_s19 = sphi %s2275_s19, %s2637_s19   ;;  %s2210_s18 = sphi %s2273_s18, %s2646_s18   ;;  %s2206_s17 = sphi %s2271_s17, %s2645_s17   ;;  %s2202_s16 = sphi %s2269_s16, %s2644_s16   ;;  %s2198_s15 = sphi %s2267_s15, %s2643_s15   ;;  %s2194_s14 = sphi %s2265_s14, %s2632_s14   ;;  %s2190_s13 = sphi %s2263_s13, %s2631_s13   ;;  %s2186_s12 = sphi %s2261_s12, %s2630_s12  }
   0x8   : > { %2610 = sst [smem:[#allocation5_spill]] %s2214_s19  ;;  %p32_p0 = scmp.ge.s32.totalorder %s31_s25, 2 }
   0x9   : > { %2611 = sst [smem:[#allocation6_spill]] %s2218_s20  ;;  %s34_s26 = sadd.s32 1, %s2218_s20 }
   0xa   : > { %2612 = sst [smem:[#allocation7_spill]] %s2222_s21  ;;  %s2648_s25 = smov (%p32_p0, %s31_s25), 0 }
   0xb   : > { %2613 = sst [smem:[#allocation8_spill]] %s2226_s22  ;;  %s2650_s26 = smov (!%p32_p0, %s34_s26), %s2218_s20 }
   0xc   : > { %2614 = sst [smem:[#allocation9_spill]] %s2230_s23  ;;  %p36_p1 = scmp.ge.s32.totalorder %s2650_s26, 4 }
   0xd   : > { %2615 = sst [smem:[#allocation10_spill]] %s2648_s25  ;;  %s38_s27 = sadd.s32 1, %s2222_s21 }
   0xe   : > { %s1745_s28 = sadd.s32 4294967295, %s2234_s24   ;;  %s2652_s27 = smov (!%p36_p1, %s38_s27), %s2222_s21 }
   0xf   : > { %s42_s29 = sadd.s32 1, %s2226_s22  ;;  %p154_p2 = scmp.ne.s32.totalorder %s2190_s13, %s2186_s12 }
  0x10   : > { %p40_p3 = scmp.ge.s32.totalorder %s2652_s27, 2  ;;  %p155_p4 = scmp.eq.s32.totalorder %s1745_s28, 63 }
  0x11   : > { %p1753_p5 = scmp.ge.s32.totalorder %s2234_s24, 1  ;;  %p210_p6 = scmp.lt.s32.totalorder %s2234_s24, 65 }
  0x12   : > { %s46_s30 = sadd.s32 1, %s2230_s23  ;;  %s2654_s29 = smov (!%p40_p3, %s42_s29), %s2226_s22 }
  0x13   : > { %s1747_s4 = sshll.u32 %s2230_s23, 2  ;;  %p2344_p7 = por %p155_p4, %p154_p2 }
  0x14   : > { %p44_p8 = scmp.ge.s32.totalorder %s2654_s29, 2  ;;  %p2348_p9 = pnand %p1753_p5, %p210_p6 }
  0x15   : > { %s132_s7 = sadd.s32 %s2218_s20, %s1747_s4  ;;  %s2658_s26 = smov (%p36_p1, %s2650_s26), 0 }
  0x16   : > { %s2656_s30 = smov (!%p44_p8, %s46_s30), %s2230_s23  ;;  %2618 = sst [smem:[#allocation11_spill]] %s2658_s26 }
  0x17   : > { %p48_p10 = scmp.ge.s32.totalorder %s2656_s30, 2  ;;  %s1748_s8 = sshll.u32 %s132_s7, 1 }
  0x18   : > { %s2660_s27 = smov (%p40_p3, %s2652_s27), 0  ;;  %s2664_s29 = smov (%p44_p8, %s2654_s29), 0 }
  0x19   : > { %2619 = sst [smem:[#allocation12_spill]] %s2660_s27  ;;  %s2662_s30 = smov (%p48_p10, %s2656_s30), 0 }
  0x1a   : > { %2620 = sst [smem:[#allocation13_spill]] %s2662_s30  ;;  %s1749_s9 = sshll.u32 %s2662_s30, 2 }
  0x1b   : > { %2621 = sst [smem:[#allocation14_spill]] %s2664_s29  ;;  %s134_s10 = sadd.s32 %s2226_s22, %s1748_s8 }
  0x1c   : > { %s136_s11 = sadd.s32 %s1749_s9, %s2658_s26  ;;  %s140_s4 = ssub.s32 %s2222_s21, %s2660_s27 }
  0x1d   : > { %s1750_s28 = sshll.u32 %s136_s11, 1  ;;  %s144_s19 = sadd.s32 1, %s2190_s13 }
  0x1e   : > { %s138_s25 = sadd.s32 %s1750_s28, %s2664_s29  ;;  %s245_s8 = sand.u32 (!%p2348_p9), 1, %s2186_s12  }
  0x1f   : > { %s139_s23 = ssub.s32 %s134_s10, %s138_s25  ;;  %214 = sbr.rel (%p2348_p9) target bundleno = 468 (0x1d4), region = 32 }
  0x20   : > { %s141_s20 = sor.u32 %s140_s4, %s139_s23  ;;  %s248_s9 = sadd.s32 (!%p2348_p9), %s2198_s15, %s2206_s17 }
  0x21   : > { %p142_p11 = scmp.eq.s32.totalorder %s141_s20, 0  ;;  %s1754_s23 = sshll.u32 (!%p2348_p9), %s245_s8, 3 }
  0x22   : > { %s249_s25 = sadd.s32 (!%p2348_p9), %s2194_s14, %s248_s9  ;;  %p250_p12 = scmp.lt.s32.totalorder (!%p2348_p9), %s2210_s18, 1 }
  0x23   : > { %s2372_s7 = scalar_select %p142_p11, %s2190_s13, %s144_s19  }
  0x24   : > { %p252_p13 = scmp.lt.s32.totalorder (!%p2348_p9), %s249_s25, 5  ;;  %p261_p0 = scmp.lt.s32.totalorder (!%p2348_p9), %s2206_s17, 1 }
  0x25   : > { %2622 = sst [smem:[#allocation15_spill]] %s2372_s7  ;;  %p263_p1 = scmp.lt.s32.totalorder (!%p2348_p9), %s2202_s16, 1 }
  0x26   : > { %s251_s19 = scalar_select %p250_p12, %s2210_s18, 1 }
  0x27   : > { %s2666_s25 = smov (!%p252_p13, %s249_s25), 5  ;;  %s2392_s13 = scalar_lea.vmem [#allocation3], %s1754_s23 }
  0x28   : > { %s1998_s20 = smul.u32 36, %s251_s19  ;;  %p1759_p2 = scmp.ne.s32.totalorder %s2194_s14, 0 }
  0x29   : > { %s1997_s6 = smul.u32 6, %s2666_s25  ;;  %vm279_vm0 = vcmask (!%p1759_p2), 261120   ;;  %v2236_v0 = vmov (!%p1759_p2), 0.0  }
  0x2a   : > { %s262_s10 = scalar_select %p261_p0, %s2206_s17, 1 }
  0x2b   : > { %s256_s11 = sadd.s32 %s1998_s20, %s1997_s6  ;;  %280 = vst.msk [vmem:[#allocation2] sm:$0xff] (!%p1759_p2), %vm279_vm0, %v2236_v0  ;;  %281 = vst.msk [vmem:[#allocation2 + $0x8] sm:$0xff] (!%p1759_p2), %vm279_vm0, %v2236_v0 }
  0x2c   : > { %s1755_s28 = sshll.u32 %s256_s11, 2  ;;  %s1757_s12 = sshll.u32 %s262_s10, 7 }
  0x2d   : > { %s258_s29 = scalar_lea.vmem %s2595_s0, %s1755_s28  ;;  %278 = sbr.rel (%p1759_p2) target bundleno = 52 (0x34), region = 36 }
  0x2e   : > { %s264_s27 = scalar_select %p263_p1, %s2202_s16, 1 }
  0x30   : > { %s1756_s26 = sshll.u32 %s264_s27, 6 }
  0x31   : > { %s267_s8 = sadd.s32 %s1757_s12, %s1756_s26 }
  0x32   : > { %s1758_s9 = sshll.u32 %s267_s8, 2 }
  0x33   : > { %s269_s7 = scalar_lea.vmem %s2596_s1, %s1758_s9 }
  0x34 PF: > { %s1889_s30 = sshll.u32 %s2194_s14, 7  ;;  %s1760_s27 = sshll.u32 %s2202_s16, 2  ;;  %v2237_v1 = vmov 0.0   ;;  %vm2238_vm1 = vmmov 0   ;;  %v2239_v2 = vmov 1983009808   ;;  %v412_v4 = vlaneseq }
  0x35   : > { %1953 = vmatprep.subr.bf16.mxu0 %v2237_v1  ;;  %s2398_s26 = scalar_lea.vmem %s269_s7, %s1889_s30  ;;  %1957 = vmatprep.mubr.msk.bf16.mxu0 %vm2238_vm1, %v2237_v1  ;;  %s2402_s21 = scalar_lea.vmem %s258_s29, %s1760_s27  ;;  %v410_v3 = vunpack.c.l.s4 %v2239_v2  ;;  %vm982_vm2 = vcmask 1040384   ;;  %vm983_vm3 = vcmask 1042434   ;;  %vm985_vm4 = vcmask 1044484  }
  0x36   : > { %v2108_v5 = vld [vmem:[%s2398_s26 + $0x50] sm:$0xff]   ;;  %1921 = vmatprep.subr.bf16.mxu1 %v2237_v1  ;;  %1925 = vmatprep.mubr.msk.bf16.mxu1 %vm2238_vm1, %v2237_v1  ;;  %v2109_v6 = vld [vmem:[%s2398_s26 + $0x58] sm:$0xff]   ;;  %v1821_v7 = vld.sshfl [vmem:[%s2402_s21] sm:$0x12 pattern:$0x76325410] }
  0x37   : > { %1954 = vmatpush3.bf16.msra.mxu0 %v2108_v5  ;;  %vm984_vm5 = vmor %vm982_vm2, %vm983_vm3  ;;  %vm987_vm6 = vcmask 1046534   ;;  %v411_v8 = vunpack.c.0.s8 %v410_v3  ;;  %v413_v9 = vshrl.u32 %v412_v4, 7  ;;  %v1822_v10 = vld.sshfl [vmem:[%s2402_s21 + $0x4] sm:$0x12 pattern:$0x76325410]  ;;  %v957_v11 = vcombine.high %v1821_v7, %v1821_v7 }
  0x38   : > { %1955 = vmatprep.subr.bf16.mxu0 %v2237_v1  ;;  %vm986_vm7 = vmor %vm984_vm5, %vm985_vm4  ;;  %v1825_v12 = vrot.slane %v1821_v7, 9  ;;  %v1823_v13 = vld.sshfl [vmem:[%s2402_s21 + $0x8] sm:$0x12 pattern:$0x76325410]  ;;  %v965_v14 = vcombine.high %v1822_v10, %v1822_v10  ;;  %v1826_v16 = vrot.slane %v1822_v10, 9 }
  0x39   : > { %vm2413_vm8 = vmor %vm986_vm7, %vm987_vm6  ;;  %v1824_v17 = vld.sshfl [vmem:[%s2402_s21 + $0xc] sm:$0x12 pattern:$0x76325410]  ;;  %v973_v18 = vcombine.high %v1823_v13, %v1823_v13  ;;  %v991_v19 = vrot.slane %v957_v11, 7  ;;  %v1827_v20 = vrot.slane %v1823_v13, 9  ;;  %v2419_v24 = vsub.s32 %v411_v8, %v413_v9 }
  0x3a   : > { %v981_v21 = vcombine.high %v1824_v17, %v1824_v17  ;;  %v995_v22 = vrot.slane %v965_v14, 7  ;;  %v1828_v23 = vrot.slane %v1824_v17, 9  ;;  %vm436_vm9 = vcmask 261120   ;;  %v2110_v38 = vld [vmem:[%s2398_s26 + $0x40] sm:$0xff]   ;;  %v2116_v53 = vld [vmem:[%s2398_s26 + $0x10] sm:$0xff]   ;;  %v2117_v62 = vld [vmem:[%s2398_s26 + $0x18] sm:$0xff]  }
  0x3b   : > { %1956 = vmatpush3.bf16.msra.mxu0 %v2109_v6  ;;  %v992_v25 = vsel %vm2413_vm8, %v1825_v12, %v991_v19  ;;  %v999_v26 = vrot.slane %v973_v18, 7  ;;  %vm336_vm10 = vsmask.f32 1280  ;;  %vm337_vm11 = vsmask.f32 3336  ;;  %1922 = vmatpush3.bf16.msra.mxu1 %v2116_v53  ;;  %v2111_v4 = vld [vmem:[%s2398_s26 + $0x48] sm:$0xff]  }
  0x3c   : > { %1961 = vmatprep.subr.bf16.mxu0 %v2237_v1  ;;  %v2425_v27 = vsel %vm2413_vm8, %v1826_v16, %v995_v22  ;;  %v1003_v28 = vrot.slane %v981_v21, 7  ;;  %vm339_vm12 = vsmask.f32 5392  ;;  %vm341_vm13 = vsmask.f32 7448  ;;  %vm338_vm14 = vmor %vm336_vm10, %vm337_vm11  ;;  %1923 = vmatprep.subr.bf16.mxu1 %v2237_v1  ;;  %v2119_v53 = vld [vmem:[%s2398_s26 + $0x8] sm:$0xff]  }
  0x3d   : > { %v2429_v29 = vsel %vm2413_vm8, %v1827_v20, %v999_v26  ;;  %v1013_v30 = vcombine.low %v992_v25, %v2425_v27  ;;  %v1811_v32 = vld.sshfl [vmem:[%s2402_s21] sm:$0x13 pattern:$0x76325410]  ;;  %vm2446_vm15 = vmor %vm338_vm14, %vm339_vm12  ;;  %v2114_v63 = vld [vmem:[%s2398_s26 + $0x70] sm:$0xff]   ;;  %s2240_s22 = smov 16  }
  0x3e   : > { %v2434_v31 = vsel %vm2413_vm8, %v1828_v23, %v1003_v28  ;;  %v1812_v35 = vld.sshfl [vmem:[%s2402_s21 + $0x4] sm:$0x13 pattern:$0x76325410]  ;;  %v853_v36 = vcombine.high %v1811_v32, %v1811_v32  ;;  %v879_v37 = vshrl.u32 %v1811_v32, 16  ;;  %v882_v41 = vshll.u32 %v1811_v32, 16  ;;  %vm2456_vm0 = vmor %vm2446_vm15, %vm341_vm13 }
  0x3f   : > { %v1014_v33 = vcombine.low %v2429_v29, %v2434_v31  ;;  %v1021_v34 = vrot.slane %v1013_v30, %v2419_v24  ;;  %v1813_v39 = vld.sshfl [vmem:[%s2402_s21 + $0x8] sm:$0x13 pattern:$0x76325410]  ;;  %v861_v40 = vcombine.high %v1812_v35, %v1812_v35  ;;  %v893_v42 = vshrl.u32 %v1812_v35, 16  ;;  %1924 = vmatpush3.bf16.msra.mxu1 %v2117_v62  ;;  %v2115_v15 = vld [vmem:[%s2398_s26 + $0x78] sm:$0xff]  }
  0x40   : > { %v1814_v44 = vld.sshfl [vmem:[%s2402_s21 + $0xc] sm:$0x13 pattern:$0x76325410]  ;;  %v869_v45 = vcombine.high %v1813_v39, %v1813_v39  ;;  %v881_v46 = vrot.slane %v879_v37, 6  ;;  %v888_v47 = vshll.u32 %v853_v36, 16  ;;  %1929 = vmatprep.subr.bf16.mxu1 %v2237_v1 }
  0x41   : > { %v1028_v43 = vrot.slane %v1014_v33, %v2419_v24  ;;  %v877_v49 = vcombine.high %v1814_v44, %v1814_v44  ;;  %v884_v50 = vrot.slane %v882_v41, 7  ;;  %v895_v51 = vrot.slane %v893_v42, 6  ;;  %v1848_v17 = vld.sshfl [vmem:[%s2402_s21 + $0x10] sm:$0x13 pattern:$0x76325410] }
  0x42   : > { %v896_v52 = vshll.u32 %v1812_v35, 16  ;;  %v890_v55 = vrot.slane %v888_v47, 7  ;;  %v902_v56 = vshll.u32 %v861_v40, 16  ;;  %v907_v57 = vshrl.u32 %v1813_v39, 16  ;;  %v2112_v40 = vld [vmem:[%s2398_s26 + $0x60] sm:$0xff]   ;;  %p1879_p3 = scmp.ne.s32.totalorder %s2194_s14, 1 }
  0x43   : > { %v1029_v54 = vcombine.low %v1021_v34, %v1028_v43  ;;  %v885_v58 = vor.u32 %v884_v50, %v881_v46  ;;  %v910_v60 = vshll.u32 %v1813_v39, 16  ;;  %v916_v61 = vshll.u32 %v869_v45, 16  ;;  %v1865_v43 = vld.sshfl [vmem:[%s2402_s21 + $0x10] sm:$0x12 pattern:$0x76325410] }
  0x44   : > { %v898_v59 = vrot.slane %v896_v52, 7  ;;  %v909_v0 = vrot.slane %v907_v57, 6  ;;  %v921_v2 = vshrl.u32 %v1814_v44, 16  ;;  %v924_v3 = vshll.u32 %v1814_v44, 16  ;;  %v2118_v44 = vld [vmem:[%s2398_s26] sm:$0xff]  }
  0x45   : > { %1958 = vmatmul.mubr.msk.bf16.vlgmr.msra.gmra.mrb[0].mxu0 %vm436_vm9, %v1029_v54  ;;  %v886_v5 = vrot.slane %v885_v58, 2  ;;  %v904_v7 = vrot.slane %v902_v56, 7  ;;  %v912_v8 = vrot.slane %v910_v60, 7  ;;  %v930_v11 = vshll.u32 %v877_v49, 16 }
  0x46   : > { %1962 = vmatpush3.bf16.msra.mxu0 %v2110_v38  ;;  %1965 = vmatprep.mubr.msk.bf16.mxu0 %vm2238_vm1, %v2237_v1  ;;  %v899_v6 = vor.u32 %v898_v59, %v895_v51  ;;  %v923_v9 = vrot.slane %v921_v2, 6  ;;  %v926_v10 = vrot.slane %v924_v3, 7  ;;  %v918_v16 = vrot.slane %v916_v61, 7  ;;  %v2113_v51 = vld [vmem:[%s2398_s26 + $0x68] sm:$0xff]   ;;  %v2122_v61 = vld [vmem:[%s2398_s26 + $0x20] sm:$0xff]  }
  0x47   : > { %1963 = vmatprep.subr.bf16.mxu0 %v2237_v1  ;;  %v891_v12 = vsel %vm2456_vm0, %v886_v5, %v890_v55  ;;  %v913_v14 = vor.u32 %v912_v8, %v909_v0  ;;  %v932_v19 = vrot.slane %v930_v11, 7  ;;  %v1198_v20 = vcombine.high %v1848_v17, %v1848_v17  ;;  %v2128_v45 = vld.sshfl [vmem:[%s2402_s21] sm:$0xf pattern:$0x76325410]  ;;  %v2123_v2 = vld [vmem:[%s2398_s26 + $0x28] sm:$0xff]  }
  0x48   : > { %v900_v13 = vrot.slane %v899_v6, 2  ;;  %v927_v18 = vor.u32 %v926_v10, %v923_v9  ;;  %v1242_v21 = vshrl.u32 %v1848_v17, 16  ;;  %v1245_v25 = vshll.u32 %v1848_v17, 16  ;;  %v2126_v6 = vld [vmem:[%s2398_s26 + $0x30] sm:$0xff]  }
  0x49   : > { %v914_v23 = vrot.slane %v913_v14, 2  ;;  %v1251_v32 = vshll.u32 %v1198_v20, 16  ;;  %v2129_v46 = vld.sshfl [vmem:[%s2402_s21 + $0x8] sm:$0xf pattern:$0x76325410]  ;;  %v1377_v52 = vcombine.high %v1865_v43, %v1865_v43  ;;  %v1402_v3 = vcombine.low %v2425_v27, %v2429_v29 }
  0x4a   : > { %1964 = vmatpush3.bf16.msra.mxu0 %v2111_v4  ;;  %v905_v22 = vsel %vm2456_vm0, %v900_v13, %v904_v7  ;;  %v928_v26 = vrot.slane %v927_v18, 2  ;;  %v1244_v30 = vrot.slane %v1242_v21, 6  ;;  %v1247_v34 = vrot.slane %v1245_v25, 7  ;;  %v2127_v27 = vld [vmem:[%s2398_s26 + $0x38] sm:$0xff]  }
  0x4b   : > { %1969 = vmatprep.subr.bf16.mxu0 %v2237_v1  ;;  %v1086_v28 = vcombine.low %v891_v12, %v905_v22  ;;  %v919_v33 = vsel %vm2456_vm0, %v914_v23, %v918_v16  ;;  %v1253_v36 = vrot.slane %v1251_v32, 7  ;;  %v1869_v56 = vrot.slane %v1865_v43, 9  ;;  %v2130_v59 = vld.sshfl [vmem:[%s2402_s21 + $0x4] sm:$0xf pattern:$0x76325410] }
  0x4c   : > { %v933_v35 = vsel %vm2456_vm0, %v928_v26, %v932_v19  ;;  %v1248_v39 = vor.u32 %v1247_v34, %v1244_v30  ;;  %v1263_v49 = vcombine.low %v905_v22, %v919_v33  ;;  %v1392_v57 = vrot.slane %v1377_v52, 7  ;;  %v2131_v60 = vld.sshfl [vmem:[%s2402_s21 + $0xc] sm:$0xf pattern:$0x76325410] }
  0x4d   : > { %v1087_v37 = vcombine.low %v919_v33, %v933_v35  ;;  %v1094_v38 = vrot.slane %v1086_v28, %v2419_v24  ;;  %v501_v58 = vcombine.low %v2128_v45, %v2129_v46  ;;  %v593_v5 = vcombine.low %v2130_v59, %v2131_v60  ;;  %v831_v28 = vld [vmem:[#allocation2] sm:$0xff] }
  0x4e   : > { %v1249_v42 = vrot.slane %v1248_v39, 2  ;;  %v1271_v54 = vrot.slane %v1263_v49, %v2419_v24  ;;  %v1393_v0 = vsel %vm2413_vm8, %v1869_v56, %v1392_v57  ;;  %v1410_v7 = vrot.slane %v1402_v3, %v2419_v24 }
  0x4f   : > { %v1101_v41 = vrot.slane %v1087_v37, %v2419_v24  ;;  %v1403_v4 = vcombine.low %v2434_v31, %v1393_v0  ;;  %vm1489_vm2 = vcmask 261248   ;;  %vm1523_vm5 = vcmask (!%p1879_p3), 254976  }
  0x50   : > { %v1254_v48 = vsel %vm2456_vm0, %v1249_v42, %v1253_v36  ;;  %v832_v36 = vld [vmem:[#allocation2 + $0x8] sm:$0xff] }
  0x51   : > { %v1102_v47 = vcombine.low %v1094_v38, %v1101_v41  ;;  %v1264_v50 = vcombine.low %v933_v35, %v1254_v48  ;;  %v1417_v8 = vrot.slane %v1403_v4, %v2419_v24  ;;  %v1880_v48 = vld [vmem:[%s2597_s2] ss:$0 sm:$0xff] (!%p1879_p3) }
  0x53   : > { %1966 = vmatmul.mubr.msk.bf16.vlgmr.msra.gmra.mrb[0].mxu0 %vm436_vm9, %v1102_v47  ;;  %1926 = vmatmul.mubr.msk.bf16.vlgmr.msra.gmra.mrb[0].mxu1 %vm436_vm9, %v1102_v47  ;;  %v1278_v55 = vrot.slane %v1264_v50, %v2419_v24  ;;  %v1418_v29 = vcombine.low %v1410_v7, %v1417_v8 }
  0x54   : > { %1970 = vmatpush3.bf16.msra.mxu0 %v2112_v40  ;;  %1973 = vmatprep.mubr.msk.bf16.mxu0 %vm2238_vm1, %v2237_v1 }
  0x55   : > { %1971 = vmatprep.subr.bf16.mxu0 %v2237_v1  ;;  %1930 = vmatpush3.bf16.msra.mxu1 %v2118_v44  ;;  %v1279_v62 = vcombine.low %v1271_v54, %v1278_v55 }
  0x56   : > { %1931 = vmatprep.subr.bf16.mxu1 %v2237_v1  ;;  %1933 = vmatprep.mubr.msk.bf16.mxu1 %vm2238_vm1, %v2237_v1 }
  0x58   : > { %1972 = vmatpush3.bf16.msra.mxu0 %v2113_v51 }
  0x59   : > { %1977 = vmatprep.subr.bf16.mxu0 %v2237_v1  ;;  %1932 = vmatpush3.bf16.msra.mxu1 %v2119_v53 }
  0x5a   : > { %1937 = vmatprep.subr.bf16.mxu1 %v2237_v1 }
  0x5c   : > { %1934 = vmatmul.mubr.msk.bf16.vlgmr.msra.gmra.mrb[4].mxu1 %vm436_vm9, %v501_v58 }
  0x5d   : > { %1938 = vmatpush3.bf16.msra.mxu1 %v2122_v61  ;;  %1941 = vmatprep.mubr.msk.bf16.mxu1 %vm2238_vm1, %v2237_v1 }
  0x5e   : > { %1939 = vmatprep.subr.bf16.mxu1 %v2237_v1 }
  0x5f   : > { %1974 = vmatmul.mubr.msk.bf16.vlgmr.msra.gmra.mrb[0].mxu0 %vm436_vm9, %v1279_v62 }
  0x60   : > { %1978 = vmatpush3.bf16.msra.mxu0 %v2114_v63  ;;  %1981 = vmatprep.mubr.msk.bf16.mxu0 %vm2238_vm1, %v2237_v1 }
  0x61   : > { %1979 = vmatprep.subr.bf16.mxu0 %v2237_v1  ;;  %1940 = vmatpush3.bf16.msra.mxu1 %v2123_v2 }
  0x62   : > { %1945 = vmatprep.subr.bf16.mxu1 %v2237_v1 }
  0x64   : > { %1980 = vmatpush3.bf16.msra.mxu0 %v2115_v15  ;;  %1942 = vmatmul.mubr.msk.bf16.vlgmr.msra.gmra.mrb[8].mxu1 %vm436_vm9, %v593_v5 }
  0x65   : > { %1946 = vmatpush3.bf16.msra.mxu1 %v2126_v6  ;;  %1949 = vmatprep.mubr.msk.bf16.mxu1 %vm2238_vm1, %v2237_v1  ;;  %vm835_vm1 = vcmask 130048  }
  0x66   : > { %1947 = vmatprep.subr.bf16.mxu1 %v2237_v1 }
  0x69   : > { %1948 = vmatpush3.bf16.msra.mxu1 %v2127_v27 }
  0x6b   : > { %1982 = vmatmul.mubr.msk.bf16.vlgmr.msra.gmra.mrb[0].mxu0 %vm436_vm9, %v1418_v29 }
  0x6c   : > { %1950 = vmatmul.mubr.msk.bf16.vlgmr.msra.gmra.mrb[12].mxu1 %vm436_vm9, %v1279_v62 }
 0x126   : > { %v474_v31 = vpop.f32.mrb[0].mxu1 }
 0x127   : > { %v1927_v9 = vpop.f32.mrb[1].mxu1 }
 0x128   : > { %v477_v10 = vpop.f32.mrb[2].mxu1 }
 0x129   : > { %v1928_v24 = vpop.f32.mrb[3].mxu1 }
 0x12f   : > { %v551_v11 = vpop.f32.mrb[4].mxu1 }
 0x130   : > { %v552_v12 = vadd.f32 %v551_v11, %v474_v31  ;;  %v1935_v13 = vpop.f32.mrb[5].mxu1 }
 0x131   : > { %v554_v14 = vpop.f32.mrb[6].mxu1 }
 0x132   : > { %v555_v16 = vadd.f32 %v554_v14, %v477_v10  ;;  %v1936_v17 = vpop.f32.mrb[7].mxu1 }
 0x137   : > { %v643_v18 = vpop.f32.mrb[8].mxu1 }
 0x138   : > { %v650_v19 = vadd.f32 %v643_v18, %v552_v12  ;;  %v1943_v20 = vpop.f32.mrb[9].mxu1 }
 0x139   : > { %v646_v1 = vpop.f32.mrb[10].mxu1 }
 0x13a   : > { %v651_v21 = vadd.f32 %v646_v1, %v555_v16  ;;  %v1944_v22 = vpop.f32.mrb[11].mxu1 }
 0x13e   : > { %v1468_v23 = vpop.f32.mrb[0].mxu0 }
 0x13f   : > { %1481 = vrot.lane.b32.xlu0 %v1468_v23, %s2240_s22  ;;  %v1983_v25 = vpop.f32.mrb[1].mxu0  ;;  %v822_v26 = vpop.f32.mrb[12].mxu1 }
 0x140   : > { %v1471_v30 = vpop.f32.mrb[2].mxu0  ;;  %v829_v32 = vadd.f32 %v822_v26, %v650_v19  ;;  %v1951_v33 = vpop.f32.mrb[13].mxu1 }
 0x141   : > { %v1984_v34 = vpop.f32.mrb[3].mxu0  ;;  %v825_v35 = vpop.f32.mrb[14].mxu1 }
 0x142   : > { %v833_v37 = vadd.f32 %v831_v28, %v829_v32  ;;  %v830_v38 = vadd.f32 %v825_v35, %v651_v21  ;;  %v1952_v39 = vpop.f32.mrb[15].mxu1 }
 0x143   : > { %1483 = vrot.lane.b32.xlu0 %v1471_v30, %s2240_s22 }
 0x144   : > { %836 = vst.msk [vmem:[#allocation2] sm:$0xff] %vm835_vm1, %v833_v37  ;;  %v834_v40 = vadd.f32 %v832_v36, %v830_v38 }
 0x146   : > { %837 = vst.msk [vmem:[#allocation2 + $0x8] sm:$0xff] %vm835_vm1, %v834_v40 }
 0x14b   : > { %v1477_v42 = vld [vmem:[#allocation2] sm:$0xff] }
 0x14d   : > { %v1478_v45 = vld [vmem:[#allocation2 + $0x8] sm:$0xff] }
 0x1b1   : > { %v1482_v41 = vpop.permute.xlu0 %1481 }
 0x1b2   : > { %v1487_v43 = vadd.f32 %v1482_v41, %v1477_v42  ;;  %1495 = sbr.rel (%p1879_p3) target bundleno = 458 (0x1ca), region = 40 }
 0x1b4   : > { %1490 = vst.msk [vmem:[#allocation2] sm:$0xff] %vm1489_vm2, %v1487_v43 }
 0x1b5   : > { %v1484_v44 = vpop.permute.xlu0 %1483 }
 0x1b6   : > { %v1488_v46 = vadd.f32 %v1484_v44, %v1478_v45 }
 0x1b8   : > { %1491 = vst.msk [vmem:[#allocation2 + $0x8] sm:$0xff] %vm1489_vm2, %v1488_v46 }
 0x1bb   : > { %v1496_v47 = vld [vmem:[#allocation2] sm:$0xff] }
 0x1bc   : > { %v1505_v50 = vadd.f32 %v1880_v48, %v1496_v47 }
 0x1be   : > { %vm1507_vm3 = vcmp.ge.f32.partialorder %v1505_v50, 0.0  ;;  %v1509_v52 = vmul.f32 0.2, %v1505_v50 }
 0x1bf   : > { %v1497_v49 = vld [vmem:[#allocation2 + $0x8] sm:$0xff] }
 0x1c0   : > { %v1506_v51 = vadd.f32 %v1880_v48, %v1497_v49  ;;  %v1511_v54 = vsel %vm1507_vm3, %v1505_v50, %v1509_v52 }
 0x1c1   : > { %v1519_v56 = vpack.c.bf16 %v1511_v54, %v1511_v54  ;;  %v1515_v57 = vcombine.high %v1511_v54, %v1511_v54 }
 0x1c2   : > { %vm1508_vm4 = vcmp.ge.f32.partialorder %v1506_v51, 0.0  ;;  %v1510_v53 = vmul.f32 0.2, %v1506_v51 }
 0x1c3   : > { %1524 = vst.msk [vmem:[%s2392_s13] sm:$0x3] %vm1523_vm5, %v1519_v56  ;;  %v1520_v60 = vpack.c.bf16 %v1515_v57, %v1515_v57 }
 0x1c4   : > { %v1512_v55 = vsel %vm1508_vm4, %v1506_v51, %v1510_v53 }
 0x1c5   : > { %v1521_v58 = vpack.c.bf16 %v1512_v55, %v1512_v55  ;;  %v1516_v59 = vcombine.high %v1512_v55, %v1512_v55  ;;  %1525 = vst.msk [vmem:[%s2392_s13 + $0x2] sm:$0x3] %vm1523_vm5, %v1520_v60 }
 0x1c7   : > { %1526 = vst.msk [vmem:[%s2392_s13 + $0x4] sm:$0x3] %vm1523_vm5, %v1521_v58  ;;  %v1522_v61 = vpack.c.bf16 %v1516_v59, %v1516_v59 }
 0x1c9   : > { %1527 = vst.msk [vmem:[%s2392_s13 + $0x6] sm:$0x3] %vm1523_vm5, %v1522_v61 }
 0x1ca PF: > { %1534 = sbr.rel (!%p2344_p7) target bundleno = 468 (0x1d4), region = 44  ;;  %s1882_s14 = sshll.u32 (%p2344_p7), %s2210_s18, 2  ;;  %v1558_v62 = vld [vmem:[%s2392_s13] sm:$0x3] (%p2344_p7) }
 0x1cb   : > { %s1536_s23 = sadd.s32 (%p2344_p7), %s2198_s15, %s1882_s14 }
 0x1cc   : > { %s1883_s25 = sshll.u32 (%p2344_p7), %s1536_s23, 1  ;;  %v1560_v63 = vld [vmem:[%s2392_s13 + $0x2] sm:$0x3] (%p2344_p7) }
 0x1cd   : > { %s1538_s19 = sadd.s32 (%p2344_p7), %s2206_s17, %s1883_s25 }
 0x1ce   : > { %s1884_s20 = sshll.u32 (%p2344_p7), %s1538_s19, 3  ;;  %v1562_v0 = vld [vmem:[%s2392_s13 + $0x4] sm:$0x3] (%p2344_p7) }
 0x1cf   : > { %s1540_s6 = sadd.s32 (%p2344_p7), %s2202_s16, %s1884_s20 }
 0x1d0   : > { %v1564_v2 = vld [vmem:[%s2392_s13 + $0x6] sm:$0x3] (%p2344_p7)  ;;  %s1885_s5 = sshll.u32 (%p2344_p7), %s1540_s6, 1 }
 0x1d1   : > { %s1542_s28 = scalar_lea.vmem %s2598_s3, %s1885_s5 }
 0x1d2   : > { %1559 = vst [vmem:[%s1542_s28] sm:$0x3] %v1558_v62  ;;  %1561 = vst [vmem:[%s1542_s28 + $0x4] sm:$0x3] %v1560_v63 }
 0x1d3   : > { %1563 = vst [vmem:[%s1542_s28 + $0x8] sm:$0x3] %v1562_v0  ;;  %1565 = vst [vmem:[%s1542_s28 + $0xc] sm:$0x3] %v1564_v2 }
 0x1d4 PF: > { %s13_s24 = sadd.s32 1, %s2234_s24   ;;  %s2630_s12 = sld [smem:[#allocation4_spill]] }
 0x1d5   : > { %p2551_p4 = scmp.ge.s32.totalorder %s13_s24, 66   ;;  %s2631_s13 = sld [smem:[#allocation15_spill]] }
 0x1d6   : > { %s2632_s14 = sld [smem:[#allocation5_spill]]  ;;  %s2633_s16 = sld [smem:[#allocation6_spill]] }
 0x1d7   : > { %s2634_s17 = sld [smem:[#allocation7_spill]]  ;;  %s2635_s18 = sld [smem:[#allocation8_spill]] }
 0x1d8   : > { %s2636_s4 = sld [smem:[#allocation9_spill]]  ;;  %s2637_s19 = sld [smem:[#allocation10_spill]] }
 0x1d9   : > { %s2638_s20 = sld [smem:[#allocation11_spill]]  ;;  %s2639_s21 = sld [smem:[#allocation12_spill]] }
 0x1da   : > { %s2640_s22 = sld [smem:[#allocation14_spill]]  ;;  %s2641_s23 = sld [smem:[#allocation13_spill]] }
 0x1db   :  { %12 = sbr.rel (!%p2551_p4) target bundleno = 7 (0x7), region = 124 }
 0x1dc   : > { %s2643_s15 = smov %s2633_s16 }
 0x1dd   : > { %s2644_s16 = smov %s2634_s17  ;;  %s2645_s17 = smov %s2635_s18 }
 0x1de   : > { %s2646_s18 = smov %s2636_s4 }

// kernel: conv_decoder3d_forward.9
= control target key start
LH: loop header
LB: loop body
LE: loop exit
PB: predicated region body
PF: predicated region fallthrough
CT: control target
= control target key end

     0   :  { %s2771_s12 = smov 0   ;;  %s2773_s13 = smov 0   ;;  %s3367_s0 = inlined_call_operand.vmem [shape: bf16[2,10,10,10,16], index: 0, kind: input, shape index: {}]   ;;  %s3368_s1 = inlined_call_operand.vmem [shape: bf16[2,2,16,16,4], index: 1, kind: input, shape index: {}]   ;;  %s3369_s2 = inlined_call_operand.vmem [shape: f32[1,8], index: 2, kind: input, shape index: {}]   ;;  %s3370_s3 = inlined_call_operand.vmem [shape: bf16[32,8,2,8,8], index: 3, kind: output, shape index: {}]  }
   0x1   :  { %s2775_s14 = smov 0   ;;  %s2777_s15 = smov 0  }
   0x2   :  { %s2779_s16 = smov 0   ;;  %s2781_s17 = smov 0  }
   0x3   :  { %s2783_s18 = smov 0   ;;  %s2785_s19 = smov 0  }
   0x4   :  { %s2787_s20 = smov 0   ;;  %s2789_s21 = smov 0  }
   0x5   :  { %s2791_s22 = smov 0   ;;  %s2793_s23 = smov 0  }
   0x6   :  { %s2795_s24 = smov 0  }
   0x7 LB: > { %3381 = sst [smem:[#allocation4_spill]] %s2703_s13  ;;  %s31_s25 = sadd.s32 1, %s2727_s19  ;;  %s2747_s24 = sphi %s2795_s24, %s13_s24   ;;  %s2743_s23 = sphi %s2793_s23, %s3411_s23   ;;  %s2739_s22 = sphi %s2791_s22, %s3410_s22   ;;  %s2735_s21 = sphi %s2789_s21, %s3409_s21   ;;  %s2731_s20 = sphi %s2787_s20, %s3408_s20   ;;  %s2727_s19 = sphi %s2785_s19, %s3407_s19   ;;  %s2723_s18 = sphi %s2783_s18, %s3416_s18   ;;  %s2719_s17 = sphi %s2781_s17, %s3415_s17   ;;  %s2715_s16 = sphi %s2779_s16, %s3414_s16   ;;  %s2711_s15 = sphi %s2777_s15, %s3413_s15   ;;  %s2707_s14 = sphi %s2775_s14, %s3402_s14   ;;  %s2703_s13 = sphi %s2773_s13, %s3401_s13   ;;  %s2699_s12 = sphi %s2771_s12, %s3400_s12  }
   0x8   : > { %3382 = sst [smem:[#allocation5_spill]] %s2727_s19  ;;  %p32_p0 = scmp.ge.s32.totalorder %s31_s25, 2 }
   0x9   : > { %3383 = sst [smem:[#allocation6_spill]] %s2731_s20  ;;  %s34_s26 = sadd.s32 1, %s2731_s20 }
   0xa   : > { %3384 = sst [smem:[#allocation7_spill]] %s2735_s21  ;;  %s3418_s25 = smov (%p32_p0, %s31_s25), 0 }
   0xb   : > { %3385 = sst [smem:[#allocation8_spill]] %s2739_s22  ;;  %s3420_s26 = smov (!%p32_p0, %s34_s26), %s2731_s20 }
   0xc   : > { %3386 = sst [smem:[#allocation9_spill]] %s2743_s23  ;;  %p36_p1 = scmp.ge.s32.totalorder %s3420_s26, 8 }
   0xd   : > { %3387 = sst [smem:[#allocation10_spill]] %s3418_s25  ;;  %s38_s27 = sadd.s32 1, %s2735_s21 }
   0xe   : > { %s2149_s28 = sadd.s32 4294967295, %s2747_s24   ;;  %s3422_s27 = smov (!%p36_p1, %s38_s27), %s2735_s21 }
   0xf   : > { %s42_s29 = sadd.s32 1, %s2739_s22  ;;  %p154_p2 = scmp.ne.s32.totalorder %s2703_s13, %s2699_s12 }
  0x10   : > { %p40_p3 = scmp.ge.s32.totalorder %s3422_s27, 2  ;;  %p155_p4 = scmp.eq.s32.totalorder %s2149_s28, 127 }
  0x11   : > { %p2157_p5 = scmp.ge.s32.totalorder %s2747_s24, 1  ;;  %p210_p6 = scmp.lt.s32.totalorder %s2747_s24, 129 }
  0x12   : > { %s46_s30 = sadd.s32 1, %s2743_s23  ;;  %s3424_s29 = smov (!%p40_p3, %s42_s29), %s2739_s22 }
  0x13   : > { %s2151_s4 = sshll.u32 %s2743_s23, 3  ;;  %p2854_p7 = por %p155_p4, %p154_p2 }
  0x14   : > { %p44_p8 = scmp.ge.s32.totalorder %s3424_s29, 2  ;;  %p2858_p9 = pnand %p2157_p5, %p210_p6 }
  0x15   : > { %s132_s7 = sadd.s32 %s2731_s20, %s2151_s4  ;;  %s3428_s26 = smov (%p36_p1, %s3420_s26), 0 }
  0x16   : > { %s3426_s30 = smov (!%p44_p8, %s46_s30), %s2743_s23  ;;  %3390 = sst [smem:[#allocation11_spill]] %s3428_s26 }
  0x17   : > { %p48_p10 = scmp.ge.s32.totalorder %s3426_s30, 2  ;;  %s2152_s8 = sshll.u32 %s132_s7, 1 }
  0x18   : > { %s3430_s27 = smov (%p40_p3, %s3422_s27), 0  ;;  %s3434_s29 = smov (%p44_p8, %s3424_s29), 0 }
  0x19   : > { %3391 = sst [smem:[#allocation12_spill]] %s3430_s27  ;;  %s3432_s30 = smov (%p48_p10, %s3426_s30), 0 }
  0x1a   : > { %3392 = sst [smem:[#allocation13_spill]] %s3432_s30  ;;  %s2153_s9 = sshll.u32 %s3432_s30, 3 }
  0x1b   : > { %3393 = sst [smem:[#allocation14_spill]] %s3434_s29  ;;  %s134_s10 = sadd.s32 %s2739_s22, %s2152_s8 }
  0x1c   : > { %s136_s11 = sadd.s32 %s2153_s9, %s3428_s26  ;;  %s140_s4 = ssub.s32 %s2735_s21, %s3430_s27 }
  0x1d   : > { %s2154_s28 = sshll.u32 %s136_s11, 1  ;;  %s144_s19 = sadd.s32 1, %s2703_s13 }
  0x1e   : > { %s138_s25 = sadd.s32 %s2154_s28, %s3434_s29  ;;  %s245_s8 = sand.u32 (!%p2858_p9), 1, %s2699_s12  }
  0x1f   : > { %s139_s23 = ssub.s32 %s134_s10, %s138_s25  ;;  %214 = sbr.rel (%p2858_p9) target bundleno = 486 (0x1e6), region = 32 }
  0x20   : > { %s141_s20 = sor.u32 %s140_s4, %s139_s23  ;;  %s248_s9 = sadd.s32 (!%p2858_p9), %s2711_s15, %s2719_s17 }
  0x21   : > { %p142_p11 = scmp.eq.s32.totalorder %s141_s20, 0  ;;  %s2158_s23 = sshll.u32 (!%p2858_p9), %s245_s8, 5 }
  0x22   : > { %s249_s25 = sadd.s32 (!%p2858_p9), %s2707_s14, %s248_s9  ;;  %p250_p12 = scmp.lt.s32.totalorder (!%p2858_p9), %s2723_s18, 1 }
  0x23   : > { %s2882_s7 = scalar_select %p142_p11, %s2703_s13, %s144_s19  }
  0x24   : > { %p252_p13 = scmp.lt.s32.totalorder (!%p2858_p9), %s249_s25, 9  ;;  %p261_p0 = scmp.lt.s32.totalorder (!%p2858_p9), %s2719_s17, 1 }
  0x25   : > { %3394 = sst [smem:[#allocation15_spill]] %s2882_s7  ;;  %p263_p1 = scmp.lt.s32.totalorder (!%p2858_p9), %s2715_s16, 1 }
  0x26   : > { %s251_s19 = scalar_select %p250_p12, %s2723_s18, 1 }
  0x27   : > { %s3436_s25 = smov (!%p252_p13, %s249_s25), 9  ;;  %s2902_s13 = scalar_lea.vmem [#allocation3], %s2158_s23 }
  0x28   : > { %s2522_s20 = smul.u32 200, %s251_s19  ;;  %p2163_p2 = scmp.ne.s32.totalorder %s2707_s14, 0 }
  0x29   : > { %s2521_s6 = smul.u32 20, %s3436_s25  ;;  %vm279_vm0 = vcmask (!%p2163_p2), 64512   ;;  %v2749_v0 = vmov (!%p2163_p2), 0.0  }
  0x2a   : > { %s262_s10 = scalar_select %p261_p0, %s2719_s17, 1 }
  0x2b   : > { %s256_s11 = sadd.s32 %s2522_s20, %s2521_s6  ;;  %280 = vst.msk [vmem:[#allocation2] sm:$0xff] (!%p2163_p2), %vm279_vm0, %v2749_v0  ;;  %281 = vst.msk [vmem:[#allocation2 + $0x8] sm:$0xff] (!%p2163_p2), %vm279_vm0, %v2749_v0 }
  0x2c   : > { %s2159_s28 = sshll.u32 %s256_s11, 2  ;;  %s2161_s12 = sshll.u32 %s262_s10, 6  ;;  %282 = vst.msk [vmem:[#allocation2 + $0x10] sm:$0xff] (!%p2163_p2), %vm279_vm0, %v2749_v0  ;;  %283 = vst.msk [vmem:[#allocation2 + $0x18] sm:$0xff] (!%p2163_p2), %vm279_vm0, %v2749_v0 }
  0x2d   : > { %s258_s29 = scalar_lea.vmem %s3367_s0, %s2159_s28  ;;  %278 = sbr.rel (%p2163_p2) target bundleno = 52 (0x34), region = 36  ;;  %284 = vst.msk [vmem:[#allocation2 + $0x20] sm:$0xff] (!%p2163_p2), %vm279_vm0, %v2749_v0  ;;  %285 = vst.msk [vmem:[#allocation2 + $0x28] sm:$0xff] (!%p2163_p2), %vm279_vm0, %v2749_v0 }
  0x2e   : > { %s264_s27 = scalar_select %p263_p1, %s2715_s16, 1 }
  0x2f   : > { %286 = vst.msk [vmem:[#allocation2 + $0x30] sm:$0xff] (!%p2163_p2), %vm279_vm0, %v2749_v0  ;;  %287 = vst.msk [vmem:[#allocation2 + $0x38] sm:$0xff] (!%p2163_p2), %vm279_vm0, %v2749_v0 }
  0x30   : > { %s2160_s26 = sshll.u32 %s264_s27, 5 }
  0x31   : > { %s267_s8 = sadd.s32 %s2161_s12, %s2160_s26 }
  0x32   : > { %s2162_s9 = sshll.u32 %s267_s8, 2 }
  0x33   : > { %s269_s7 = scalar_lea.vmem %s3368_s1, %s2162_s9 }
  0x34 PF: > { %s2345_s21 = sshll.u32 %s2707_s14, 6  ;;  %s2343_s22 = sshll.u32 %s2715_s16, 3  ;;  %vm1182_vm1 = vcmask 1042432   ;;  %vm1183_vm2 = vcmask 1046532   ;;  %vm452_vm4 = vcmask 130048   ;;  %vm1015_vm8 = vcmask 31744  }
  0x35   : > { %s2907_s26 = scalar_lea.vmem %s269_s7, %s2345_s21  ;;  %s2909_s27 = scalar_lea.vmem %s258_s29, %s2343_s22  ;;  %vm2911_vm3 = vmor %vm1182_vm1, %vm1183_vm2  ;;  %vm313_vm5 = vsmask.f32 3328  ;;  %vm314_vm6 = vsmask.f32 7440  ;;  %vm1863_vm9 = vcmask 64544  }
  0x36   : > { %v2629_v2 = vld [vmem:[%s2907_s26 + $0x28] sm:$0xff]   ;;  %v1025_v3 = vld [vmem:[%s2909_s27 + $0x4] sm:$0x1]  ;;  %v1158_v5 = vld [vmem:[%s2909_s27] sm:$0xe]  ;;  %s2750_s29 = smov 4  }
  0x37   : > { %v1027_v4 = vld [vmem:[%s2909_s27 + $0xc] sm:$0x1]  ;;  %2433 = vmatprep.subr.bf16.mxu1 %v2629_v2  ;;  %v1050_v6 = vshll.u32 %v1025_v3, 16  ;;  %v1159_v8 = vld [vmem:[%s2909_s27 + $0x8] sm:$0xe]  ;;  %v2246_v9 = vrot.slane %v1158_v5, 9  ;;  %vm2988_vm7 = vmor %vm313_vm5, %vm314_vm6 }
  0x38   : > { %v1064_v7 = vshll.u32 %v1027_v4, 16  ;;  %v1187_v10 = vrot.slane %v1025_v3, 5  ;;  %2434 = vmatpush3.bf16.msra.mxu1 %v2629_v2  ;;  %v2247_v11 = vrot.slane %v1159_v8, 9  ;;  %v1191_v12 = vrot.slane %v1027_v4, 5  ;;  %v1029_v13 = vld [vmem:[%s2909_s27 + $0x14] sm:$0x1] }
  0x39   : > { %v1031_v14 = vld [vmem:[%s2909_s27 + $0x1c] sm:$0x1]  ;;  %v2922_v15 = vrot.slane %v1050_v6, 5  ;;  %v1078_v18 = vshll.u32 %v1029_v13, 16  ;;  %v1160_v19 = vld [vmem:[%s2909_s27 + $0x10] sm:$0xe] }
  0x3a   : > { %v2924_v16 = vrot.slane %v1064_v7, 5  ;;  %v1188_v17 = vsel %vm2911_vm3, %v2246_v9, %v1187_v10  ;;  %v2630_v20 = vld [vmem:[%s2907_s26 + $0x20] sm:$0xff]   ;;  %v1192_v21 = vsel %vm2911_vm3, %v2247_v11, %v1191_v12  ;;  %v1092_v22 = vshll.u32 %v1031_v14, 16  ;;  %v1161_v23 = vld [vmem:[%s2909_s27 + $0x18] sm:$0xe]  ;;  %v2943_v33 = vld [vmem:[%s2907_s26 + $0x30] sm:$0xff]  }
  0x3b   : > { %v2248_v24 = vrot.slane %v1160_v19, 9  ;;  %v1195_v25 = vrot.slane %v1029_v13, 5  ;;  %v2258_v26 = vcombine.low %v1188_v17, %v1192_v21  ;;  %v2933_v27 = vrot.slane %v1078_v18, 5  ;;  %2443 = vmatprep.subr.bf16.mxu1 %v2630_v20  ;;  %v2940_v32 = vld [vmem:[%s2909_s27 + $0x24] sm:$0x1]  ;;  %v2633_v34 = vld [vmem:[%s2907_s26 + $0x8] sm:$0xff]  }
  0x3c   : > { %v2249_v28 = vrot.slane %v1161_v23, 9  ;;  %v1199_v29 = vrot.slane %v1031_v14, 5  ;;  %v2935_v30 = vrot.slane %v1092_v22, 5  ;;  %v2950_v36 = vld [vmem:[%s2909_s27 + $0x2c] sm:$0x1]  ;;  %v1203_v41 = vrot.slane %v2940_v32, 5  ;;  %2393 = vmatprep.subr.bf16.mxu0 %v2633_v34 }
  0x3d   : > { %v1196_v31 = vsel %vm2911_vm3, %v2248_v24, %v1195_v25  ;;  %2435 = vmatprep.mubr.msk.bf16.mxu1 %vm452_vm4, %v2258_v26  ;;  %v1162_v37 = vld [vmem:[%s2909_s27 + $0x20] sm:$0xe]  ;;  %v1163_v38 = vld [vmem:[%s2909_s27 + $0x28] sm:$0xe]  ;;  %v2956_v43 = vld [vmem:[%s2909_s27 + $0x34] sm:$0x1]  ;;  %2394 = vmatpush3.bf16.msra.mxu0 %v2633_v34 }
  0x3e   : > { %v1200_v35 = vsel %vm2911_vm3, %v2249_v28, %v1199_v29  ;;  %v2250_v40 = vrot.slane %v1162_v37, 9  ;;  %v2251_v42 = vrot.slane %v1163_v38, 9  ;;  %v2959_v44 = vld [vmem:[%s2907_s26] sm:$0xff]   ;;  %v1207_v45 = vrot.slane %v2950_v36, 5  ;;  %v2963_v46 = vld [vmem:[%s2909_s27 + $0x3c] sm:$0x1] }
  0x3f   : > { %v2259_v39 = vcombine.low %v1196_v31, %v1200_v35  ;;  %v1164_v47 = vld [vmem:[%s2909_s27 + $0x30] sm:$0xe]  ;;  %v1211_v48 = vrot.slane %v2956_v43, 5  ;;  %v1165_v50 = vld [vmem:[%s2909_s27 + $0x38] sm:$0xe]  ;;  %v1215_v52 = vrot.slane %v2963_v46, 5  ;;  %2403 = vmatprep.subr.bf16.mxu0 %v2959_v44 }
  0x40   : > { %v1204_v49 = vsel %vm2911_vm3, %v2250_v40, %v1203_v41  ;;  %v2252_v51 = vrot.slane %v1164_v47, 9  ;;  %v1024_v53 = vld [vmem:[%s2909_s27] sm:$0xf]  ;;  %v1208_v54 = vsel %vm2911_vm3, %v2251_v42, %v1207_v45  ;;  %v2253_v55 = vrot.slane %v1165_v50, 9  ;;  %v1026_v56 = vld [vmem:[%s2909_s27 + $0x8] sm:$0xf] }
  0x41   : > { %2436 = vmatmul.mubr.msk.bf16.vlgmr.msra.gmra.mrb[0].mxu1 %vm452_vm4, %v2259_v39  ;;  %v1041_v57 = vshrl.u32 %v1024_v53, 16  ;;  %v1044_v58 = vshll.u32 %v1024_v53, 16  ;;  %v2260_v59 = vcombine.low %v1204_v49, %v1208_v54  ;;  %v1055_v61 = vshrl.u32 %v1026_v56, 16  ;;  %v1028_v63 = vld [vmem:[%s2909_s27 + $0x10] sm:$0xf]  ;;  %p2334_p3 = scmp.ne.s32.totalorder %s2707_s14, 1 }
  0x42   : > { %2444 = vmatpush3.bf16.msra.mxu1 %v2630_v20  ;;  %v1212_v60 = vsel %vm2911_vm3, %v2252_v51, %v1211_v48  ;;  %v1058_v62 = vshll.u32 %v1026_v56, 16  ;;  %v1030_v0 = vld [vmem:[%s2909_s27 + $0x18] sm:$0xf]  ;;  %v1216_v2 = vsel %vm2911_vm3, %v2253_v55, %v1215_v52  ;;  %v1069_v5 = vshrl.u32 %v1028_v63, 16  ;;  %v1032_v14 = vld [vmem:[%s2909_s27 + $0x20] sm:$0xf] }
  0x43   : > { %2453 = vmatprep.subr.bf16.mxu1 %v2943_v33  ;;  %v1043_v3 = vrot.slane %v1041_v57, 4  ;;  %v1046_v4 = vrot.slane %v1044_v58, 5  ;;  %2439 = vmatprep.mubr.msk.bf16.mxu1 %vm452_vm4, %v2260_v59  ;;  %v2261_v6 = vcombine.low %v1212_v60, %v1216_v2  ;;  %v1057_v7 = vrot.slane %v1055_v61, 4  ;;  %v1034_v20 = vld [vmem:[%s2909_s27 + $0x28] sm:$0xf]  ;;  %v1001_v17 = vld [vmem:[#allocation2 + $0x10] sm:$0xff] }
  0x44   : > { %v1060_v8 = vrot.slane %v1058_v62, 5  ;;  %v1072_v9 = vshll.u32 %v1028_v63, 16  ;;  %v1071_v11 = vrot.slane %v1069_v5, 4  ;;  %v1083_v12 = vshrl.u32 %v1030_v0, 16  ;;  %v1036_v40 = vld [vmem:[%s2909_s27 + $0x30] sm:$0xf] }
  0x45   : > { %v1047_v10 = vor.u32 %v1046_v4, %v1043_v3  ;;  %v1086_v13 = vshll.u32 %v1030_v0, 16  ;;  %v1097_v21 = vshrl.u32 %v1032_v14, 16  ;;  %v1100_v22 = vshll.u32 %v1032_v14, 16  ;;  %v1038_v53 = vld [vmem:[%s2909_s27 + $0x38] sm:$0xf] }
  0x46   : > { %v1061_v18 = vor.u32 %v1060_v8, %v1057_v7  ;;  %v1074_v19 = vrot.slane %v1072_v9, 5  ;;  %v1085_v24 = vrot.slane %v1083_v12, 4  ;;  %v1106_v26 = vshll.u32 %v2940_v32, 16  ;;  %v2276_v57 = vld [vmem:[%s2909_s27 + $0x8] sm:$0xf]  ;;  %v3019_v62 = vld [vmem:[%s2907_s26 + $0x38] sm:$0xff]  }
  0x47   : > { %v1048_v23 = vrot.slane %v1047_v10, 4  ;;  %v1088_v25 = vrot.slane %v1086_v13, 5  ;;  %v1099_v31 = vrot.slane %v1097_v21, 4  ;;  %v1102_v34 = vrot.slane %v1100_v22, 5  ;;  %v3016_v61 = vld [vmem:[%s2909_s27 + $0xc] sm:$0x1] }
  0x48   : > { %v1062_v28 = vrot.slane %v1061_v18, 4  ;;  %v1075_v29 = vor.u32 %v1074_v19, %v1071_v11  ;;  %v1108_v38 = vrot.slane %v1106_v26, 5  ;;  %v1111_v39 = vshrl.u32 %v1034_v20, 16  ;;  %v2278_v4 = vld [vmem:[%s2909_s27 + $0x10] sm:$0xf] }
  0x49   : > { %2440 = vmatmul.mubr.msk.bf16.gmra.mrb[4].mxu1 %vm452_vm4, %v2261_v6  ;;  %v1053_v35 = vsel %vm2988_vm7, %v1048_v23, %v2922_v15  ;;  %v1089_v37 = vor.u32 %v1088_v25, %v1085_v24  ;;  %v1103_v42 = vor.u32 %v1102_v34, %v1099_v31  ;;  %v1114_v45 = vshll.u32 %v1034_v20, 16  ;;  %v3026_v10 = vld [vmem:[%s2909_s27 + $0x14] sm:$0x1]  ;;  %v2280_v18 = vld [vmem:[%s2909_s27 + $0x18] sm:$0xf] }
  0x4a   : > { %v1067_v41 = vsel %vm2988_vm7, %v1062_v28, %v2924_v16  ;;  %v1076_v32 = vrot.slane %v1075_v29, 4  ;;  %v1113_v49 = vrot.slane %v1111_v39, 4  ;;  %v1120_v50 = vshll.u32 %v2950_v36, 16  ;;  %v3035_v26 = vld [vmem:[%s2909_s27 + $0x1c] sm:$0x1] }
  0x4b   : > { %v2267_v47 = vcombine.low %v1053_v35, %v1067_v41  ;;  %v1090_v48 = vrot.slane %v1089_v37, 4  ;;  %v1104_v51 = vrot.slane %v1103_v42, 4  ;;  %v1116_v52 = vrot.slane %v1114_v45, 5  ;;  %v2282_v31 = vld [vmem:[%s2909_s27 + $0x20] sm:$0xf] }
  0x4c   : > { %v1081_v15 = vsel %vm2988_vm7, %v1076_v32, %v2933_v27  ;;  %v1125_v54 = vshrl.u32 %v1036_v40, 16  ;;  %v1122_v55 = vrot.slane %v1120_v50, 5  ;;  %v1128_v56 = vshll.u32 %v1036_v40, 16  ;;  %v3042_v41 = vld [vmem:[%s2909_s27 + $0x24] sm:$0x1] }
  0x4d   : > { %2445 = vmatprep.mubr.msk.bf16.mxu1 %vm452_vm4, %v2267_v47  ;;  %v1095_v16 = vsel %vm2988_vm7, %v1090_v48, %v2935_v30  ;;  %v1134_v36 = vshll.u32 %v2956_v43, 16  ;;  %v1109_v27 = vsel %vm2988_vm7, %v1104_v51, %v1108_v38  ;;  %v1117_v59 = vor.u32 %v1116_v52, %v1113_v49  ;;  %v2284_v48 = vld [vmem:[%s2909_s27 + $0x28] sm:$0xf]  ;;  %v3051_v52 = vld [vmem:[%s2909_s27 + $0x2c] sm:$0x1] }
  0x4e   : > { %v2268_v58 = vcombine.low %v1081_v15, %v1095_v16  ;;  %v1127_v60 = vrot.slane %v1125_v54, 4  ;;  %v1130_v63 = vrot.slane %v1128_v56, 5  ;;  %v1139_v30 = vshrl.u32 %v1038_v53, 16 }
  0x4f   : > { %v1136_v0 = vrot.slane %v1134_v36, 5  ;;  %v1142_v2 = vshll.u32 %v1038_v53, 16  ;;  %v1118_v43 = vrot.slane %v1117_v59, 4  ;;  %v1148_v3 = vshll.u32 %v2963_v46, 16  ;;  %v2286_v53 = vld [vmem:[%s2909_s27 + $0x30] sm:$0xf] }
  0x50   : > { %v1430_v5 = vshrl.u32 %v2276_v57, 16  ;;  %v1433_v6 = vshll.u32 %v2276_v57, 16  ;;  %v1131_v7 = vor.u32 %v1130_v63, %v1127_v60  ;;  %v1141_v8 = vrot.slane %v1139_v30, 4  ;;  %v3056_v36 = vld [vmem:[%s2909_s27 + $0x34] sm:$0x1] }
  0x51   : > { %2446 = vmatmul.mubr.msk.bf16.vlgmr.msra.gmra.mrb[0].mxu1 %vm452_vm4, %v2268_v58  ;;  %v1144_v9 = vrot.slane %v1142_v2, 5  ;;  %v1439_v11 = vshll.u32 %v3016_v61, 16  ;;  %v1123_v12 = vsel %vm2988_vm7, %v1118_v43, %v1122_v55  ;;  %v1150_v13 = vrot.slane %v1148_v3, 5  ;;  %v2288_v60 = vld [vmem:[%s2909_s27 + $0x38] sm:$0xf] }
  0x52   : > { %2454 = vmatpush3.bf16.msra.mxu1 %v2943_v33  ;;  %v1432_v14 = vrot.slane %v1430_v5, 4  ;;  %v1435_v46 = vrot.slane %v1433_v6, 5  ;;  %v2269_v19 = vcombine.low %v1109_v27, %v1123_v12  ;;  %v1132_v33 = vrot.slane %v1131_v7, 4  ;;  %v3064_v6 = vld [vmem:[%s2909_s27 + $0x3c] sm:$0x1] }
  0x53   : > { %2463 = vmatprep.subr.bf16.mxu1 %v3019_v62  ;;  %v1145_v20 = vor.u32 %v1144_v9, %v1141_v8  ;;  %v1441_v21 = vrot.slane %v1439_v11, 5  ;;  %v1444_v23 = vshrl.u32 %v2278_v4, 16  ;;  %v1447_v24 = vshll.u32 %v2278_v4, 16  ;;  %v2290_v12 = vld [vmem:[%s2909_s27 + $0x40] sm:$0xf] }
  0x54   : > { %v1436_v22 = vor.u32 %v1435_v46, %v1432_v14  ;;  %v1453_v25 = vshll.u32 %v3026_v10, 16  ;;  %2449 = vmatprep.mubr.msk.bf16.mxu1 %vm452_vm4, %v2269_v19  ;;  %v1137_v28 = vsel %vm2988_vm7, %v1132_v33, %v1136_v0  ;;  %v1458_v34 = vshrl.u32 %v2280_v18, 16  ;;  %v3072_v33 = vld [vmem:[%s2909_s27 + $0x44] sm:$0x1] }
  0x55   : > { %v1146_v29 = vrot.slane %v1145_v20, 4  ;;  %v1461_v35 = vshll.u32 %v2280_v18, 16  ;;  %v1446_v38 = vrot.slane %v1444_v23, 4  ;;  %v1449_v39 = vrot.slane %v1447_v24, 5 }
  0x56   : > { %v1437_v37 = vrot.slane %v1436_v22, 4  ;;  %v1455_v40 = vrot.slane %v1453_v25, 5  ;;  %v1460_v42 = vrot.slane %v1458_v34, 4  ;;  %v1467_v47 = vshll.u32 %v3035_v26, 16 }
  0x57   : > { %v1151_v32 = vsel %vm2988_vm7, %v1146_v29, %v1150_v13  ;;  %v1463_v45 = vrot.slane %v1461_v35, 5  ;;  %v1450_v15 = vor.u32 %v1449_v39, %v1446_v38  ;;  %v1472_v51 = vshrl.u32 %v2282_v31, 16  ;;  %v2305_v29 = vld [vmem:[%s2909_s27 + $0x8] sm:$0xe]  ;;  %v2306_v38 = vld [vmem:[%s2909_s27 + $0x10] sm:$0xe] }
  0x58   : > { %v2270_v49 = vcombine.low %v1137_v28, %v1151_v32  ;;  %v1442_v50 = vsel %vm2988_vm7, %v1437_v37, %v1441_v21  ;;  %v1469_v16 = vrot.slane %v1467_v47, 5  ;;  %v1475_v55 = vshll.u32 %v2282_v31, 16 }
  0x59   : > { %v1464_v54 = vor.u32 %v1463_v45, %v1460_v42  ;;  %v1481_v56 = vshll.u32 %v3042_v41, 16  ;;  %v1451_v57 = vrot.slane %v1450_v15, 4  ;;  %v1474_v58 = vrot.slane %v1472_v51, 4  ;;  %v2307_v45 = vld [vmem:[%s2909_s27 + $0x18] sm:$0xe] }
  0x5a   : > { %2450 = vmatmul.mubr.msk.bf16.gmra.mrb[4].mxu1 %vm452_vm4, %v2270_v49  ;;  %v1486_v27 = vshrl.u32 %v2284_v48, 16  ;;  %v1489_v59 = vshll.u32 %v2284_v48, 16  ;;  %v1477_v0 = vrot.slane %v1475_v55, 5  ;;  %v1495_v2 = vshll.u32 %v3051_v52, 16 }
  0x5b   : > { %v1465_v63 = vrot.slane %v1464_v54, 4  ;;  %v1483_v30 = vrot.slane %v1481_v56, 5  ;;  %v1456_v43 = vsel %vm2988_vm7, %v1451_v57, %v1455_v40  ;;  %v1500_v5 = vshrl.u32 %v2286_v53, 16 }
  0x5c   : > { %v1488_v3 = vrot.slane %v1486_v27, 4  ;;  %v1491_v4 = vrot.slane %v1489_v59, 5  ;;  %v2296_v7 = vcombine.low %v1442_v50, %v1456_v43  ;;  %v1478_v9 = vor.u32 %v1477_v0, %v1474_v58  ;;  %v2309_v27 = vld [vmem:[%s2909_s27 + $0x28] sm:$0xe]  ;;  %v2311_v43 = vld [vmem:[%s2909_s27 + $0x38] sm:$0xe] }
  0x5d   : > { %v1470_v8 = vsel %vm2988_vm7, %v1465_v63, %v1469_v16  ;;  %v1497_v11 = vrot.slane %v1495_v2, 5  ;;  %v1502_v14 = vrot.slane %v1500_v5, 4  ;;  %v1503_v46 = vshll.u32 %v2286_v53, 16  ;;  %v2308_v16 = vld [vmem:[%s2909_s27 + $0x20] sm:$0xe] }
  0x5e   : > { %v1492_v13 = vor.u32 %v1491_v4, %v1488_v3  ;;  %v1509_v18 = vshll.u32 %v3056_v36, 16  ;;  %2455 = vmatprep.mubr.msk.bf16.mxu1 %vm452_vm4, %v2296_v7  ;;  %v1479_v19 = vrot.slane %v1478_v9, 4  ;;  %v1514_v20 = vshrl.u32 %v2288_v60, 16  ;;  %v2312_v3 = vld [vmem:[%s2909_s27 + $0x40] sm:$0xe] }
  0x5f   : > { %v1517_v21 = vshll.u32 %v2288_v60, 16  ;;  %v1523_v22 = vshll.u32 %v3064_v6, 16  ;;  %v1505_v24 = vrot.slane %v1503_v46, 5  ;;  %v1528_v28 = vshrl.u32 %v2290_v12, 16  ;;  %v2310_v60 = vld [vmem:[%s2909_s27 + $0x30] sm:$0xe] }
  0x60   : > { %v1493_v23 = vrot.slane %v1492_v13, 4  ;;  %v1511_v25 = vrot.slane %v1509_v18, 5  ;;  %v1484_v31 = vsel %vm2988_vm7, %v1479_v19, %v1483_v30  ;;  %v1516_v34 = vrot.slane %v1514_v20, 4  ;;  %v3110_v9 = vld [vmem:[%s2909_s27 + $0x8] sm:$0xf] }
  0x61   : > { %v1519_v35 = vrot.slane %v1517_v21, 5  ;;  %v1525_v37 = vrot.slane %v1523_v22, 5  ;;  %v2297_v39 = vcombine.low %v1470_v8, %v1484_v31  ;;  %v1506_v32 = vor.u32 %v1505_v24, %v1502_v14  ;;  %v306_v18 = vld [vmem:[%s2909_s27 + $0xc] sm:$0x1]  ;;  %v3121_v22 = vld [vmem:[%s2909_s27 + $0x10] sm:$0xf] }
  0x62   : > { %v1498_v40 = vsel %vm2988_vm7, %v1493_v23, %v1497_v11  ;;  %v1530_v42 = vrot.slane %v1528_v28, 4  ;;  %v1531_v48 = vshll.u32 %v2290_v12, 16  ;;  %v1537_v49 = vshll.u32 %v3072_v33, 16  ;;  %v305_v11 = vld [vmem:[%s2909_s27 + $0x4] sm:$0x1] }
  0x63   : > { %v1520_v47 = vor.u32 %v1519_v35, %v1516_v34  ;;  %v2313_v50 = vrot.slane %v2305_v29, 9  ;;  %2456 = vmatmul.mubr.msk.bf16.vlgmr.msra.gmra.mrb[0].mxu1 %vm452_vm4, %v2297_v39  ;;  %v1507_v15 = vrot.slane %v1506_v32, 4  ;;  %v1676_v51 = vrot.slane %v3016_v61, 5  ;;  %v3136_v31 = vld [vmem:[%s2909_s27 + $0x18] sm:$0xf] }
  0x64   : > { %v2314_v53 = vrot.slane %v2306_v38, 9  ;;  %v1680_v54 = vrot.slane %v3026_v10, 5  ;;  %2464 = vmatpush3.bf16.msra.mxu1 %v3019_v62  ;;  %v1533_v56 = vrot.slane %v1531_v48, 5  ;;  %v1539_v57 = vrot.slane %v1537_v49, 5  ;;  %v307_v34 = vld [vmem:[%s2909_s27 + $0x14] sm:$0x1] }
  0x65   : > { %v1521_v55 = vrot.slane %v1520_v47, 4  ;;  %v2315_v58 = vrot.slane %v2307_v45, 9  ;;  %v1512_v59 = vsel %vm2988_vm7, %v1507_v15, %v1511_v25  ;;  %v1677_v61 = vsel %vm2911_vm3, %v2313_v50, %v1676_v51  ;;  %v3151_v47 = vld [vmem:[%s2909_s27 + $0x20] sm:$0xf] }
  0x66   : > { %v1681_v10 = vsel %vm2911_vm3, %v2314_v53, %v1680_v54  ;;  %v1684_v62 = vrot.slane %v3035_v26, 5  ;;  %v2298_v63 = vcombine.low %v1498_v40, %v1512_v59  ;;  %v1534_v30 = vor.u32 %v1533_v56, %v1530_v42  ;;  %v3107_v26 = vld [vmem:[%s2909_s27] sm:$0xf]  ;;  %v308_v40 = vld [vmem:[%s2909_s27 + $0x1c] sm:$0x1] }
  0x67   : > { %v1526_v0 = vsel %vm2988_vm7, %v1521_v55, %v1525_v37  ;;  %v2325_v2 = vcombine.low %v1677_v61, %v1681_v10  ;;  %v2316_v5 = vrot.slane %v2308_v16, 9  ;;  %v1688_v7 = vrot.slane %v3042_v41, 5 }
  0x68   : > { %v3103_v4 = vsel %vm2911_vm3, %v2315_v58, %v1684_v62  ;;  %v2317_v8 = vrot.slane %v2309_v27, 9  ;;  %2459 = vmatprep.mubr.msk.bf16.mxu1 %vm452_vm4, %v2298_v63  ;;  %v1535_v12 = vrot.slane %v1534_v30, 4  ;;  %v1692_v13 = vrot.slane %v3051_v52, 5  ;;  %v3159_v58 = vld [vmem:[%s2909_s27 + $0x28] sm:$0xf] }
  0x69   : > { %v2318_v14 = vrot.slane %v2310_v60, 9  ;;  %v1696_v46 = vrot.slane %v3056_v36, 5  ;;  %v1689_v41 = vsel %vm2911_vm3, %v2316_v5, %v1688_v7  ;;  %v2319_v19 = vrot.slane %v2311_v43, 9  ;;  %v309_v27 = vld [vmem:[%s2909_s27 + $0x24] sm:$0x1] }
  0x6a   : > { %v1700_v20 = vrot.slane %v3064_v6, 5  ;;  %v2320_v21 = vrot.slane %v2312_v3, 9  ;;  %v1540_v23 = vsel %vm2988_vm7, %v1535_v12, %v1539_v57  ;;  %v2326_v52 = vcombine.low %v3103_v4, %v1689_v41  ;;  %v3166_v7 = vld [vmem:[%s2909_s27 + $0x30] sm:$0xf] }
  0x6b   : > { %v1693_v36 = vsel %vm2911_vm3, %v2317_v8, %v1692_v13  ;;  %v1697_v24 = vsel %vm2911_vm3, %v2318_v14, %v1696_v46  ;;  %v2299_v25 = vcombine.low %v1526_v0, %v1540_v23  ;;  %v1704_v29 = vrot.slane %v3072_v33, 5 }
  0x6c   : > { %v2327_v28 = vcombine.low %v1693_v36, %v1697_v24  ;;  %v3132_v6 = vsel %vm2911_vm3, %v2319_v19, %v1700_v20  ;;  %v317_v35 = vshrl.u32 %v3107_v26, 16  ;;  %v320_v37 = vshll.u32 %v3107_v26, 16  ;;  %v311_v19 = vld [vmem:[%s2909_s27 + $0x34] sm:$0x1] }
  0x6d   : > { %v326_v38 = vshll.u32 %v305_v11, 16  ;;  %v331_v39 = vshrl.u32 %v3110_v9, 16  ;;  %2460 = vmatmul.mubr.msk.bf16.gmra.mrb[4].mxu1 %vm452_vm4, %v2299_v25  ;;  %v3146_v32 = vsel %vm2911_vm3, %v2320_v21, %v1704_v29  ;;  %v334_v42 = vshll.u32 %v3110_v9, 16 }
  0x6e   : > { %v340_v33 = vshll.u32 %v306_v18, 16  ;;  %v345_v45 = vshrl.u32 %v3121_v22, 16  ;;  %2465 = vmatprep.mubr.msk.bf16.mxu1 %vm452_vm4, %v2325_v2  ;;  %v2328_v48 = vcombine.low %v3132_v6, %v3146_v32  ;;  %v319_v49 = vrot.slane %v317_v35, 4  ;;  %v310_v2 = vld [vmem:[%s2909_s27 + $0x2c] sm:$0x1] }
  0x6f   : > { %v322_v50 = vrot.slane %v320_v37, 5  ;;  %v328_v15 = vrot.slane %v326_v38, 5  ;;  %v333_v1 = vrot.slane %v331_v39, 4  ;;  %v336_v51 = vrot.slane %v334_v42, 5  ;;  %v3182_v37 = vld [vmem:[%s2909_s27 + $0x38] sm:$0xf] }
  0x70   : > { %v342_v53 = vrot.slane %v340_v33, 5  ;;  %v347_v54 = vrot.slane %v345_v45, 4  ;;  %v348_v55 = vshll.u32 %v3121_v22, 16  ;;  %v354_v56 = vshll.u32 %v307_v34, 16  ;;  %v312_v33 = vld [vmem:[%s2909_s27 + $0x3c] sm:$0x1] }
  0x71   : > { %v323_v16 = vor.u32 %v322_v50, %v319_v49  ;;  %v359_v57 = vshrl.u32 %v3136_v31, 16  ;;  %v337_v59 = vor.u32 %v336_v51, %v333_v1  ;;  %v362_v61 = vshll.u32 %v3136_v31, 16  ;;  %v2639_v51 = vld [vmem:[%s2907_s26 + $0x10] sm:$0xff]  }
  0x72   : > { %v368_v10 = vshll.u32 %v308_v40, 16  ;;  %v373_v62 = vshrl.u32 %v3151_v47, 16  ;;  %v350_v63 = vrot.slane %v348_v55, 5  ;;  %v356_v0 = vrot.slane %v354_v56, 5 }
  0x73   : > { %v324_v60 = vrot.slane %v323_v16, 4  ;;  %v361_v30 = vrot.slane %v359_v57, 4  ;;  %v338_v43 = vrot.slane %v337_v59, 4  ;;  %v364_v3 = vrot.slane %v362_v61, 5 }
  0x74   : > { %v370_v4 = vrot.slane %v368_v10, 5  ;;  %v375_v5 = vrot.slane %v373_v62, 4  ;;  %v351_v11 = vor.u32 %v350_v63, %v347_v54  ;;  %v376_v12 = vshll.u32 %v3151_v47, 16 }
  0x75   : > { %v329_v8 = vsel %vm2988_vm7, %v324_v60, %v328_v15  ;;  %v382_v13 = vshll.u32 %v309_v27, 16  ;;  %2466 = vmatmul.mubr.msk.bf16.vlgmr.msra.gmra.mrb[0].mxu1 %vm452_vm4, %v2326_v52  ;;  %v343_v14 = vsel %vm2988_vm7, %v338_v43, %v342_v53  ;;  %v365_v46 = vor.u32 %v364_v3, %v361_v30  ;;  %v2213_v43 = vld [vmem:[%s2909_s27 + $0x8] sm:$0xf] }
  0x76   : > { %v387_v18 = vshrl.u32 %v3159_v58, 16  ;;  %v390_v41 = vshll.u32 %v3159_v58, 16  ;;  %2469 = vmatprep.mubr.msk.bf16.mxu1 %vm452_vm4, %v2327_v28  ;;  %v2173_v20 = vcombine.low %v329_v8, %v343_v14  ;;  %v352_v21 = vrot.slane %v351_v11, 4 }
  0x77   : > { %v378_v23 = vrot.slane %v376_v12, 5  ;;  %v384_v36 = vrot.slane %v382_v13, 5  ;;  %v366_v24 = vrot.slane %v365_v46, 4  ;;  %v396_v29 = vshll.u32 %v310_v2, 16  ;;  %v2216_v12 = vld [vmem:[%s2909_s27 + $0x14] sm:$0x1] }
  0x78   : > { %v389_v25 = vrot.slane %v387_v18, 4  ;;  %v392_v52 = vrot.slane %v390_v41, 5  ;;  %2395 = vmatprep.mubr.msk.bf16.mxu0 %vm452_vm4, %v2173_v20  ;;  %v357_v34 = vsel %vm2988_vm7, %v352_v21, %v356_v0  ;;  %v401_v28 = vshrl.u32 %v3166_v7, 16  ;;  %v2217_v46 = vld [vmem:[%s2909_s27 + $0x18] sm:$0xf] }
  0x79   : > { %v379_v35 = vor.u32 %v378_v23, %v375_v5  ;;  %v404_v38 = vshll.u32 %v3166_v7, 16  ;;  %v371_v39 = vsel %vm2988_vm7, %v366_v24, %v370_v4  ;;  %v398_v42 = vrot.slane %v396_v29, 5  ;;  %v2215_v4 = vld [vmem:[%s2909_s27 + $0x10] sm:$0xf]  ;;  %v3218_v5 = vld [vmem:[%s2907_s26 + $0x18] sm:$0xff]  }
  0x7a   : > { %v393_v40 = vor.u32 %v392_v52, %v389_v25  ;;  %v410_v45 = vshll.u32 %v311_v19, 16  ;;  %v2174_v49 = vcombine.low %v357_v34, %v371_v39  ;;  %v403_v15 = vrot.slane %v401_v28, 4  ;;  %v2640_v18 = vld [vmem:[%s2909_s27 + $0x8] ss:$8 sps:$4 sm:$0xff]   ;;  %v2219_v41 = vld [vmem:[%s2909_s27 + $0x20] sm:$0xf] }
  0x7b   : > { %v380_v50 = vrot.slane %v379_v35, 4  ;;  %v406_v1 = vrot.slane %v404_v38, 5  ;;  %v415_v54 = vshrl.u32 %v3182_v37, 16  ;;  %v418_v16 = vshll.u32 %v3182_v37, 16  ;;  %v2221_v19 = vld [vmem:[%s2909_s27 + $0x28] sm:$0xf] }
  0x7c   : > { %v394_v53 = vrot.slane %v393_v40, 4  ;;  %2396 = vmatmul.mubr.msk.bf16.vlgmr.msra.gmra.mrb[0].mxu0 %vm452_vm4, %v2174_v49  ;;  %v424_v57 = vshll.u32 %v312_v33, 16  ;;  %v412_v59 = vrot.slane %v410_v45, 5  ;;  %v2182_v30 = vcombine.low %v3107_v26, %v3110_v9  ;;  %v2223_v24 = vld [vmem:[%s2909_s27 + $0x30] sm:$0xf] }
  0x7d   : > { %v385_v55 = vsel %vm2988_vm7, %v380_v50, %v384_v36  ;;  %v407_v56 = vor.u32 %v406_v1, %v403_v15  ;;  %2470 = vmatmul.mubr.msk.bf16.gmra.mrb[4].mxu1 %vm452_vm4, %v2328_v48  ;;  %v417_v61 = vrot.slane %v415_v54, 4  ;;  %v420_v10 = vrot.slane %v418_v16, 5  ;;  %2404 = vmatpush3.bf16.msra.mxu0 %v2959_v44  ;;  %v2641_v34 = vld [vmem:[%s2909_s27 + $0x18] ss:$8 sps:$4 sm:$0xff]   ;;  %v2218_v33 = vld [vmem:[%s2909_s27 + $0x1c] sm:$0x1] }
  0x7e   : > { %v399_v27 = vsel %vm2988_vm7, %v394_v53, %v398_v42  ;;  %2413 = vmatprep.subr.bf16.mxu0 %v2639_v51  ;;  %v426_v0 = vrot.slane %v424_v57, 5  ;;  %v2183_v2 = vcombine.low %v3121_v22, %v3136_v31  ;;  %v2184_v3 = vcombine.low %v3151_v47, %v3159_v58  ;;  %v2214_v22 = vld [vmem:[%s2909_s27 + $0xc] sm:$0x1]  ;;  %v2220_v50 = vld [vmem:[%s2909_s27 + $0x24] sm:$0x1] }
  0x7f   : > { %v2175_v62 = vcombine.low %v385_v55, %v399_v27  ;;  %v408_v60 = vrot.slane %v407_v56, 4  ;;  %v421_v63 = vor.u32 %v420_v10, %v417_v61  ;;  %v779_v8 = vshrl.u32 %v2213_v43, 16  ;;  %v2642_v53 = vld [vmem:[%s2909_s27 + $0x28] ss:$8 sps:$4 sm:$0xff]   ;;  %v2225_v54 = vld [vmem:[%s2909_s27 + $0x38] sm:$0xf] }
  0x80   : > { %v782_v26 = vshll.u32 %v2213_v43, 16  ;;  %v793_v9 = vshrl.u32 %v2215_v4, 16  ;;  %v796_v11 = vshll.u32 %v2215_v4, 16  ;;  %v2185_v58 = vcombine.low %v3166_v7, %v3182_v37  ;;  %v2227_v27 = vld [vmem:[%s2909_s27 + $0x40] sm:$0xf] }
  0x81   : > { %2399 = vmatprep.mubr.msk.bf16.mxu0 %vm452_vm4, %v2175_v62  ;;  %v413_v6 = vsel %vm2988_vm7, %v408_v60, %v412_v59  ;;  %v422_v32 = vrot.slane %v421_v63, 4  ;;  %v781_v31 = vrot.slane %v779_v8, 4  ;;  %v788_v21 = vshll.u32 %v2214_v22, 16  ;;  %v2222_v10 = vld [vmem:[%s2909_s27 + $0x2c] sm:$0x1] }
  0x82   : > { %v784_v47 = vrot.slane %v782_v26, 5  ;;  %v795_v13 = vrot.slane %v793_v9, 4  ;;  %v798_v14 = vrot.slane %v796_v11, 5  ;;  %v802_v23 = vshll.u32 %v2216_v12, 16  ;;  %v2224_v62 = vld [vmem:[%s2909_s27 + $0x34] sm:$0x1] }
  0x83   : > { %v427_v48 = vsel %vm2988_vm7, %v422_v32, %v426_v0  ;;  %v807_v36 = vshrl.u32 %v2217_v46, 16  ;;  %v810_v52 = vshll.u32 %v2217_v46, 16  ;;  %v821_v7 = vshrl.u32 %v2219_v41, 16  ;;  %v2643_v26 = vld [vmem:[%s2909_s27 + $0x38] ss:$8 sps:$4 sm:$0xff]  }
  0x84   : > { %v2176_v44 = vcombine.low %v413_v6, %v427_v48  ;;  %v785_v20 = vor.u32 %v784_v47, %v781_v31  ;;  %v799_v25 = vor.u32 %v798_v14, %v795_v13  ;;  %v824_v29 = vshll.u32 %v2219_v41, 16  ;;  %v2226_v47 = vld [vmem:[%s2909_s27 + $0x3c] sm:$0x1] }
  0x85   : > { %v835_v35 = vshrl.u32 %v2221_v19, 16  ;;  %v838_v37 = vshll.u32 %v2221_v19, 16  ;;  %v849_v28 = vshrl.u32 %v2223_v24, 16  ;;  %v852_v38 = vshll.u32 %v2223_v24, 16  ;;  %v2228_v19 = vld [vmem:[%s2909_s27 + $0x44] sm:$0x1] }
  0x86   : > { %2400 = vmatmul.mubr.msk.bf16.gmra.mrb[4].mxu0 %vm452_vm4, %v2176_v44  ;;  %v786_v39 = vrot.slane %v785_v20, 4  ;;  %v790_v40 = vrot.slane %v788_v21, 5  ;;  %v804_v42 = vrot.slane %v802_v23, 5  ;;  %v809_v45 = vrot.slane %v807_v36, 4 }
  0x87   : > { %2405 = vmatprep.mubr.msk.bf16.mxu0 %vm452_vm4, %v2182_v30  ;;  %v800_v49 = vrot.slane %v799_v25, 4  ;;  %v812_v15 = vrot.slane %v810_v52, 5  ;;  %v823_v1 = vrot.slane %v821_v7, 4  ;;  %v837_v16 = vrot.slane %v835_v35, 4 }
  0x88   : > { %v840_v55 = vrot.slane %v838_v37, 5  ;;  %v851_v56 = vrot.slane %v849_v28, 4  ;;  %v854_v57 = vrot.slane %v852_v38, 5  ;;  %v816_v59 = vshll.u32 %v2218_v33, 16 }
  0x89   : > { %v830_v61 = vshll.u32 %v2220_v50, 16  ;;  %v791_v60 = vsel %vm2988_vm7, %v786_v39, %v790_v40  ;;  %v805_v63 = vsel %vm2988_vm7, %v800_v49, %v804_v42  ;;  %v813_v0 = vor.u32 %v812_v15, %v809_v45 }
  0x8a   : > { %v863_v32 = vshrl.u32 %v2225_v54, 16  ;;  %v866_v48 = vshll.u32 %v2225_v54, 16  ;;  %v877_v30 = vshrl.u32 %v2227_v27, 16  ;;  %v880_v44 = vshll.u32 %v2227_v27, 16  ;;  %v999_v54 = vld [vmem:[#allocation2] sm:$0xff]  ;;  %v1000_v27 = vld [vmem:[#allocation2 + $0x8] sm:$0xff] }
  0x8b   : > { %v844_v43 = vshll.u32 %v2222_v10, 16  ;;  %v858_v4 = vshll.u32 %v2224_v62, 16  ;;  %v818_v8 = vrot.slane %v816_v59, 5  ;;  %v2233_v9 = vcombine.low %v791_v60, %v805_v63  ;;  %v1005_v63 = vld [vmem:[#allocation2 + $0x30] sm:$0xff] }
  0x8c   : > { %v814_v11 = vrot.slane %v813_v0, 4  ;;  %v832_v31 = vrot.slane %v830_v61, 5  ;;  %v868_v12 = vrot.slane %v866_v48, 5  ;;  %v879_v13 = vrot.slane %v877_v30, 4  ;;  %v1003_v0 = vld [vmem:[#allocation2 + $0x20] sm:$0xff] }
  0x8d   : > { %v846_v46 = vrot.slane %v844_v43, 5  ;;  %v860_v41 = vrot.slane %v858_v4, 5  ;;  %v872_v21 = vshll.u32 %v2226_v47, 16  ;;  %v886_v25 = vshll.u32 %v2228_v19, 16 }
  0x8e   : > { %2406 = vmatmul.mubr.msk.bf16.vlgmr.msra.gmra.mrb[0].mxu0 %vm452_vm4, %v2183_v2  ;;  %v841_v2 = vor.u32 %v840_v55, %v837_v16  ;;  %v819_v20 = vsel %vm2988_vm7, %v814_v11, %v818_v8  ;;  %v1002_v55 = vld [vmem:[#allocation2 + $0x18] sm:$0xff]  ;;  %vm1907_vm10 = vcmask (!%p2334_p3), 60416  }
  0x8f   : > { %2409 = vmatprep.mubr.msk.bf16.mxu0 %vm452_vm4, %v2184_v3  ;;  %2414 = vmatpush3.bf16.msra.mxu0 %v2639_v51  ;;  %v826_v51 = vrot.slane %v824_v29, 5  ;;  %v855_v3 = vor.u32 %v854_v57, %v851_v56  ;;  %v888_v38 = vrot.slane %v886_v25, 5 }
  0x90   : > { %2423 = vmatprep.subr.bf16.mxu0 %v3218_v5  ;;  %v842_v14 = vrot.slane %v841_v2, 4 }
  0x91   : > { %v827_v6 = vor.u32 %v826_v51, %v823_v1 }
  0x92   : > { %v847_v52 = vsel %vm2988_vm7, %v842_v14, %v846_v46 }
  0x93   : > { %v828_v22 = vrot.slane %v827_v6, 4 }
  0x95   : > { %v833_v23 = vsel %vm2988_vm7, %v828_v22, %v832_v31 }
  0x96   : > { %2410 = vmatmul.mubr.msk.bf16.gmra.mrb[4].mxu0 %vm452_vm4, %v2185_v58  ;;  %v865_v58 = vrot.slane %v863_v32, 4  ;;  %v2234_v29 = vcombine.low %v819_v20, %v833_v23  ;;  %v1006_v32 = vld [vmem:[#allocation2 + $0x38] sm:$0xff] }
  0x97   : > { %2415 = vmatprep.mubr.msk.bf16.mxu0 %vm452_vm4, %v2640_v18  ;;  %v856_v18 = vrot.slane %v855_v3, 4 }
  0x98   : > { %v869_v36 = vor.u32 %v868_v12, %v865_v58 }
  0x99   : > { %v861_v7 = vsel %vm2988_vm7, %v856_v18, %v860_v41 }
  0x9a   : > { %v2235_v35 = vcombine.low %v847_v52, %v861_v7  ;;  %v870_v37 = vrot.slane %v869_v36, 4 }
  0x9e   : > { %2416 = vmatmul.mubr.msk.bf16.vlgmr.msra.gmra.mrb[0].mxu0 %vm452_vm4, %v2641_v34  ;;  %v874_v34 = vrot.slane %v872_v21, 5 }
  0x9f   : > { %2419 = vmatprep.mubr.msk.bf16.mxu0 %vm452_vm4, %v2642_v53  ;;  %2424 = vmatpush3.bf16.msra.mxu0 %v3218_v5  ;;  %v882_v5 = vrot.slane %v880_v44, 5  ;;  %v1004_v44 = vld [vmem:[#allocation2 + $0x28] sm:$0xff] }
  0xa0   : > { %v875_v39 = vsel %vm2988_vm7, %v870_v37, %v874_v34 }
  0xa1   : > { %v883_v24 = vor.u32 %v882_v5, %v879_v13 }
  0xa3   : > { %v884_v28 = vrot.slane %v883_v24, 4 }
  0xa5   : > { %v889_v40 = vsel %vm2988_vm7, %v884_v28, %v888_v38 }
  0xa6   : > { %2420 = vmatmul.mubr.msk.bf16.gmra.mrb[4].mxu0 %vm452_vm4, %v2643_v26  ;;  %v2236_v42 = vcombine.low %v875_v39, %v889_v40 }
  0xa7   : > { %2425 = vmatprep.mubr.msk.bf16.mxu0 %vm452_vm4, %v2233_v9 }
  0xae   : > { %2426 = vmatmul.mubr.msk.bf16.vlgmr.msra.gmra.mrb[0].mxu0 %vm452_vm4, %v2234_v29 }
  0xaf   : > { %2429 = vmatprep.mubr.msk.bf16.mxu0 %vm452_vm4, %v2235_v35  ;;  %v2335_v35 = vld [vmem:[%s3369_s2] ss:$0 sm:$0xff] (!%p2334_p3) }
  0xb6   : > { %2430 = vmatmul.mubr.msk.bf16.gmra.mrb[4].mxu0 %vm452_vm4, %v2236_v42 }
 0x148   : > { %v2467_v33 = vpop.f32.mrb[0].mxu1 }
 0x149   : > { %1835 = vrot.lane.b32.xlu1 %v2467_v33, %s2750_s29  ;;  %v1776_v45 = vpop.f32.mrb[1].mxu1 }
 0x14a   : > { %1831 = vrot.lane.b32.xlu0 %v1776_v45, %s2750_s29  ;;  %v2468_v49 = vpop.f32.mrb[2].mxu1 }
 0x14b   : > { %v1779_v50 = vpop.f32.mrb[3].mxu1 }
 0x14d   : > { %1837 = vrot.lane.b32.xlu1 %v2468_v49, %s2750_s29 }
 0x14e   : > { %1833 = vrot.lane.b32.xlu0 %v1779_v50, %s2750_s29 }
 0x150   : > { %v2471_v15 = vpop.f32.mrb[4].mxu1 }
 0x151   : > { %v1792_v1 = vpop.f32.mrb[5].mxu1 }
 0x152   : > { %1839 = vrot.lane.b32.xlu0 %v1792_v1, %s2750_s29  ;;  %v2472_v51 = vpop.f32.mrb[6].mxu1 }
 0x153   : > { %v1795_v53 = vpop.f32.mrb[7].mxu1 }
 0x154   : > { %1841 = vrot.lane.b32.xlu1 %v1795_v53, %s2750_s29 }
 0x156   : > { %1843 = vrot.lane.b32.xlu0 %v2471_v15, %s2750_s29 }
 0x158   : > { %1845 = vrot.lane.b32.xlu1 %v2472_v51, %s2750_s29 }
 0x181   : > { %v2427_v16 = vpop.f32.mrb[0].mxu0 }
 0x182   : > { %v1009_v56 = vadd.f32 %v2427_v16, %v1001_v17  ;;  %v960_v57 = vpop.f32.mrb[1].mxu0 }
 0x183   : > { %v1007_v59 = vadd.f32 %v999_v54, %v960_v57  ;;  %v2428_v61 = vpop.f32.mrb[2].mxu0 }
 0x184   : > { %1018 = vst.msk [vmem:[#allocation2 + $0x10] sm:$0xff] %vm1015_vm8, %v1009_v56  ;;  %v1010_v10 = vadd.f32 %v2428_v61, %v1002_v55  ;;  %v963_v62 = vpop.f32.mrb[3].mxu0 }
 0x185   : > { %1016 = vst.msk [vmem:[#allocation2] sm:$0xff] %vm1015_vm8, %v1007_v59  ;;  %v1008_v60 = vadd.f32 %v1000_v27, %v963_v62 }
 0x186   : > { %1019 = vst.msk [vmem:[#allocation2 + $0x18] sm:$0xff] %vm1015_vm8, %v1010_v10 }
 0x187   : > { %1017 = vst.msk [vmem:[#allocation2 + $0x8] sm:$0xff] %vm1015_vm8, %v1008_v60 }
 0x189   : > { %v2431_v6 = vpop.f32.mrb[4].mxu0 }
 0x18a   : > { %v1013_v48 = vadd.f32 %v2431_v6, %v1005_v63  ;;  %v976_v30 = vpop.f32.mrb[5].mxu0 }
 0x18b   : > { %v1011_v2 = vadd.f32 %v1003_v0, %v976_v30  ;;  %v2432_v43 = vpop.f32.mrb[6].mxu0  ;;  %v1817_v9 = vld [vmem:[#allocation2 + $0x10] sm:$0xff] }
 0x18c   : > { %1022 = vst.msk [vmem:[#allocation2 + $0x30] sm:$0xff] %vm1015_vm8, %v1013_v48  ;;  %v1014_v3 = vadd.f32 %v2432_v43, %v1006_v32  ;;  %v979_v4 = vpop.f32.mrb[7].mxu0  ;;  %v1815_v31 = vld [vmem:[#allocation2] sm:$0xff] }
 0x18d   : > { %1020 = vst.msk [vmem:[#allocation2 + $0x20] sm:$0xff] %vm1015_vm8, %v1011_v2  ;;  %v1012_v8 = vadd.f32 %v1004_v44, %v979_v4  ;;  %v1818_v12 = vld [vmem:[#allocation2 + $0x18] sm:$0xff] }
 0x18e   : > { %1023 = vst.msk [vmem:[#allocation2 + $0x38] sm:$0xff] %vm1015_vm8, %v1014_v3  ;;  %v1816_v14 = vld [vmem:[#allocation2 + $0x8] sm:$0xff] }
 0x18f   : > { %1021 = vst.msk [vmem:[#allocation2 + $0x28] sm:$0xff] %vm1015_vm8, %v1012_v8 }
 0x193   : > { %v1821_v24 = vld [vmem:[#allocation2 + $0x30] sm:$0xff] }
 0x194   : > { %v1819_v41 = vld [vmem:[#allocation2 + $0x20] sm:$0xff] }
 0x195   : > { %v1822_v7 = vld [vmem:[#allocation2 + $0x38] sm:$0xff] }
 0x196   : > { %v1820_v21 = vld [vmem:[#allocation2 + $0x28] sm:$0xff] }
 0x1bb   : > { %v1836_v26 = vpop.permute.xlu1 %1835 }
 0x1bc   : > { %v1857_v11 = vadd.f32 %v1836_v26, %v1817_v9  ;;  %v1832_v22 = vpop.permute.xlu0 %1831 }
 0x1bd   : > { %v1855_v47 = vadd.f32 %v1832_v22, %v1815_v31 }
 0x1be   : > { %1866 = vst.msk [vmem:[#allocation2 + $0x10] sm:$0xff] %vm1863_vm9, %v1857_v11 }
 0x1bf   : > { %1864 = vst.msk [vmem:[#allocation2] sm:$0xff] %vm1863_vm9, %v1855_v47  ;;  %v1838_v58 = vpop.permute.xlu1 %1837 }
 0x1c0   : > { %v1858_v13 = vadd.f32 %v1838_v58, %v1818_v12  ;;  %v1834_v5 = vpop.permute.xlu0 %1833 }
 0x1c1   : > { %v1856_v46 = vadd.f32 %v1834_v5, %v1816_v14 }
 0x1c2   : > { %1867 = vst.msk [vmem:[#allocation2 + $0x18] sm:$0xff] %vm1863_vm9, %v1858_v13 }
 0x1c3   : > { %1865 = vst.msk [vmem:[#allocation2 + $0x8] sm:$0xff] %vm1863_vm9, %v1856_v46 }
 0x1c4   : > { %v1840_v18 = vpop.permute.xlu0 %1839 }
 0x1c5   : > { %v1859_v19 = vadd.f32 %v1840_v18, %v1819_v41  ;;  %v1878_v39 = vld [vmem:[#allocation2 + $0x10] sm:$0xff] (!%p2334_p3) }
 0x1c6   : > { %v1842_v20 = vpop.permute.xlu1 %1841  ;;  %v1876_v34 = vld [vmem:[#allocation2] sm:$0xff] (!%p2334_p3)  ;;  %v1893_v33 = vadd.f32 (!%p2334_p3), %v2335_v35, %v1878_v39 }
 0x1c7   : > { %1868 = vst.msk [vmem:[#allocation2 + $0x20] sm:$0xff] %vm1863_vm9, %v1859_v19  ;;  %v1860_v23 = vadd.f32 %v1842_v20, %v1820_v21  ;;  %1875 = sbr.rel (%p2334_p3) target bundleno = 474 (0x1da), region = 40  ;;  %v1891_v28 = vadd.f32 (!%p2334_p3), %v2335_v35, %v1876_v34 }
 0x1c8   : > { %v1844_v36 = vpop.permute.xlu0 %1843  ;;  %v1901_v16 = vpack.c.bf16 (!%p2334_p3), %v1893_v33, %v1893_v33 }
 0x1c9   : > { %1869 = vst.msk [vmem:[#allocation2 + $0x28] sm:$0xff] %vm1863_vm9, %v1860_v23  ;;  %v1861_v25 = vadd.f32 %v1844_v36, %v1821_v24  ;;  %v1879_v40 = vld [vmem:[#allocation2 + $0x18] sm:$0xff] (!%p2334_p3)  ;;  %v1899_v51 = vpack.c.bf16 (!%p2334_p3), %v1891_v28, %v1891_v28 }
 0x1ca   : > { %v1846_v52 = vpop.permute.xlu1 %1845  ;;  %v1877_v37 = vld [vmem:[#allocation2 + $0x8] sm:$0xff] (!%p2334_p3)  ;;  %v1894_v45 = vadd.f32 (!%p2334_p3), %v2335_v35, %v1879_v40  ;;  %1910 = vst.msk [vmem:[%s2902_s13 + $0x8] sm:$0xf] (!%p2334_p3), %vm1907_vm10, %v1901_v16 }
 0x1cb   : > { %1870 = vst.msk [vmem:[#allocation2 + $0x30] sm:$0xff] %vm1863_vm9, %v1861_v25  ;;  %v1862_v29 = vadd.f32 %v1846_v52, %v1822_v7  ;;  %v1892_v38 = vadd.f32 (!%p2334_p3), %v2335_v35, %v1877_v37 }
 0x1cc   : > { %v1902_v55 = vpack.c.bf16 (!%p2334_p3), %v1894_v45, %v1894_v45  ;;  %1908 = vst.msk [vmem:[%s2902_s13] sm:$0xf] (!%p2334_p3), %vm1907_vm10, %v1899_v51 }
 0x1cd   : > { %1871 = vst.msk [vmem:[#allocation2 + $0x38] sm:$0xff] %vm1863_vm9, %v1862_v29  ;;  %v1900_v53 = vpack.c.bf16 (!%p2334_p3), %v1892_v38, %v1892_v38 }
 0x1ce   : > { %v1880_v42 = vld [vmem:[#allocation2 + $0x20] sm:$0xff]  ;;  %1911 = vst.msk [vmem:[%s2902_s13 + $0xc] sm:$0xf] %vm1907_vm10, %v1902_v55 }
 0x1cf   : > { %v1895_v49 = vadd.f32 %v2335_v35, %v1880_v42  ;;  %1909 = vst.msk [vmem:[%s2902_s13 + $0x4] sm:$0xf] %vm1907_vm10, %v1900_v53 }
 0x1d0   : > { %v1881_v50 = vld [vmem:[#allocation2 + $0x28] sm:$0xff] }
 0x1d1   : > { %v1896_v17 = vadd.f32 %v2335_v35, %v1881_v50  ;;  %v1903_v56 = vpack.c.bf16 %v1895_v49, %v1895_v49 }
 0x1d2   : > { %v1882_v15 = vld [vmem:[#allocation2 + $0x30] sm:$0xff] }
 0x1d3   : > { %v1897_v54 = vadd.f32 %v2335_v35, %v1882_v15  ;;  %v1904_v27 = vpack.c.bf16 %v1896_v17, %v1896_v17  ;;  %1912 = vst.msk [vmem:[%s2902_s13 + $0x10] sm:$0xf] %vm1907_vm10, %v1903_v56 }
 0x1d4   : > { %v1883_v1 = vld [vmem:[#allocation2 + $0x38] sm:$0xff] }
 0x1d5   : > { %v1898_v57 = vadd.f32 %v2335_v35, %v1883_v1  ;;  %v1905_v59 = vpack.c.bf16 %v1897_v54, %v1897_v54  ;;  %1913 = vst.msk [vmem:[%s2902_s13 + $0x14] sm:$0xf] %vm1907_vm10, %v1904_v27 }
 0x1d7   : > { %v1906_v61 = vpack.c.bf16 %v1898_v57, %v1898_v57  ;;  %1914 = vst.msk [vmem:[%s2902_s13 + $0x18] sm:$0xf] %vm1907_vm10, %v1905_v59 }
 0x1d9   : > { %1915 = vst.msk [vmem:[%s2902_s13 + $0x1c] sm:$0xf] %vm1907_vm10, %v1906_v61 }
 0x1da PF: > { %1922 = sbr.rel (!%p2854_p7) target bundleno = 486 (0x1e6), region = 44  ;;  %s2337_s14 = sshll.u32 (%p2854_p7), %s2723_s18, 3  ;;  %v1948_v62 = vld [vmem:[%s2902_s13 + $0x4] sm:$0xf] (%p2854_p7)  ;;  %v1954_v0 = vld [vmem:[%s2902_s13 + $0x10] sm:$0xf] (%p2854_p7) }
 0x1db   : > { %s1924_s23 = sadd.s32 (%p2854_p7), %s2711_s15, %s2337_s14 }
 0x1dc   : > { %s2338_s25 = sshll.u32 (%p2854_p7), %s1924_s23, 1  ;;  %v1956_v6 = vld [vmem:[%s2902_s13 + $0x14] sm:$0xf] (%p2854_p7) }
 0x1dd   : > { %s1926_s19 = sadd.s32 (%p2854_p7), %s2719_s17, %s2338_s25  ;;  %v1950_v60 = vld [vmem:[%s2902_s13 + $0x8] sm:$0xf] (%p2854_p7) }
 0x1de   : > { %s2339_s5 = sshll.u32 (%p2854_p7), %s1926_s19, 4  ;;  %v1958_v32 = vld [vmem:[%s2902_s13 + $0x18] sm:$0xf] (%p2854_p7) }
 0x1df   : > { %v1946_v10 = vld [vmem:[%s2902_s13] sm:$0xf] (%p2854_p7)  ;;  %s1928_s20 = sadd.s32 (%p2854_p7), %s2715_s16, %s2339_s5 }
 0x1e0   : > { %v1960_v48 = vld [vmem:[%s2902_s13 + $0x1c] sm:$0xf] (%p2854_p7)  ;;  %s2340_s6 = sshll.u32 (%p2854_p7), %s1928_s20, 2 }
 0x1e1   : > { %v1952_v63 = vld [vmem:[%s2902_s13 + $0xc] sm:$0xf]  ;;  %s1930_s28 = scalar_lea.vmem %s3370_s3, %s2340_s6 }
 0x1e2   : > { %1947 = vst [vmem:[%s1930_s28] sm:$0xf] %v1946_v10  ;;  %1949 = vst [vmem:[%s1930_s28 + $0x8] sm:$0xf] %v1948_v62 }
 0x1e3   : > { %1951 = vst [vmem:[%s1930_s28 + $0x10] sm:$0xf] %v1950_v60  ;;  %1953 = vst [vmem:[%s1930_s28 + $0x18] sm:$0xf] %v1952_v63 }
 0x1e4   : > { %1955 = vst [vmem:[%s1930_s28 + $0x20] sm:$0xf] %v1954_v0  ;;  %1957 = vst [vmem:[%s1930_s28 + $0x28] sm:$0xf] %v1956_v6 }
 0x1e5   : > { %1959 = vst [vmem:[%s1930_s28 + $0x30] sm:$0xf] %v1958_v32  ;;  %1961 = vst [vmem:[%s1930_s28 + $0x38] sm:$0xf] %v1960_v48 }
 0x1e6 PF: > { %s13_s24 = sadd.s32 1, %s2747_s24   ;;  %s3400_s12 = sld [smem:[#allocation4_spill]] }
 0x1e7   : > { %p3323_p4 = scmp.ge.s32.totalorder %s13_s24, 130   ;;  %s3401_s13 = sld [smem:[#allocation15_spill]] }
 0x1e8   : > { %s3402_s14 = sld [smem:[#allocation5_spill]]  ;;  %s3403_s16 = sld [smem:[#allocation6_spill]] }
 0x1e9   : > { %s3404_s17 = sld [smem:[#allocation7_spill]]  ;;  %s3405_s18 = sld [smem:[#allocation8_spill]] }
 0x1ea   : > { %s3406_s4 = sld [smem:[#allocation9_spill]]  ;;  %s3407_s19 = sld [smem:[#allocation10_spill]] }
 0x1eb   : > { %s3408_s20 = sld [smem:[#allocation11_spill]]  ;;  %s3409_s21 = sld [smem:[#allocation12_spill]] }
 0x1ec   : > { %s3410_s22 = sld [smem:[#allocation14_spill]]  ;;  %s3411_s23 = sld [smem:[#allocation13_spill]] }
 0x1ed   :  { %12 = sbr.rel (!%p3323_p4) target bundleno = 7 (0x7), region = 124 }
 0x1ee   : > { %s3413_s15 = smov %s3403_s16 }
 0x1ef   : > { %s3414_s16 = smov %s3404_s17  ;;  %s3415_s17 = smov %s3405_s18 }
 0x1f0   : > { %s3416_s18 = smov %s3406_s4 }

</bundles_post_ra>
